<compile_context>
chip_gen: v5e
topology: v5e:2x2
jax: 0.10.0
libtpu: 0.0.40
codegen_flags: <defaults>
</compile_context>

<pallas_src>
import numpy as np
import jax
import jax.numpy as jnp
from jax.experimental import pallas as pl
from jax.experimental.pallas import tpu as pltpu


# ---------------------------------------------------------------------------
# Fused kernel: avgpool -> 1x1 conv (BN folded) -> ReLU -> bilinear upsample
# for ALL pools of one branch group, one batch element per n, one HW tile per j
# ---------------------------------------------------------------------------
def _fused_branch_kernel(x_ref, pt_ref, w_ref, shift_ref, mask_ref, ut_ref,
                         o_ref, z_ref):
    # x_ref     : (Cin, HW)           bf16  NCHW-flat input for one batch elem
    # pt_ref    : (HW, hw_pad)        bf16  stacked avg-pool matrices (transposed)
    # w_ref     : (Cout_tot, Cin)     bf16  BN-scale-folded 1x1 conv weights
    # shift_ref : (Cout_tot, 1)       f32   folded BN shift
    # mask_ref  : (Cout_tot, hw_pad)  f32   block-diagonal branch mask
    # ut_ref    : (hw_pad, t_hw)      bf16  stacked bilinear matrices (transposed)
    # o_ref     : (Cout_tot, t_hw)    f32   output tile (NCHW-flat, lane-dense)
    # z_ref     : (Cout_tot, hw_pad)  bf16  scratch, persists across the j axis

    @pl.when(pl.program_id(1) == 0)
    def _():
        pooled = jnp.dot(x_ref[...], pt_ref[...],
                         preferred_element_type=jnp.float32)        # (Cin, hw_pad)
        z = jnp.dot(w_ref[...], pooled.astype(jnp.bfloat16),
                    preferred_element_type=jnp.float32)             # (Cout, hw_pad)
        z = jnp.maximum(z + shift_ref[...], 0.0) * mask_ref[...]
        z_ref[...] = z.astype(jnp.bfloat16)

    o_ref[...] = jnp.dot(z_ref[...], ut_ref[...],
                         preferred_element_type=jnp.float32).astype(o_ref.dtype)


# ---------------------------------------------------------------------------
# Host-side matrix construction (exact PyTorch semantics)
# ---------------------------------------------------------------------------
def _round_up(x, m):
    return ((x + m - 1) // m) * m


def _avg_matrix(out_size, in_size):
    """AvgPool1d(kernel=stride=in//out) as a dense (out, in) matrix."""
    pool = in_size // out_size
    m = np.zeros((out_size, in_size), np.float32)
    m[np.repeat(np.arange(out_size), pool), np.arange(out_size * pool)] = 1.0 / pool
    return m


def _bilinear_matrix(out_size, in_size):
    """F.interpolate(mode='bilinear', align_corners=False) along one axis."""
    scale = in_size / out_size
    i = np.arange(out_size, dtype=np.float64)
    src = np.maximum((i + 0.5) * scale - 0.5, 0.0)
    lo = np.minimum(np.floor(src).astype(np.int64), in_size - 1)
    hi = np.minimum(lo + 1, in_size - 1)
    w_hi = (src - lo).astype(np.float32)
    w_lo = 1.0 - w_hi
    m = np.zeros((out_size, in_size), np.float32)
    np.add.at(m, (np.arange(out_size), lo), w_lo)
    np.add.at(m, (np.arange(out_size), hi), w_hi)
    return m


def _build_branch_operands(H, W, pools, params_list, eps=1e-5):
    """Stacked pool/upsample matrices, block mask, folded conv+BN weights."""
    HW = H * W
    hws = [(H // p) * (W // p) for p in pools]
    offs = np.concatenate(([0], np.cumsum(hws))).astype(np.int64)
    hw_pad = _round_up(int(offs[-1]), 16)          # bf16 sublane packing
    cout = params_list[0]["conv_w"].shape[0]
    cout_tot = cout * len(pools)

    pt = np.zeros((HW, hw_pad), np.float32)        # stacked P^T
    ut = np.zeros((hw_pad, HW), np.float32)        # stacked U^T
    mask = np.zeros((cout_tot, hw_pad), np.float32)
    for b, p in enumerate(pools):
        h, w = H // p, W // p
        o = int(offs[b])
        pmat = np.kron(_avg_matrix(h, H), _avg_matrix(w, W))            # (hw, HW)
        umat = np.kron(_bilinear_matrix(H, h), _bilinear_matrix(W, w))  # (HW, hw)
        pt[:, o:o + h * w] = pmat.T
        ut[o:o + h * w, :] = umat.T
        mask[b * cout:(b + 1) * cout, o:o + h * w] = 1.0

    w_blocks, shift_blocks = [], []
    for prm in params_list:
        cin = prm["conv_w"].shape[1]
        scale = prm["gamma"] / jnp.sqrt(prm["var"] + eps)
        shift = prm["beta"] - prm["mean"] * scale
        w_blocks.append(prm["conv_w"].reshape(cout, cin) * scale[:, None])
        shift_blocks.append(shift)
    w_all = jnp.concatenate(w_blocks, axis=0).astype(jnp.bfloat16)       # (cout_tot, Cin)
    shift_all = jnp.concatenate(shift_blocks, axis=0).reshape(cout_tot, 1)

    return (jnp.asarray(pt, jnp.bfloat16), jnp.asarray(ut, jnp.bfloat16),
            jnp.asarray(mask, jnp.float32), w_all,
            shift_all.astype(jnp.float32), hw_pad, cout_tot)


# ---------------------------------------------------------------------------
# Wrapper: all pools of one branch group in ONE pallas_call
# ---------------------------------------------------------------------------
def run_fused_branches(x_nchw, pools, params_list, eps=1e-5):
    """Returns the channel-concatenated NCHW result (N, 32*len(pools), H, W)."""
    N, Cin, H, W = x_nchw.shape
    for p in pools:
        # TODO(synk): PyTorch AvgPool2d floors non-divisible sizes; only the
        # divisible case (true for this model's shapes) is handled here.
        assert H % p == 0 and W % p == 0
    HW = H * W

    pt, ut, mask, w_all, shift_all, hw_pad, cout_tot = _build_branch_operands(
        H, W, pools, params_list, eps)

    # NCHW-flat: channels on sublanes, HW on lanes -> no wrapper transposes and
    # fully lane-dense output stores.
    x_flat = x_nchw.reshape(N, Cin, HW).astype(jnp.bfloat16)

    # HW tile for the upsample/output stage: lane-dense (multiple of 128) and
    # >= 2 steps per batch element so the pipeline has something to overlap.
    if HW % 1024 == 0 and HW // 1024 >= 2:
        t_hw = 1024
    elif HW % 512 == 0 and HW // 512 >= 2:
        t_hw = 512
    else:
        t_hw = HW
    n_j = HW // t_hw

    out = pl.pallas_call(
        _fused_branch_kernel,
        out_shape=jax.ShapeDtypeStruct((N, cout_tot, HW), jnp.float32),
        grid=(N, n_j),
        in_specs=[
            pl.BlockSpec((None, Cin, HW), lambda n, j: (n, 0, 0)),
            pl.BlockSpec((HW, hw_pad), lambda n, j: (0, 0)),
            pl.BlockSpec((cout_tot, Cin), lambda n, j: (0, 0)),
            pl.BlockSpec((cout_tot, 1), lambda n, j: (0, 0)),
            pl.BlockSpec((cout_tot, hw_pad), lambda n, j: (0, 0)),
            pl.BlockSpec((hw_pad, t_hw), lambda n, j: (0, j)),
        ],
        out_specs=pl.BlockSpec((None, cout_tot, t_hw), lambda n, j: (n, 0, j)),
        scratch_shapes=[pltpu.VMEM((cout_tot, hw_pad), jnp.bfloat16)],
        compiler_params=pltpu.CompilerParams(
            dimension_semantics=("parallel", "arbitrary"),
            vmem_limit_bytes=32 * 1024 * 1024),
    )(x_flat, pt, w_all, shift_all, mask, ut)

    return out.reshape(N, cout_tot, H, W)


# ---------------------------------------------------------------------------
# Parameters (deterministic synthetic init; BN folded with running stats)
# ---------------------------------------------------------------------------
def init_convbn_params(key, in_ch, out_ch=32):
    k1, k2, k3, k4, k5 = jax.random.split(key, 5)
    return dict(
        conv_w=jax.random.normal(k1, (out_ch, in_ch, 1, 1), jnp.float32) * 0.05,
        gamma=1.0 + 0.1 * jax.random.normal(k2, (out_ch,), jnp.float32),
        beta=0.1 * jax.random.normal(k3, (out_ch,), jnp.float32),
        mean=0.1 * jax.random.normal(k4, (out_ch,), jnp.float32),
        var=jnp.abs(jax.random.normal(k5, (out_ch,), jnp.float32)) + 0.5,
    )


def piramid_net_forward(out_0, out_1, out_2, out_3, out_4, params):
    # branch0_*: AvgPool 64/32/16/8 over out_0 (64 ch)  -> concat = 128 channels
    b0 = run_fused_branches(out_0, (64, 32, 16, 8), params["branch0"])
    # branch1_*: AvgPool 32/16/8   over out_2 (512 ch)  -> concat = 96 channels
    b1 = run_fused_branches(out_2, (32, 16, 8), params["branch1"])
    return (out_0, out_1, out_2, out_3, out_4, b0, b1)


# ---------------------------------------------------------------------------
# Pure-JAX f32 reference (for a sanity check of the fused kernel)
# ---------------------------------------------------------------------------
def _reference_branches(x_nchw, pools, params_list, eps=1e-5):
    N, Cin, H, W = x_nchw.shape
    outs = []
    for p, prm in zip(pools, params_list):
        h, w = H // p, W // p
        pooled = x_nchw.reshape(N, Cin, h, p, w, p).mean(axis=(3, 5))
        cout = prm["conv_w"].shape[0]
        scale = prm["gamma"] / jnp.sqrt(prm["var"] + eps)
        shift = prm["beta"] - prm["mean"] * scale
        wc = prm["conv_w"].reshape(cout, Cin)
        z = jnp.einsum("oc,nchw->nohw", wc, pooled)
        z = jnp.maximum(z * scale[None, :, None, None] + shift[None, :, None, None], 0.0)
        bh = jnp.asarray(_bilinear_matrix(H, h))
        bw = jnp.asarray(_bilinear_matrix(W, w))
        outs.append(jnp.einsum("Hh,nohw,Ww->noHW", bh, z, bw))
    return jnp.concatenate(outs, axis=1)


if __name__ == "__main__":
    key = jax.random.PRNGKey(0)
    ks = jax.random.split(key, 12)
    N = 2

    # TODO(synk): densenet121 backbone not provided; synthesize its feature maps.
    out_0 = jax.random.normal(ks[0], (N, 64, 64, 64), jnp.float32)    # AvgPool(64) needs >=64 spatial
    out_1 = jax.random.normal(ks[1], (N, 128, 32, 32), jnp.float32)
    out_2 = jax.random.normal(ks[2], (N, 512, 32, 32), jnp.float32)
    out_3 = jax.random.normal(ks[3], (N, 256, 16, 16), jnp.float32)
    out_4 = jax.random.normal(ks[4], (N, 1024, 8, 8), jnp.float32)

    params = {
        "branch0": [init_convbn_params(ks[5 + i], 64) for i in range(4)],
        "branch1": [init_convbn_params(ks[9 + i], 512) for i in range(3)],
    }

    outs = piramid_net_forward(out_0, out_1, out_2, out_3, out_4, params)
    outs = jax.block_until_ready(outs)

    b0, b1 = outs[5], outs[6]
    assert b0.shape == (N, 4 * 32, 64, 64) and b0.dtype == jnp.float32
    assert b1.shape == (N, 3 * 32, 32, 32) and b1.dtype == jnp.float32

    # bf16-operand / f32-accumulation kernel vs pure-f32 reference
    ref0 = _reference_branches(out_0, (64, 32, 16, 8), params["branch0"])
    ref1 = _reference_branches(out_2, (32, 16, 8), params["branch1"])
    err0 = float(jnp.max(jnp.abs(b0 - ref0)))
    err1 = float(jnp.max(jnp.abs(b1 - ref1)))
    assert err0 < 3e-2 and err1 < 3e-2, (err0, err1)

    print("KERNEL_OK")
</pallas_src>

<mosaic_0001>
module attributes {stable_mosaic.version = 11 : i64} {
  func.func @_fused_branch_kernel(%arg0: i32, %arg1: i32, %arg2: memref<1x64x4096xbf16, #tpu.memory_space<vmem>>, %arg3: memref<4096x96xbf16, #tpu.memory_space<vmem>>, %arg4: memref<128x64xbf16, #tpu.memory_space<vmem>>, %arg5: memref<128x1xf32, #tpu.memory_space<vmem>>, %arg6: memref<128x96xf32, #tpu.memory_space<vmem>>, %arg7: memref<96x1024xbf16, #tpu.memory_space<vmem>>, %arg8: memref<1x128x1024xf32, #tpu.memory_space<vmem>>, %arg9: memref<128x96xbf16, #tpu.memory_space<vmem>>) attributes {dimension_semantics = [#tpu.dimension_semantics<parallel>, #tpu.dimension_semantics<arbitrary>], iteration_bounds = array<i64: 2, 4>, scalar_prefetch = 0 : i64, scratch_operands = 1 : i64, tpu.core_type = #tpu.core_type<tc>, window_params = [{transform_indices = @transform_0, window_bounds = array<i64: 1, 64, 4096>}, {pipeline_mode = #tpu.pipeline_mode<synchronous>, transform_indices = @transform_1, window_bounds = array<i64: 4096, 96>}, {pipeline_mode = #tpu.pipeline_mode<synchronous>, transform_indices = @transform_2, window_bounds = array<i64: 128, 64>}, {pipeline_mode = #tpu.pipeline_mode<synchronous>, transform_indices = @transform_3, window_bounds = array<i64: 128, 1>}, {pipeline_mode = #tpu.pipeline_mode<synchronous>, transform_indices = @transform_4, window_bounds = array<i64: 128, 96>}, {transform_indices = @transform_5, window_bounds = array<i64: 96, 1024>}, {transform_indices = @transform_6, window_bounds = array<i64: 1, 128, 1024>}]} {
    %c0_i32 = arith.constant 0 : i32
    %0 = arith.cmpi eq, %arg1, %c0_i32 : i32
    %1 = arith.extui %0 : i1 to i32
    %c0_i32_0 = arith.constant 0 : i32
    %2 = arith.cmpi ne, %1, %c0_i32_0 : i32
    scf.if %2 {
      %c0_7 = arith.constant 0 : index
      %c0_8 = arith.constant 0 : index
      %c0_9 = arith.constant 0 : index
      %9 = vector.load %arg2[%c0_7, %c0_8, %c0_9] : memref<1x64x4096xbf16, #tpu.memory_space<vmem>>, vector<1x64x4096xbf16>
      %10 = vector.shape_cast %9 : vector<1x64x4096xbf16> to vector<64x4096xbf16>
      %c0_10 = arith.constant 0 : index
      %c0_11 = arith.constant 0 : index
      %11 = vector.load %arg3[%c0_10, %c0_11] : memref<4096x96xbf16, #tpu.memory_space<vmem>>, vector<4096x96xbf16>
      %cst_12 = arith.constant dense<0.000000e+00> : vector<64x96xf32>
      %12 = tpu.matmul %10, %11, %cst_12 {dimension_numbers = #tpu.dot_dimension_numbers<[1], [0], [0], [1], [0, 0, 1, 1], [], []>} : vector<64x4096xbf16>, vector<4096x96xbf16>, vector<64x96xf32> -> vector<64x96xf32>
      %c0_13 = arith.constant 0 : index
      %c0_14 = arith.constant 0 : index
      %13 = vector.load %arg4[%c0_13, %c0_14] : memref<128x64xbf16, #tpu.memory_space<vmem>>, vector<128x64xbf16>
      %14 = arith.truncf %12 : vector<64x96xf32> to vector<64x96xbf16>
      %cst_15 = arith.constant dense<0.000000e+00> : vector<128x96xf32>
      %15 = tpu.matmul %13, %14, %cst_15 {dimension_numbers = #tpu.dot_dimension_numbers<[1], [0], [0], [1], [0, 0, 1, 1], [], []>} : vector<128x64xbf16>, vector<64x96xbf16>, vector<128x96xf32> -> vector<128x96xf32>
      %c0_16 = arith.constant 0 : index
      %c0_17 = arith.constant 0 : index
      %16 = vector.load %arg5[%c0_16, %c0_17] : memref<128x1xf32, #tpu.memory_space<vmem>>, vector<128x1xf32>
      %17 = vector.broadcast %16 : vector<128x1xf32> to vector<128x96xf32>
      %18 = arith.addf %15, %17 : vector<128x96xf32>
      %cst_18 = arith.constant 0.000000e+00 : f32
      %19 = vector.broadcast %cst_18 : f32 to vector<128x96xf32>
      %20 = arith.maximumf %18, %19 : vector<128x96xf32>
      %c0_19 = arith.constant 0 : index
      %c0_20 = arith.constant 0 : index
      %21 = vector.load %arg6[%c0_19, %c0_20] : memref<128x96xf32, #tpu.memory_space<vmem>>, vector<128x96xf32>
      %22 = arith.mulf %20, %21 : vector<128x96xf32>
      %23 = arith.truncf %22 : vector<128x96xf32> to vector<128x96xbf16>
      %c0_21 = arith.constant 0 : index
      %c0_22 = arith.constant 0 : index
      %24 = vector.load %arg9[%c0_21, %c0_22] : memref<128x96xbf16, #tpu.memory_space<vmem>>, vector<128x96xbf16>
      tpu.vector_store %arg9[%c0_21, %c0_22], %23 {strides = array<i32>} : memref<128x96xbf16, #tpu.memory_space<vmem>>, vector<128x96xbf16>,
    } else {
    }
    %c0 = arith.constant 0 : index
    %c0_1 = arith.constant 0 : index
    %3 = vector.load %arg9[%c0, %c0_1] : memref<128x96xbf16, #tpu.memory_space<vmem>>, vector<128x96xbf16>
    %c0_2 = arith.constant 0 : index
    %c0_3 = arith.constant 0 : index
    %4 = vector.load %arg7[%c0_2, %c0_3] : memref<96x1024xbf16, #tpu.memory_space<vmem>>, vector<96x1024xbf16>
    %cst = arith.constant dense<0.000000e+00> : vector<128x1024xf32>
    %5 = tpu.matmul %3, %4, %cst {dimension_numbers = #tpu.dot_dimension_numbers<[1], [0], [0], [1], [0, 0, 1, 1], [], []>} : vector<128x96xbf16>, vector<96x1024xbf16>, vector<128x1024xf32> -> vector<128x1024xf32>
    %c0_4 = arith.constant 0 : index
    %c0_5 = arith.constant 0 : index
    %c0_6 = arith.constant 0 : index
    %6 = vector.load %arg8[%c0_4, %c0_5, %c0_6] : memref<1x128x1024xf32, #tpu.memory_space<vmem>>, vector<1x128x1024xf32>
    %7 = vector.shape_cast %6 : vector<1x128x1024xf32> to vector<128x1024xf32>
    %8 = vector.shape_cast %5 : vector<128x1024xf32> to vector<1x128x1024xf32>
    tpu.vector_store %arg8[%c0_4, %c0_5, %c0_6], %8 {strides = array<i32>} : memref<1x128x1024xf32, #tpu.memory_space<vmem>>, vector<1x128x1024xf32>,
    return
  }
  func.func @transform_0(%arg0: i32, %arg1: i32) -> (i32, i32, i32) {
    %c0_i32 = arith.constant 0 : i32
    %c0_i32_0 = arith.constant 0 : i32
    %c0_i32_1 = arith.constant 0 : i32
    return %arg0, %c0_i32, %c0_i32_0 : i32, i32, i32
  }
  func.func @transform_1(%arg0: i32, %arg1: i32) -> (i32, i32) {
    %c0_i32 = arith.constant 0 : i32
    %c0_i32_0 = arith.constant 0 : i32
    %c0_i32_1 = arith.constant 0 : i32
    return %c0_i32, %c0_i32_0 : i32, i32
  }
  func.func @transform_2(%arg0: i32, %arg1: i32) -> (i32, i32) {
    %c0_i32 = arith.constant 0 : i32
    %c0_i32_0 = arith.constant 0 : i32
    %c0_i32_1 = arith.constant 0 : i32
    return %c0_i32, %c0_i32_0 : i32, i32
  }
  func.func @transform_3(%arg0: i32, %arg1: i32) -> (i32, i32) {
    %c0_i32 = arith.constant 0 : i32
    %c0_i32_0 = arith.constant 0 : i32
    %c0_i32_1 = arith.constant 0 : i32
    return %c0_i32, %c0_i32_0 : i32, i32
  }
  func.func @transform_4(%arg0: i32, %arg1: i32) -> (i32, i32) {
    %c0_i32 = arith.constant 0 : i32
    %c0_i32_0 = arith.constant 0 : i32
    %c0_i32_1 = arith.constant 0 : i32
    return %c0_i32, %c0_i32_0 : i32, i32
  }
  func.func @transform_5(%arg0: i32, %arg1: i32) -> (i32, i32) {
    %c0_i32 = arith.constant 0 : i32
    %c0_i32_0 = arith.constant 0 : i32
    return %c0_i32, %arg1 : i32, i32
  }
  func.func @transform_6(%arg0: i32, %arg1: i32) -> (i32, i32, i32) {
    %c0_i32 = arith.constant 0 : i32
    %c0_i32_0 = arith.constant 0 : i32
    return %arg0, %c0_i32, %arg1 : i32, i32, i32
  }
}

</mosaic_0001>

<bundles_post_ra>
// kernel: tpu_custom_call.1
= control target key start
LH: loop header
LB: loop body
LE: loop exit
PB: predicated region body
PF: predicated region fallthrough
CT: control target
= control target key end

     0   :  { %s10260_s0 = inlined_call_operand.hbm [shape: bf16[2,64,4096], index: 0, kind: input, shape index: {}]   ;;  %s10261_s1 = inlined_call_operand.vmem [shape: bf16[4096,96], index: 1, kind: input, shape index: {}]   ;;  %s10262_s2 = inlined_call_operand.vmem [shape: bf16[128,64], index: 2, kind: input, shape index: {}]   ;;  %s10263_s3 = inlined_call_operand.vmem [shape: f32[128,1], index: 3, kind: input, shape index: {}]   ;;  %s10264_s4 = inlined_call_operand.vmem [shape: f32[128,96], index: 4, kind: input, shape index: {}]   ;;  %s10265_s5 = inlined_call_operand.hbm [shape: bf16[96,4096], index: 5, kind: input, shape index: {}]   ;;  %s10266_s6 = inlined_call_operand.hbm [shape: f32[2,128,4096], index: 6, kind: output, shape index: {}]  }
   0x1   :  { %10277 = sst [smem:[#allocation20_spill]] %s10260_s0 }
   0x2   :  { %10278 = sst [smem:[#allocation21_spill]] %s10262_s2 }
   0x3   :  { %10279 = sst [smem:[#allocation22_spill]] %s10264_s4 }
   0x4   :  { %10280 = sst [smem:[#allocation23_spill]] %s10266_s6 }
   0x5   :  { %11 = vsyncpa [#allocation4], 0 }
   0x6   :  { %13 = vsyncpa [#allocation4 + $0x1], 0 }
   0x7   :  { %14 = vsyncpa [#allocation7], 0 }
   0x8   :  { %16 = vsyncpa [#allocation7 + $0x1], 0 }
   0x9   :  { %17 = vsyncpa [#allocation5], 0 }
   0xa   :  { %19 = vsyncpa [#allocation5 + $0x1], 0  ;;  %s8155_s21 = smov 0   ;;  %s8157_s22 = smov 0  }
   0xb   :  { %s8159_s23 = smov 0   ;;  %s8161_s24 = smov 0  }
   0xc   :  { %s8163_s25 = smov 0   ;;  %s8165_s26 = smov 0  }
   0xd   :  { %s8167_s27 = smov 0   ;;  %s8169_s28 = smov 0  }
   0xe   :  { %s8171_s29 = smov 0   ;;  %s8173_s30 = smov 0  }
   0xf   :  { %s8175_s7 = smov 0   ;;  %s8177_s8 = smov 0  }
  0x10   :  { %s8179_s9 = smov 0   ;;  %s8181_s10 = smov 0  }
  0x11 LB: > { %10281 = sst [smem:[#allocation12_spill]] %s8058_s21  ;;  %s5407_s11 = sadd.s32 4294967295, %s8110_s10   ;;  %s8110_s10 = sphi %s8181_s10, %s25_s10   ;;  %s8106_s9 = sphi %s8179_s9, %s10312_s9   ;;  %s8102_s8 = sphi %s8177_s8, %s10324_s8   ;;  %s8098_s7 = sphi %s8175_s7, %s10310_s7   ;;  %s8094_s30 = sphi %s8173_s30, %s10323_s30   ;;  %s8090_s29 = sphi %s8171_s29, %s10322_s29   ;;  %s8086_s28 = sphi %s8169_s28, %s10321_s28   ;;  %s8082_s27 = sphi %s8167_s27, %s10320_s27   ;;  %s8078_s26 = sphi %s8165_s26, %s10319_s26   ;;  %s8074_s25 = sphi %s8163_s25, %s10318_s25   ;;  %s8070_s24 = sphi %s8161_s24, %s10317_s24   ;;  %s8066_s23 = sphi %s8159_s23, %s10316_s23   ;;  %s8062_s22 = sphi %s8157_s22, %s10315_s22   ;;  %s8058_s21 = sphi %s8155_s21, %s10314_s21  }
  0x12   : > { %10282 = sst [smem:[#allocation13_spill]] %s8098_s7  ;;  %p51_p0 = scmp.ne.s32.totalorder %s8090_s29, %s8086_s28 }
  0x13   : > { %10283 = sst [smem:[#allocation14_spill]] %s8106_s9  ;;  %p52_p1 = scmp.eq.s32.totalorder %s8110_s10, 0 }
  0x14   : > { %p57_p2 = scmp.ne.s32.totalorder %s8086_s28, %s8082_s27  ;;  %p8230_p3 = scmp.eq.s32.totalorder %s5407_s11, 0 }
  0x15   : > { %p8234_p4 = scmp.eq.s32.totalorder %s5407_s11, 7  ;;  %p53_p5 = por %p52_p1, %p51_p0 }
  0x16   : > { %p8242_p6 = por %p8230_p3, %p57_p2  ;;  %p7775_p7 = scmp.lt.s32.totalorder %s8110_s10, 8 }
  0x17   : > { %s231_s17 = sand.u32 1, %s8090_s29   ;;  %s7290_s18 = sshll.u32 %s8106_s9, 10 }
  0x18   : > { %s5411_s19 = sshll.u32 %s231_s17, 10  ;;  %s10287_s0 = sld [smem:[#allocation20_spill]] }
  0x19   : > { %s235_s12 = scalar_lea.vmem [#allocation3], %s5411_s19  ;;  %p7765_p8 = pnand %p7775_p7, %p53_p5 }
  0x1a   : > { %s243_s6 = sshll.u32 %s235_s12, 4  ;;  %p5416_p9 = scmp.ge.s32.totalorder %s8110_s10, 1  ;;  %s244_s6 = int_to_ptr.vmem [resolvable:$true] %s243_s6 }
  0x1b   : > { %p273_p10 = scmp.lt.s32.totalorder %s8110_s10, 9  ;;  %s10268_s20 = smov 2048  }
  0x1c   : > { %s8113_s27 = smov 128   ;;  %s5408_s19 = sadd.s32 4294967294, %s8110_s10  }
  0x1d   : > { %p8258_p11 = pnand %p5416_p9, %p273_p10  ;;  %p161_p13 = scmp.ne.s32.totalorder %s8078_s26, %s8074_s25 }
  0x1e   : > { %s240_s11 = scalar_lea.hbm %s10287_s0, %s7290_s18  ;;  %s232_s18 = scalar_lea.sflag [#allocation4], %s231_s17 }
  0x1f   : > { %s241_s13 = sshll.u32 %s240_s11, 4  ;;  %s34_s11 = sadd.s32 1, %s8102_s8  ;;  %s242_s13 = int_to_ptr.hbm [resolvable:$true] %s241_s13 }
  0x20   : > { %7767 = dma.hbm_to_vmem [thread:$0]  (!%p7765_p8), %s242_s13, 16384, %s244_s6, %s232_s18, %s10268_s20, %s10268_s20, %s8113_s27  }
  0x21   : > { %s154_s0 = sadd.s32 1, %s8078_s26  ;;  %p35_p12 = scmp.ge.s32.totalorder %s34_s11, 4 }
  0x22   : > { %p167_p0 = scmp.ne.s32.totalorder %s8074_s25, %s8070_s24  ;;  %s182_s17 = sadd.s32 1, %s8066_s23 }
  0x23   : > { %s10326_s11 = smov (%p35_p12, %s34_s11), 0  ;;  %s10290_s6 = sadd.s32 1, %s8106_s9 }
  0x24   : > { %10289 = sst [smem:[#allocation15_spill]] %s10326_s11  ;;  %s10328_s6 = smov (!%p35_p12, %s10290_s6), %s8106_s9 }
  0x25   : > { %s151_s13 = ssub.s32 %s8102_s8, %s10326_s11  ;;  %p8279_p2 = por %p161_p13, %p52_p1 }
  0x26   : > { %p39_p5 = scmp.ge.s32.totalorder %s10328_s6, 2  ;;  %p152_p8 = scmp.eq.s32.totalorder %s151_s13, 0 }
  0x27   : > { %p8285_p9 = por %p167_p0, %p8230_p3  ;;  %p192_p10 = scmp.ne.s32.totalorder %s8066_s23, %s8062_s22 }
  0x28   : > { %s10330_s6 = smov (%p39_p5, %s10328_s6), 0  ;;  %p198_p13 = scmp.ne.s32.totalorder %s8062_s22, %s8058_s21 }
  0x29   : > { %10293 = sst [smem:[#allocation16_spill]] %s10330_s6  ;;  %s41_s20 = ssub.s32 %s8106_s9, %s10330_s6 }
  0x2a   : > { %s8294_s27 = scalar_select %p152_p8, %s8078_s26, %s154_s0  }
  0x2b   : > { %p8300_p1 = por %p8234_p4, %p192_p10  ;;  %p42_p12 = scmp.eq.s32.totalorder %s41_s20, 0 }
  0x2c   : > { %10294 = sst [smem:[#allocation17_spill]] %s8294_s27  ;;  %s179_s7 = sor.u32 %s151_s13, %s41_s20 }
  0x2d   : > { %s10295_s11 = scalar_select %p8300_p1, 1, 0 }
  0x2e   : > { %p180_p3 = scmp.eq.s32.totalorder %s179_s7, 0  ;;  %s10297_s14 = sadd.s32 1, %s8090_s29 }
  0x2f   : > { %10296 = sst [smem:[#allocation18_spill]] %s10295_s11  ;;  %p199_p0 = scmp.eq.s32.totalorder %s5408_s19, 7 }
  0x30   : > { %s8309_s4 = scalar_select %p42_p12, %s8090_s29, %s10297_s14  }
  0x31   : > { %s8312_s2 = scalar_select %p180_p3, %s8066_s23, %s182_s17  }
  0x32   : > { %10298 = sst [smem:[#allocation19_spill]] %s8309_s4  ;;  %s253_s0 = sand.u32 1, %s8078_s26  }
  0x33   : > { %s7756_s27 = smul.u32 384, %s253_s0  ;;  %p8315_p5 = por %p199_p0, %p198_p13 }
  0x34   : > { %s7291_s6 = sshll.u32 %s8102_s8, 5  ;;  %p7768_p4 = pnand %p7775_p7, %p8279_p2 }
  0x35   : > { %s262_s20 = scalar_lea.hbm %s10265_s5, %s7291_s6  ;;  %s257_s7 = scalar_lea.vmem [#allocation6], %s7756_s27 }
  0x36   : > { %s263_s13 = sshll.u32 %s262_s20, 4  ;;  %s265_s21 = sshll.u32 %s257_s7, 4  ;;  %s264_s13 = int_to_ptr.hbm [resolvable:$true] %s263_s13  ;;  %s266_s21 = int_to_ptr.vmem [resolvable:$true] %s265_s21 }
  0x37   : > { %s254_s19 = scalar_lea.sflag [#allocation7], %s253_s0  ;;  %s8114_s17 = smov 512  }
  0x38   : > { %s8115_s14 = smov 32   ;;  %s10300_s4 = smov 2048  }
  0x39   : > { %7770 = dma.hbm_to_vmem [thread:$0]  (!%p7768_p4), %s264_s13, 6144, %s266_s21, %s254_s19, %s10300_s4, %s8114_s17, %s8115_s14  }
  0x3a   : > { %277 = sbr.rel (%p8258_p11) target bundleno = 1468 (0x5bc), region = 44  ;;  %s279_s9 = sand.u32 (!%p8258_p11), 1, %s8086_s28  }
  0x3b   : > { %s5417_s11 = sshll.u32 (!%p8258_p11), %s279_s9, 10  ;;  %s280_s6 = scalar_lea.sflag (!%p8258_p11), [#allocation4], %s279_s9 }
  0x3c   : > { %s8331_s27 = scalar_lea.vmem (!%p8258_p11), [#allocation3], %s5417_s11 }
  0x3f   : > { %8045 = dma.done.wait (%p8242_p6), %s280_s6, 16384  }
  0x40   : > { %8047 = vsyncadd (%p8242_p6), %s280_s6, 4294950912  ;;  %s289_s18 = sand.u32 1, %s8074_s25  }
  0x41   : > { %s7757_s0 = smul.u32 384, %s289_s18  ;;  %s290_s4 = scalar_lea.sflag [#allocation7], %s289_s18 }
  0x43   : > { %s8338_s21 = scalar_lea.vmem [#allocation6], %s7757_s0 }
  0x44   : > { %8049 = dma.done.wait (%p8285_p9), %s290_s4, 6144  }
  0x45   : > { %8051 = vsyncadd (%p8285_p9), %s290_s4, 4294961152  ;;  %s325_s12 = sand.u32 1, %s8062_s22   ;;  %p5419_p6 = scmp.ne.s32.totalorder %s8094_s30, 0 }
  0x46   : > { %s5418_s20 = sshll.u32 %s325_s12, 10  ;;  %s10302_s17 = sld [smem:[#allocation22_spill]] (!%p5419_p6) }
  0x47   : > { %s8347_s13 = scalar_lea.vmem [#allocation8], %s5418_s20  ;;  %334 = sbr.rel (%p5419_p6) target bundleno = 1054 (0x41e), region = 56 }
  0x48   : > { %s10301_s20 = sld [smem:[#allocation21_spill]] (!%p5419_p6) }
  0x4c   : > { %v7427_v0 = vld [vmem:[%s10261_s1 + $0x38] sm:$0xff]  ;;  %v7426_v2 = vld [vmem:[%s10261_s1 + $0x30] sm:$0xff]  ;;  %v7425_v4 = vld [vmem:[%s10261_s1 + $0x28] sm:$0xff]  ;;  %vm4235_vm0 = vcmask 523264   ;;  %vm4373_vm1 = vcmask 781312  }
  0x4d   : > { %v7443_v1 = vld [vmem:[%s10261_s1 + $0xb8] sm:$0xff]  ;;  %3151 = vmatpush.bf16.msra.mxu1 %v7427_v0  ;;  %7740 = vmatpush.bf16.msra.mxu3 %v7427_v0  ;;  %v7442_v3 = vld [vmem:[%s10261_s1 + $0xb0] sm:$0xff]  ;;  %v7441_v5 = vld [vmem:[%s10261_s1 + $0xa8] sm:$0xff] }
  0x4e   : > { %3209 = vmatpush.bf16.msra.mxu2 %v7443_v1  ;;  %v7459_v6 = vld [vmem:[%s10261_s1 + $0x138] sm:$0xff]  ;;  %v7424_v7 = vld [vmem:[%s10261_s1 + $0x20] sm:$0xff]  ;;  %v7458_v9 = vld [vmem:[%s10261_s1 + $0x130] sm:$0xff] }
  0x4f   : > { %v7440_v8 = vld [vmem:[%s10261_s1 + $0xa0] sm:$0xff]  ;;  %3267 = vmatpush.bf16.msra.mxu0 %v7459_v6  ;;  %v7423_v10 = vld [vmem:[%s10261_s1 + $0x18] sm:$0xff]  ;;  %v8389_v12 = vld [vmem:[%s10261_s1 + $0x128] sm:$0xff] }
  0x50   : > { %v7439_v11 = vld [vmem:[%s10261_s1 + $0x98] sm:$0xff]  ;;  %v7422_v13 = vld [vmem:[%s10261_s1 + $0x10] sm:$0xff]  ;;  %v8401_v15 = vld [vmem:[%s10261_s1 + $0x120] sm:$0xff] }
  0x51   : > { %3152 = vmatpush.bf16.msra.mxu1 %v7426_v2  ;;  %7741 = vmatpush.bf16.msra.mxu3 %v7426_v2  ;;  %v7438_v14 = vld [vmem:[%s10261_s1 + $0x90] sm:$0xff]  ;;  %v7421_v16 = vld [vmem:[%s10261_s1 + $0x8] sm:$0xff]  ;;  %v8413_v18 = vld [vmem:[%s10261_s1 + $0x118] sm:$0xff] }
  0x52   : > { %3210 = vmatpush.bf16.msra.mxu2 %v7442_v3  ;;  %v7437_v17 = vld [vmem:[%s10261_s1 + $0x88] sm:$0xff]  ;;  %v7420_v19 = vld [vmem:[%s10261_s1] sm:$0xff]  ;;  %v7435_v27 = vld [vmem:[%s10261_s1 + $0x78] sm:$0xff] }
  0x53   : > { %3268 = vmatpush.bf16.msra.mxu0 %v7458_v9  ;;  %v7436_v20 = vld [vmem:[%s10261_s1 + $0x80] sm:$0xff]  ;;  %v5430_v25 = vld [vmem:[%s8331_s27 + $0x8] sm:$0xf]  ;;  %v7451_v28 = vld [vmem:[%s10261_s1 + $0xf8] sm:$0xff] }
  0x54   : > { %v5422_v21 = vld [vmem:[%s8331_s27] sm:$0xf]  ;;  %v7309_v26 = vld [vmem:[%s8331_s27 + $0x84] sm:$0xf0]  ;;  %v8437_v29 = vld [vmem:[%s10261_s1 + $0x110] sm:$0xff] }
  0x55   : > { %3153 = vmatpush.bf16.msra.mxu1 %v7425_v4  ;;  %7742 = vmatpush.bf16.msra.mxu3 %v7425_v4  ;;  %v7308_v22 = vld [vmem:[%s8331_s27 + $0x7c] sm:$0xf0]  ;;  %v5431_v32 = vor.u32 %v7309_v26, %v5430_v25  ;;  %v7434_v33 = vld [vmem:[%s10261_s1 + $0x70] sm:$0xff]  ;;  %v7453_v35 = vld [vmem:[%s10261_s1 + $0x108] sm:$0xff] }
  0x56   : > { %3211 = vmatpush.bf16.msra.mxu2 %v7441_v5  ;;  %v5678_v23 = vld [vmem:[%s8331_s27 + $0x200] sm:$0xf]  ;;  %v5423_v30 = vor.u32 %v7308_v22, %v5422_v21  ;;  %v7450_v34 = vld [vmem:[%s10261_s1 + $0xf0] sm:$0xff]  ;;  %v7433_v36 = vld [vmem:[%s10261_s1 + $0x68] sm:$0xff] }
  0x57   : > { %3269 = vmatpush.bf16.msra.mxu0 %v8389_v12  ;;  %v7372_v24 = vld [vmem:[%s8331_s27 + $0x27c] sm:$0xf0]  ;;  %v7449_v37 = vld [vmem:[%s10261_s1 + $0xe8] sm:$0xff]  ;;  %v5438_v39 = vld [vmem:[%s8331_s27 + $0x10] sm:$0xf] }
  0x58   : > { %v5679_v31 = vor.u32 %v7372_v24, %v5678_v23  ;;  %v7452_v38 = vld [vmem:[%s10261_s1 + $0x100] sm:$0xff]  ;;  %v7310_v40 = vld [vmem:[%s8331_s27 + $0x8c] sm:$0xf0]  ;;  %v5558_v48 = vld [vmem:[%s8331_s27 + $0x108] sm:$0xf] }
  0x59   : > { %3154 = vmatpush.bf16.msra.mxu1 %v7424_v7  ;;  %7743 = vmatpush.bf16.msra.mxu3 %v7424_v7  ;;  %v7432_v41 = vld [vmem:[%s10261_s1 + $0x60] sm:$0xff]  ;;  %v5439_v42 = vor.u32 %v7310_v40, %v5438_v39  ;;  %v7341_v49 = vld [vmem:[%s8331_s27 + $0x184] sm:$0xf0]  ;;  %v7431_v50 = vld [vmem:[%s10261_s1 + $0x58] sm:$0xff] }
  0x5a   : > { %3212 = vmatpush.bf16.msra.mxu2 %v7440_v8  ;;  %v7448_v43 = vld [vmem:[%s10261_s1 + $0xe0] sm:$0xff]  ;;  %v7447_v51 = vld [vmem:[%s10261_s1 + $0xd8] sm:$0xff]  ;;  %v5559_v54 = vor.u32 %v7341_v49, %v5558_v48  ;;  %v7430_v55 = vld [vmem:[%s10261_s1 + $0x50] sm:$0xff] }
  0x5b   : > { %3270 = vmatpush.bf16.msra.mxu0 %v8401_v15  ;;  %v5550_v44 = vld [vmem:[%s8331_s27 + $0x100] sm:$0xf]  ;;  %v7446_v56 = vld [vmem:[%s10261_s1 + $0xd0] sm:$0xff]  ;;  %v7429_v57 = vld [vmem:[%s10261_s1 + $0x48] sm:$0xff] }
  0x5c   : > { %v7340_v45 = vld [vmem:[%s8331_s27 + $0x17c] sm:$0xf0]  ;;  %v7445_v58 = vld [vmem:[%s10261_s1 + $0xc8] sm:$0xff]  ;;  %v5566_v59 = vld [vmem:[%s8331_s27 + $0x110] sm:$0xf] }
  0x5d   : > { %3155 = vmatpush.bf16.msra.mxu1 %v7423_v10  ;;  %7744 = vmatpush.bf16.msra.mxu3 %v7423_v10  ;;  %v5806_v46 = vld [vmem:[%s8331_s27 + $0x300] sm:$0xf]  ;;  %v5551_v52 = vor.u32 %v7340_v45, %v5550_v44  ;;  %v7342_v60 = vld [vmem:[%s8331_s27 + $0x18c] sm:$0xf0]  ;;  %v7292_v0 = vld [vmem:[%s8331_s27 + $0x4] sm:$0xf] }
  0x5e   : > { %3213 = vmatpush.bf16.msra.mxu2 %v7439_v11  ;;  %v7404_v47 = vld [vmem:[%s8331_s27 + $0x37c] sm:$0xf0]  ;;  %v5567_v62 = vor.u32 %v7342_v60, %v5566_v59  ;;  %v5424_v1 = vld [vmem:[%s8331_s27 + $0x80] sm:$0xf0]  ;;  %v7293_v2 = vld [vmem:[%s8331_s27 + $0xc] sm:$0xf] }
  0x5f   : > { %3271 = vmatpush.bf16.msra.mxu0 %v8413_v18  ;;  %v5807_v53 = vor.u32 %v7404_v47, %v5806_v46  ;;  %v7428_v61 = vld [vmem:[%s10261_s1 + $0x40] sm:$0xff]  ;;  %v5432_v3 = vld [vmem:[%s8331_s27 + $0x88] sm:$0xf0]  ;;  %v5686_v4 = vld [vmem:[%s8331_s27 + $0x208] sm:$0xf] }
  0x60   : > { %v7444_v63 = vld [vmem:[%s10261_s1 + $0xc0] sm:$0xff]  ;;  %v7373_v5 = vld [vmem:[%s8331_s27 + $0x284] sm:$0xf0]  ;;  %v5435_v7 = vor.u32 %v7293_v2, %v5432_v3  ;;  %v7475_v10 = vld [vmem:[%s10261_s1 + $0x1b8] sm:$0xff] }
  0x61   : > { %3156 = vmatpush.bf16.msra.mxu1 %v7422_v13  ;;  %7745 = vmatpush.bf16.msra.mxu3 %v7422_v13  ;;  %v5687_v8 = vor.u32 %v7373_v5, %v5686_v4  ;;  %v7483_v11 = vld [vmem:[%s10261_s1 + $0x1f8] sm:$0xff]  ;;  %v7474_v13 = vld [vmem:[%s10261_s1 + $0x1b0] sm:$0xff]  ;;  %v5552_v21 = vld [vmem:[%s8331_s27 + $0x180] sm:$0xf0] }
  0x62   : > { %3214 = vmatpush.bf16.msra.mxu2 %v7438_v14  ;;  %v7482_v14 = vld [vmem:[%s10261_s1 + $0x1f0] sm:$0xff]  ;;  %v5814_v22 = vld [vmem:[%s8331_s27 + $0x308] sm:$0xf]  ;;  %v7325_v23 = vld [vmem:[%s8331_s27 + $0x10c] sm:$0xf] }
  0x63   : > { %3272 = vmatpush.bf16.msra.mxu0 %v8437_v29  ;;  %v5560_v24 = vld [vmem:[%s8331_s27 + $0x188] sm:$0xf0]  ;;  %v7405_v25 = vld [vmem:[%s8331_s27 + $0x384] sm:$0xf0]  ;;  %v7464_v26 = vld [vmem:[%s10261_s1 + $0x160] sm:$0xff] }
  0x64   : > { %v7488_v39 = vld [vmem:[%s10261_s1 + $0x220] sm:$0xff]  ;;  %v7461_v40 = vld [vmem:[%s10261_s1 + $0x148] sm:$0xff]  ;;  %v5694_v48 = vld [vmem:[%s8331_s27 + $0x210] sm:$0xf] }
  0x65   : > { %3157 = vmatpush.bf16.msra.mxu1 %v7421_v16  ;;  %7746 = vmatpush.bf16.msra.mxu3 %v7421_v16  ;;  %v7490_v16 = vld [vmem:[%s10261_s1 + $0x230] sm:$0xff]  ;;  %v7356_v44 = vld [vmem:[%s8331_s27 + $0x204] sm:$0xf]  ;;  %v7357_v46 = vld [vmem:[%s8331_s27 + $0x20c] sm:$0xf] }
  0x66   : > { %3215 = vmatpush.bf16.msra.mxu2 %v7437_v17  ;;  %v7465_v17 = vld [vmem:[%s10261_s1 + $0x168] sm:$0xff]  ;;  %v5680_v45 = vld [vmem:[%s8331_s27 + $0x280] sm:$0xf0]  ;;  %v7374_v49 = vld [vmem:[%s8331_s27 + $0x28c] sm:$0xf0] }
  0x67   : > { %3273 = vmatpush.bf16.msra.mxu0 %v7453_v35  ;;  %v5688_v47 = vld [vmem:[%s8331_s27 + $0x288] sm:$0xf0]  ;;  %v5454_v59 = vld [vmem:[%s8331_s27 + $0x20] sm:$0xf]  ;;  %v5822_v2 = vld [vmem:[%s8331_s27 + $0x310] sm:$0xf] }
  0x68   : > { %v7312_v60 = vld [vmem:[%s8331_s27 + $0x9c] sm:$0xf0]  ;;  %v7406_v3 = vld [vmem:[%s8331_s27 + $0x38c] sm:$0xf0] }
  0x69   : > { %3158 = vmatpush.bf16.msra.mxu1 %v7420_v19  ;;  %7747 = vmatpush.bf16.msra.mxu3 %v7420_v19  ;;  %v7481_v19 = vld [vmem:[%s10261_s1 + $0x1e8] sm:$0xff] }
  0x6a   : > { %3216 = vmatpush.bf16.msra.mxu2 %v7436_v20  ;;  %v7324_v20 = vld [vmem:[%s8331_s27 + $0x104] sm:$0xf] }
  0x6b   : > { %3274 = vmatpush.bf16.msra.mxu0 %v7452_v38 }
  0x6c   : > { %3159 = vmatmul.bf16.vlgmr.msra.gmra.mxu1 %v5423_v30  ;;  %3169 = vmatmul.bf16.vlgmr.msra.gmra.mxu3 %v5679_v31  ;;  %v5563_v30 = vor.u32 %v7325_v23, %v5560_v24  ;;  %v5815_v31 = vor.u32 %v7405_v25, %v5814_v22  ;;  %v7498_v22 = vld [vmem:[%s10261_s1 + $0x270] sm:$0xff]  ;;  %v7497_v25 = vld [vmem:[%s10261_s1 + $0x268] sm:$0xff] }
  0x6d   : > { %3180 = vmatpush.bf16.msrb.mxu1 %v7435_v27  ;;  %3238 = vmatpush.bf16.msrb.mxu3 %v7451_v28  ;;  %v7472_v27 = vld [vmem:[%s10261_s1 + $0x1a0] sm:$0xff]  ;;  %v7506_v23 = vld [vmem:[%s10261_s1 + $0x2b0] sm:$0xff] }
  0x6e   : > { %3217 = vmatmul.bf16.vlgmr.msra.gmra.mxu2 %v5431_v32  ;;  %3275 = vmatmul.bf16.vlgmr.msra.gmra.mxu0 %v5439_v42  ;;  %v7480_v28 = vld [vmem:[%s10261_s1 + $0x1e0] sm:$0xff]  ;;  %v7463_v32 = vld [vmem:[%s10261_s1 + $0x158] sm:$0xff]  ;;  %v7477_v42 = vld [vmem:[%s10261_s1 + $0x1c8] sm:$0xff] }
  0x6f   : > { %7748 = vmatpush.bf16.msrb.mxu2 %v7459_v6  ;;  %v5427_v6 = vor.u32 %v7292_v0, %v5424_v1  ;;  %v7389_v0 = vld [vmem:[%s8331_s27 + $0x30c] sm:$0xf]  ;;  %v7514_v24 = vld [vmem:[%s10261_s1 + $0x2f0] sm:$0xff] }
  0x70   : > { %v5816_v1 = vld [vmem:[%s8331_s27 + $0x388] sm:$0xf0] }
  0x71   : > { %3181 = vmatpush.bf16.msrb.mxu1 %v7434_v33  ;;  %3239 = vmatpush.bf16.msrb.mxu3 %v7450_v34  ;;  %v7471_v33 = vld [vmem:[%s10261_s1 + $0x198] sm:$0xff]  ;;  %v5819_v5 = vor.u32 %v7389_v0, %v5816_v1 }
  0x72   : > { %v7479_v34 = vld [vmem:[%s10261_s1 + $0x1d8] sm:$0xff] }
  0x73   : > { %7749 = vmatpush.bf16.msrb.mxu2 %v7458_v9  ;;  %v7467_v9 = vld [vmem:[%s10261_s1 + $0x178] sm:$0xff] }
  0x74   : > { %v7375_v0 = vld [vmem:[%s8331_s27 + $0x294] sm:$0xf0] }
  0x75   : > { %3182 = vmatpush.bf16.msrb.mxu1 %v7433_v36  ;;  %3240 = vmatpush.bf16.msrb.mxu3 %v7449_v37  ;;  %v7462_v36 = vld [vmem:[%s10261_s1 + $0x150] sm:$0xff]  ;;  %v7519_v1 = vld [vmem:[%s10261_s1 + $0x318] sm:$0xff] }
  0x76   : > { %v7470_v37 = vld [vmem:[%s10261_s1 + $0x190] sm:$0xff] }
  0x77   : > { %7750 = vmatpush.bf16.msrb.mxu2 %v8389_v12  ;;  %v7466_v12 = vld [vmem:[%s10261_s1 + $0x170] sm:$0xff] }
  0x79   : > { %3183 = vmatpush.bf16.msrb.mxu1 %v7432_v41  ;;  %3241 = vmatpush.bf16.msrb.mxu3 %v7448_v43  ;;  %v7469_v41 = vld [vmem:[%s10261_s1 + $0x188] sm:$0xff]  ;;  %v7487_v43 = vld [vmem:[%s10261_s1 + $0x218] sm:$0xff] }
  0x7b   : > { %7751 = vmatpush.bf16.msrb.mxu2 %v8401_v15  ;;  %v7491_v15 = vld [vmem:[%s10261_s1 + $0x238] sm:$0xff] }
  0x7c   : > { %3164 = vmatmul.bf16.gmra.mxu1 %v5551_v52  ;;  %3174 = vmatmul.bf16.gmra.mxu3 %v5807_v53  ;;  %v7476_v52 = vld [vmem:[%s10261_s1 + $0x1c0] sm:$0xff]  ;;  %v7486_v53 = vld [vmem:[%s10261_s1 + $0x210] sm:$0xff] }
  0x7d   : > { %3184 = vmatpush.bf16.msrb.mxu1 %v7431_v50  ;;  %3242 = vmatpush.bf16.msrb.mxu3 %v7447_v51  ;;  %v7460_v50 = vld [vmem:[%s10261_s1 + $0x140] sm:$0xff] }
  0x7e   : > { %3222 = vmatmul.bf16.gmra.mxu2 %v5559_v54  ;;  %3280 = vmatmul.bf16.gmra.mxu0 %v5567_v62  ;;  %v7468_v51 = vld [vmem:[%s10261_s1 + $0x180] sm:$0xff]  ;;  %v5683_v54 = vor.u32 %v7356_v44, %v5680_v45  ;;  %v7522_v44 = vld [vmem:[%s10261_s1 + $0x330] sm:$0xff]  ;;  %v7495_v45 = vld [vmem:[%s10261_s1 + $0x258] sm:$0xff] }
  0x7f   : > { %7752 = vmatpush.bf16.msrb.mxu2 %v8413_v18  ;;  %3383 = vmatpush.bf16.msrb.mxu0 %v7491_v15  ;;  %v7473_v18 = vld [vmem:[%s10261_s1 + $0x1a8] sm:$0xff]  ;;  %v7388_v62 = vld [vmem:[%s8331_s27 + $0x304] sm:$0xf]  ;;  %v7311_v15 = vld [vmem:[%s8331_s27 + $0x94] sm:$0xf0] }
  0x81   : > { %3185 = vmatpush.bf16.msrb.mxu1 %v7430_v55  ;;  %3243 = vmatpush.bf16.msrb.mxu3 %v7446_v56  ;;  %v5691_v55 = vor.u32 %v7357_v46, %v5688_v47  ;;  %v5695_v56 = vor.u32 %v7374_v49, %v5694_v48  ;;  %v7503_v46 = vld [vmem:[%s10261_s1 + $0x298] sm:$0xff]  ;;  %v7521_v48 = vld [vmem:[%s10261_s1 + $0x328] sm:$0xff]  ;;  %v7494_v49 = vld [vmem:[%s10261_s1 + $0x250] sm:$0xff] }
  0x82   : > { %v7511_v47 = vld [vmem:[%s10261_s1 + $0x2d8] sm:$0xff] }
  0x83   : > { %7753 = vmatpush.bf16.msrb.mxu2 %v8437_v29  ;;  %3384 = vmatpush.bf16.msrb.mxu0 %v7490_v16  ;;  %v5555_v29 = vor.u32 %v7324_v20, %v5552_v21  ;;  %v7507_v20 = vld [vmem:[%s10261_s1 + $0x2b8] sm:$0xff] }
  0x84   : > { %v7515_v21 = vld [vmem:[%s10261_s1 + $0x2f8] sm:$0xff] }
  0x85   : > { %3186 = vmatpush.bf16.msrb.mxu1 %v7429_v57  ;;  %3244 = vmatpush.bf16.msrb.mxu3 %v7445_v58  ;;  %v7485_v57 = vld [vmem:[%s10261_s1 + $0x208] sm:$0xff]  ;;  %v7484_v58 = vld [vmem:[%s10261_s1 + $0x200] sm:$0xff] }
  0x87   : > { %7754 = vmatpush.bf16.msrb.mxu2 %v7453_v35  ;;  %v7489_v35 = vld [vmem:[%s10261_s1 + $0x228] sm:$0xff] }
  0x88   : > { %3385 = vmatpush.bf16.msrb.mxu0 %v7489_v35  ;;  %v5574_v35 = vld [vmem:[%s8331_s27 + $0x118] sm:$0xf] }
  0x89   : > { %3187 = vmatpush.bf16.msrb.mxu1 %v7428_v61  ;;  %3245 = vmatpush.bf16.msrb.mxu3 %v7444_v63  ;;  %v5455_v61 = vor.u32 %v7312_v60, %v5454_v59  ;;  %v5808_v63 = vld [vmem:[%s8331_s27 + $0x380] sm:$0xf0]  ;;  %v7358_v59 = vld [vmem:[%s8331_s27 + $0x214] sm:$0xf] }
  0x8a   : > { %v5811_v4 = vor.u32 %v7388_v62, %v5808_v63  ;;  %v5696_v60 = vld [vmem:[%s8331_s27 + $0x290] sm:$0xf0]  ;;  %v5704_v62 = vld [vmem:[%s8331_s27 + $0x298] sm:$0xf0]  ;;  %v5702_v63 = vld [vmem:[%s8331_s27 + $0x218] sm:$0xf] }
  0x8b   : > { %7755 = vmatpush.bf16.msrb.mxu2 %v7452_v38  ;;  %v7478_v38 = vld [vmem:[%s10261_s1 + $0x1d0] sm:$0xff] }
  0x8c   : > { %3188 = vmatmul.bf16.vlgmr.msrb.gmra.mxu1 %v5427_v6  ;;  %3246 = vmatmul.bf16.vlgmr.msrb.gmra.mxu3 %v5435_v7  ;;  %v5823_v6 = vor.u32 %v7406_v3, %v5822_v2  ;;  %v5582_v7 = vld [vmem:[%s8331_s27 + $0x120] sm:$0xf]  ;;  %v5699_v2 = vor.u32 %v7358_v59, %v5696_v60  ;;  %v7546_v59 = vld [vmem:[%s10261_s1 + $0x3f0] sm:$0xff] }
  0x8d   : > { %3296 = vmatpush.bf16.msra.mxu1 %v7467_v9  ;;  %3354 = vmatpush.bf16.msra.mxu3 %v7483_v11  ;;  %v5440_v11 = vld [vmem:[%s8331_s27 + $0x90] sm:$0xf0] }
  0x8e   : > { %3227 = vmatmul.bf16.gmra.mxu2 %v5687_v8  ;;  %3386 = vmatpush.bf16.msrb.mxu0 %v7488_v39  ;;  %v7344_v8 = vld [vmem:[%s8331_s27 + $0x19c] sm:$0xf0] }
  0x8f   : > { %3325 = vmatpush.bf16.msra.mxu2 %v7475_v10  ;;  %v5583_v9 = vor.u32 %v7344_v8, %v5582_v7  ;;  %v7294_v10 = vld [vmem:[%s8331_s27 + $0x14] sm:$0xf]  ;;  %v5703_v8 = vor.u32 %v7375_v0, %v5702_v63  ;;  %v7529_v63 = vld [vmem:[%s10261_s1 + $0x368] sm:$0xff] }
  0x90   : > { %v5443_v16 = vor.u32 %v7294_v10, %v5440_v11  ;;  %v7517_v10 = vld [vmem:[%s10261_s1 + $0x308] sm:$0xff] }
  0x91   : > { %3297 = vmatpush.bf16.msra.mxu1 %v7466_v12  ;;  %3355 = vmatpush.bf16.msra.mxu3 %v7482_v14  ;;  %v7295_v12 = vld [vmem:[%s8331_s27 + $0x1c] sm:$0xf]  ;;  %v5446_v14 = vld [vmem:[%s8331_s27 + $0x18] sm:$0xf]  ;;  %v7537_v0 = vld [vmem:[%s10261_s1 + $0x3a8] sm:$0xff] }
  0x92   : > { %3387 = vmatpush.bf16.msrb.mxu0 %v7487_v43 }
  0x93   : > { %3326 = vmatpush.bf16.msra.mxu2 %v7474_v13  ;;  %v5448_v13 = vld [vmem:[%s8331_s27 + $0x98] sm:$0xf0] }
  0x95   : > { %3298 = vmatpush.bf16.msra.mxu1 %v7465_v17  ;;  %3356 = vmatpush.bf16.msra.mxu3 %v7481_v19  ;;  %v5451_v17 = vor.u32 %v7295_v12, %v5448_v13  ;;  %v7499_v19 = vld [vmem:[%s10261_s1 + $0x278] sm:$0xff] }
  0x96   : > { %3388 = vmatpush.bf16.msrb.mxu0 %v7486_v53  ;;  %v7493_v53 = vld [vmem:[%s10261_s1 + $0x248] sm:$0xff] }
  0x97   : > { %3327 = vmatpush.bf16.msra.mxu2 %v7473_v18  ;;  %v5447_v18 = vor.u32 %v7311_v15, %v5446_v14  ;;  %v7516_v14 = vld [vmem:[%s10261_s1 + $0x300] sm:$0xff]  ;;  %v5470_v15 = vld [vmem:[%s8331_s27 + $0x30] sm:$0xf] }
  0x99   : > { %3299 = vmatpush.bf16.msra.mxu1 %v7464_v26  ;;  %3357 = vmatpush.bf16.msra.mxu3 %v7480_v28  ;;  %v7505_v26 = vld [vmem:[%s10261_s1 + $0x2a8] sm:$0xff]  ;;  %v7376_v28 = vld [vmem:[%s8331_s27 + $0x29c] sm:$0xf0] }
  0x9a   : > { %3389 = vmatpush.bf16.msrb.mxu0 %v7485_v57  ;;  %v7509_v57 = vld [vmem:[%s10261_s1 + $0x2c8] sm:$0xff] }
  0x9b   : > { %3328 = vmatpush.bf16.msra.mxu2 %v7472_v27  ;;  %v5710_v27 = vld [vmem:[%s8331_s27 + $0x220] sm:$0xf] }
  0x9c   : > { %3193 = vmatmul.bf16.gmra.mxu1 %v5555_v29  ;;  %3251 = vmatmul.bf16.gmra.mxu3 %v5563_v30  ;;  %v7513_v29 = vld [vmem:[%s10261_s1 + $0x2e8] sm:$0xff]  ;;  %v5711_v30 = vor.u32 %v7376_v28, %v5710_v27 }
  0x9d   : > { %3300 = vmatpush.bf16.msra.mxu1 %v7463_v32  ;;  %3358 = vmatpush.bf16.msra.mxu3 %v7479_v34  ;;  %v5568_v32 = vld [vmem:[%s8331_s27 + $0x190] sm:$0xf0]  ;;  %v5576_v34 = vld [vmem:[%s8331_s27 + $0x198] sm:$0xf0] }
  0x9e   : > { %3232 = vmatmul.bf16.gmra.mxu2 %v5815_v31  ;;  %3390 = vmatpush.bf16.msrb.mxu0 %v7484_v58  ;;  %v7326_v31 = vld [vmem:[%s8331_s27 + $0x114] sm:$0xf] }
  0x9f   : > { %3329 = vmatpush.bf16.msra.mxu2 %v7471_v33  ;;  %v7327_v33 = vld [vmem:[%s8331_s27 + $0x11c] sm:$0xf] }
  0xa0   : > { %v5579_v39 = vor.u32 %v7327_v33, %v5576_v34  ;;  %v5598_v33 = vld [vmem:[%s8331_s27 + $0x130] sm:$0xf] }
  0xa1   : > { %3301 = vmatpush.bf16.msra.mxu1 %v7462_v36  ;;  %3359 = vmatpush.bf16.msra.mxu3 %v7478_v38  ;;  %v7343_v36 = vld [vmem:[%s8331_s27 + $0x194] sm:$0xf0]  ;;  %v5571_v38 = vor.u32 %v7326_v31, %v5568_v32  ;;  %v7346_v34 = vld [vmem:[%s8331_s27 + $0x1ac] sm:$0xf0] }
  0xa2   : > { %3391 = vmatmul.bf16.vlgmr.msrb.gmra.mxu0 %v5455_v61  ;;  %v5575_v43 = vor.u32 %v7343_v36, %v5574_v35  ;;  %v7359_v61 = vld [vmem:[%s8331_s27 + $0x21c] sm:$0xf]  ;;  %v7296_v35 = vld [vmem:[%s8331_s27 + $0x24] sm:$0xf]  ;;  %v5599_v36 = vor.u32 %v7346_v34, %v5598_v33 }
  0xa3   : > { %3330 = vmatpush.bf16.msra.mxu2 %v7470_v37  ;;  %v7523_v37 = vld [vmem:[%s10261_s1 + $0x338] sm:$0xff]  ;;  %v5707_v3 = vor.u32 %v7359_v61, %v5704_v62 }
  0xa4   : > { %3499 = vmatpush.bf16.msra.mxu0 %v7523_v37  ;;  %v5456_v37 = vld [vmem:[%s8331_s27 + $0xa0] sm:$0xf0]  ;;  %v7527_v33 = vld [vmem:[%s10261_s1 + $0x358] sm:$0xff] }
  0xa5   : > { %3302 = vmatpush.bf16.msra.mxu1 %v7461_v40  ;;  %3360 = vmatpush.bf16.msra.mxu3 %v7477_v42  ;;  %v7496_v40 = vld [vmem:[%s10261_s1 + $0x260] sm:$0xff]  ;;  %v7535_v34 = vld [vmem:[%s10261_s1 + $0x398] sm:$0xff] }
  0xa6   : > { %v7512_v42 = vld [vmem:[%s10261_s1 + $0x2e0] sm:$0xff] }
  0xa7   : > { %3331 = vmatpush.bf16.msra.mxu2 %v7469_v41  ;;  %v7504_v41 = vld [vmem:[%s10261_s1 + $0x2a0] sm:$0xff] }
  0xa8   : > { %3500 = vmatpush.bf16.msra.mxu0 %v7522_v44  ;;  %v5459_v44 = vor.u32 %v7296_v35, %v5456_v37  ;;  %v7543_v35 = vld [vmem:[%s10261_s1 + $0x3d8] sm:$0xff] }
  0xa9   : > { %3303 = vmatpush.bf16.msra.mxu1 %v7460_v50  ;;  %3361 = vmatpush.bf16.msra.mxu3 %v7476_v52  ;;  %v7502_v50 = vld [vmem:[%s10261_s1 + $0x290] sm:$0xff]  ;;  %v7520_v52 = vld [vmem:[%s10261_s1 + $0x320] sm:$0xff] }
  0xab   : > { %3332 = vmatpush.bf16.msra.mxu2 %v7468_v51  ;;  %v7510_v51 = vld [vmem:[%s10261_s1 + $0x2d0] sm:$0xff] }
  0xac   : > { %3198 = vmatmul.bf16.gmra.mxu1 %v5683_v54  ;;  %3256 = vmatmul.bf16.gmra.mxu3 %v5691_v55  ;;  %v7501_v54 = vld [vmem:[%s10261_s1 + $0x288] sm:$0xff]  ;;  %v5838_v55 = vld [vmem:[%s8331_s27 + $0x320] sm:$0xf] }
  0xad   : > { %3412 = vmatpush.bf16.msrb.mxu1 %v7499_v19  ;;  %3470 = vmatpush.bf16.msrb.mxu3 %v7515_v21  ;;  %v5824_v19 = vld [vmem:[%s8331_s27 + $0x390] sm:$0xf0]  ;;  %v5832_v21 = vld [vmem:[%s8331_s27 + $0x398] sm:$0xf0] }
  0xae   : > { %3285 = vmatmul.bf16.vlgmr.msrb.gmra.mxu2 %v5695_v56  ;;  %3501 = vmatpush.bf16.msra.mxu0 %v7521_v48  ;;  %v7408_v56 = vld [vmem:[%s8331_s27 + $0x39c] sm:$0xf0] }
  0xaf   : > { %3441 = vmatpush.bf16.msrb.mxu2 %v7507_v20  ;;  %v5839_v58 = vor.u32 %v7408_v56, %v5838_v55  ;;  %v7391_v20 = vld [vmem:[%s8331_s27 + $0x31c] sm:$0xf] }
  0xb0   : > { %v5835_v27 = vor.u32 %v7391_v20, %v5832_v21  ;;  %v7528_v20 = vld [vmem:[%s10261_s1 + $0x360] sm:$0xff] }
  0xb1   : > { %3413 = vmatpush.bf16.msrb.mxu1 %v7498_v22  ;;  %3471 = vmatpush.bf16.msrb.mxu3 %v7514_v24  ;;  %v5830_v22 = vld [vmem:[%s8331_s27 + $0x318] sm:$0xf]  ;;  %v7536_v21 = vld [vmem:[%s10261_s1 + $0x3a0] sm:$0xff] }
  0xb2   : > { %3396 = vmatmul.bf16.gmra.mxu0 %v5583_v9  ;;  %v7518_v9 = vld [vmem:[%s10261_s1 + $0x310] sm:$0xff] }
  0xb3   : > { %3442 = vmatpush.bf16.msrb.mxu2 %v7506_v23  ;;  %3502 = vmatpush.bf16.msra.mxu0 %v7520_v52  ;;  %v7407_v23 = vld [vmem:[%s8331_s27 + $0x394] sm:$0xf0] }
  0xb4   : > { %v7539_v52 = vld [vmem:[%s10261_s1 + $0x3b8] sm:$0xff] }
  0xb5   : > { %3414 = vmatpush.bf16.msrb.mxu1 %v7497_v25  ;;  %3472 = vmatpush.bf16.msrb.mxu3 %v7513_v29  ;;  %v5831_v29 = vor.u32 %v7407_v23, %v5830_v22  ;;  %v7544_v22 = vld [vmem:[%s10261_s1 + $0x3e0] sm:$0xff] }
  0xb7   : > { %3443 = vmatpush.bf16.msrb.mxu2 %v7505_v26  ;;  %3503 = vmatpush.bf16.msra.mxu0 %v7519_v1 }
  0xb9   : > { %3415 = vmatpush.bf16.msrb.mxu1 %v7496_v40  ;;  %3473 = vmatpush.bf16.msrb.mxu3 %v7512_v42  ;;  %v5462_v40 = vld [vmem:[%s8331_s27 + $0x28] sm:$0xf] }
  0xbb   : > { %3444 = vmatpush.bf16.msrb.mxu2 %v7504_v41  ;;  %3504 = vmatpush.bf16.msra.mxu0 %v7518_v9  ;;  %v7313_v41 = vld [vmem:[%s8331_s27 + $0xa4] sm:$0xf0]  ;;  %v7329_v9 = vld [vmem:[%s8331_s27 + $0x12c] sm:$0xf] }
  0xbc   : > { %3203 = vmatmul.bf16.gmra.mxu1 %v5811_v4  ;;  %3261 = vmatmul.bf16.gmra.mxu3 %v5819_v5  ;;  %v7492_v4 = vld [vmem:[%s10261_s1 + $0x240] sm:$0xff] }
  0xbd   : > { %3416 = vmatpush.bf16.msrb.mxu1 %v7495_v45  ;;  %3474 = vmatpush.bf16.msrb.mxu3 %v7511_v47  ;;  %v7500_v5 = vld [vmem:[%s10261_s1 + $0x280] sm:$0xff]  ;;  %v5463_v47 = vor.u32 %v7313_v41, %v5462_v40  ;;  %v7534_v40 = vld [vmem:[%s10261_s1 + $0x390] sm:$0xff] }
  0xbe   : > { %3290 = vmatmul.bf16.gmra.mxu2 %v5823_v6  ;;  %v7508_v6 = vld [vmem:[%s10261_s1 + $0x2c0] sm:$0xff]  ;;  %v7542_v41 = vld [vmem:[%s10261_s1 + $0x3d0] sm:$0xff] }
  0xbf   : > { %3445 = vmatpush.bf16.msrb.mxu2 %v7503_v46  ;;  %3505 = vmatpush.bf16.msra.mxu0 %v7517_v10  ;;  %v5592_v10 = vld [vmem:[%s8331_s27 + $0x1a8] sm:$0xf0] }
  0xc1   : > { %3417 = vmatpush.bf16.msrb.mxu1 %v7494_v49  ;;  %3475 = vmatpush.bf16.msrb.mxu3 %v7510_v51  ;;  %v7531_v51 = vld [vmem:[%s10261_s1 + $0x378] sm:$0xff] }
  0xc2   : > { %3401 = vmatmul.bf16.gmra.mxu0 %v5711_v30 }
  0xc3   : > { %3446 = vmatpush.bf16.msrb.mxu2 %v7502_v50  ;;  %3506 = vmatpush.bf16.msra.mxu0 %v7516_v14  ;;  %v7555_v14 = vld [vmem:[%s10261_s1 + $0x438] sm:$0xff] }
  0xc5   : > { %3418 = vmatpush.bf16.msrb.mxu1 %v7493_v53  ;;  %3476 = vmatpush.bf16.msrb.mxu3 %v7509_v57  ;;  %v7547_v53 = vld [vmem:[%s10261_s1 + $0x3f8] sm:$0xff]  ;;  %v7530_v57 = vld [vmem:[%s10261_s1 + $0x370] sm:$0xff] }
  0xc7   : > { %3447 = vmatpush.bf16.msrb.mxu2 %v7501_v54  ;;  %3615 = vmatpush.bf16.msrb.mxu0 %v7555_v14 }
  0xc9   : > { %3419 = vmatpush.bf16.msrb.mxu1 %v7492_v4  ;;  %3477 = vmatpush.bf16.msrb.mxu3 %v7508_v6  ;;  %v7378_v4 = vld [vmem:[%s8331_s27 + $0x2ac] sm:$0xf0]  ;;  %v7328_v6 = vld [vmem:[%s8331_s27 + $0x124] sm:$0xf] }
  0xcb   : > { %3448 = vmatpush.bf16.msrb.mxu2 %v7500_v5 }
  0xcc   : > { %3304 = vmatmul.bf16.vlgmr.msra.gmra.mxu1 %v5443_v16  ;;  %3362 = vmatmul.bf16.vlgmr.msra.gmra.mxu3 %v5451_v17  ;;  %v7314_v16 = vld [vmem:[%s8331_s27 + $0xac] sm:$0xf0]  ;;  %v7390_v17 = vld [vmem:[%s8331_s27 + $0x314] sm:$0xf] }
  0xcd   : > { %v5827_v26 = vor.u32 %v7390_v17, %v5824_v19  ;;  %3528 = vmatpush.bf16.msra.mxu1 %v7531_v51  ;;  %3586 = vmatpush.bf16.msra.mxu3 %v7547_v53  ;;  %v5595_v19 = vor.u32 %v7329_v9, %v5592_v10  ;;  %v7410_v51 = vld [vmem:[%s8331_s27 + $0x3ac] sm:$0xf0]  ;;  %v7360_v53 = vld [vmem:[%s8331_s27 + $0x224] sm:$0xf] }
  0xce   : > { %3333 = vmatmul.bf16.vlgmr.msra.gmra.mxu2 %v5447_v18  ;;  %v5471_v18 = vor.u32 %v7314_v16, %v5470_v15 }
  0xcf   : > { %3557 = vmatpush.bf16.msra.mxu2 %v7539_v52 }
  0xd1   : > { %3529 = vmatpush.bf16.msra.mxu1 %v7530_v57  ;;  %3587 = vmatpush.bf16.msra.mxu3 %v7546_v59  ;;  %v7361_v57 = vld [vmem:[%s8331_s27 + $0x22c] sm:$0xf]  ;;  %v5718_v59 = vld [vmem:[%s8331_s27 + $0x228] sm:$0xf] }
  0xd2   : > { %3406 = vmatmul.bf16.gmra.mxu0 %v5839_v58  ;;  %v7538_v58 = vld [vmem:[%s10261_s1 + $0x3b0] sm:$0xff] }
  0xd3   : > { %3558 = vmatpush.bf16.msra.mxu2 %v7538_v58  ;;  %v5720_v58 = vld [vmem:[%s8331_s27 + $0x2a8] sm:$0xf0] }
  0xd5   : > { %3530 = vmatpush.bf16.msra.mxu1 %v7529_v63 }
  0xd7   : > { %3559 = vmatpush.bf16.msra.mxu2 %v7537_v0 }
  0xd9   : > { %3531 = vmatpush.bf16.msra.mxu1 %v7528_v20 }
  0xdb   : > { %3560 = vmatpush.bf16.msra.mxu2 %v7536_v21 }
  0xdc   : > { %3309 = vmatmul.bf16.gmra.mxu1 %v5571_v38  ;;  %3367 = vmatmul.bf16.gmra.mxu3 %v5579_v39  ;;  %v7297_v38 = vld [vmem:[%s8331_s27 + $0x2c] sm:$0xf] }
  0xdd   : > { %v5464_v39 = vld [vmem:[%s8331_s27 + $0xa8] sm:$0xf0]  ;;  %3532 = vmatpush.bf16.msra.mxu1 %v7527_v33  ;;  %v5840_v33 = vld [vmem:[%s8331_s27 + $0x3a0] sm:$0xf0] }
  0xde   : > { %3338 = vmatmul.bf16.gmra.mxu2 %v5575_v43  ;;  %v5467_v45 = vor.u32 %v7297_v38, %v5464_v39  ;;  %v7526_v39 = vld [vmem:[%s10261_s1 + $0x350] sm:$0xff] }
  0xdf   : > { %3561 = vmatpush.bf16.msra.mxu2 %v7535_v34  ;;  %v7393_v34 = vld [vmem:[%s8331_s27 + $0x32c] sm:$0xf] }
  0xe1   : > { %3533 = vmatpush.bf16.msra.mxu1 %v7526_v39 }
  0xe2   : > { %3507 = vmatmul.bf16.vlgmr.msra.gmra.mxu0 %v5471_v18 }
  0xe3   : > { %3562 = vmatpush.bf16.msra.mxu2 %v7534_v40 }
  0xe9   : > { %v3160_v7 = vpop.f32.mrf.mxu1 }
  0xeb   : > { %v3276_v48 = vpop.f32.mrf.mxu0 }
  0xec   : > { %3314 = vmatmul.bf16.gmra.mxu1 %v5699_v2  ;;  %3372 = vmatmul.bf16.gmra.mxu3 %v5707_v3  ;;  %v7545_v2 = vld [vmem:[%s10261_s1 + $0x3e8] sm:$0xff]  ;;  %v5726_v3 = vld [vmem:[%s8331_s27 + $0x230] sm:$0xf] }
  0xed   : > { %3588 = vmatpush.bf16.msra.mxu3 %v7545_v2 }
  0xee   : > { %3343 = vmatmul.bf16.gmra.mxu2 %v5703_v8  ;;  %v5584_v8 = vld [vmem:[%s8331_s27 + $0x1a0] sm:$0xf0] }
  0xef   : > { %v8741_v11 = vpop.f32.mrf.mxu3  ;;  %v5587_v18 = vor.u32 %v7328_v6, %v5584_v8  ;;  %v7532_v6 = vld [vmem:[%s10261_s1 + $0x380] sm:$0xff] }
  0xf1   : > { %v3218_v12 = vpop.f32.mrf.mxu2  ;;  %v3162_v13 = vpop.f32.mrf.mxu1  ;;  %3589 = vmatpush.bf16.msra.mxu3 %v7544_v22  ;;  %v7548_v22 = vld [vmem:[%s10261_s1 + $0x400] sm:$0xff] }
  0xf2   : > { %3512 = vmatmul.bf16.gmra.mxu0 %v5599_v36 }
  0xf3   : > { %v8804_v1 = vpop.f32.mrf.mxu0 }
  0xf5   : > { %3590 = vmatpush.bf16.msra.mxu3 %v7543_v35 }
  0xf7   : > { %v8754_v24 = vpop.f32.mrf.mxu3 }
  0xf9   : > { %v3220_v25 = vpop.f32.mrf.mxu2  ;;  %v8756_v28 = vpop.f32.mrf.mxu1  ;;  %3591 = vmatpush.bf16.msra.mxu3 %v7542_v41 }
  0xfc   : > { %3319 = vmatmul.bf16.gmra.mxu1 %v5827_v26  ;;  %3377 = vmatmul.bf16.gmra.mxu3 %v5835_v27  ;;  %v7554_v27 = vld [vmem:[%s10261_s1 + $0x430] sm:$0xff] }
  0xfd   : > { %3616 = vmatpush.bf16.msrb.mxu0 %v7554_v27  ;;  %v5486_v27 = vld [vmem:[%s8331_s27 + $0x40] sm:$0xf] }
  0xfe   : > { %3348 = vmatmul.bf16.gmra.mxu2 %v5831_v29 }
  0xff   : > { %v8758_v30 = vpop.f32.mrf.mxu3 }
 0x101   : > { %v8760_v31 = vpop.f32.mrf.mxu2  ;;  %v8762_v32 = vpop.f32.mrf.mxu1 }
 0x107   : > { %v8772_v42 = vpop.f32.mrf.mxu3 }
 0x109   : > { %v8774_v43 = vpop.f32.mrf.mxu2  ;;  %v3189_v46 = vpop.f32.mrf.mxu1 }
 0x10a   : > { %v3190_v49 = vadd.f32 %v3189_v46, %v3160_v7  ;;  %v5727_v7 = vor.u32 %v7378_v4, %v5726_v3  ;;  %v5723_v4 = vor.u32 %v7361_v57, %v5720_v58  ;;  %v7298_v57 = vld [vmem:[%s8331_s27 + $0x34] sm:$0xf]  ;;  %v5614_v58 = vld [vmem:[%s8331_s27 + $0x140] sm:$0xf] }
 0x10c   : > { %3420 = vmatmul.bf16.vlgmr.msrb.gmra.mxu1 %v5459_v44  ;;  %3478 = vmatmul.bf16.vlgmr.msrb.gmra.mxu3 %v5467_v45  ;;  %v3219_v50 = vadd.f32 %v3218_v12, %v3190_v49  ;;  %v5590_v12 = vld [vmem:[%s8331_s27 + $0x128] sm:$0xf] }
 0x10d   : > { %3517 = vmatmul.bf16.gmra.mxu0 %v5727_v7  ;;  %v7533_v49 = vld [vmem:[%s10261_s1 + $0x388] sm:$0xff]  ;;  %v7540_v7 = vld [vmem:[%s10261_s1 + $0x3c0] sm:$0xff] }
 0x10e   : > { %3449 = vmatmul.bf16.vlgmr.msrb.gmra.mxu2 %v5463_v47  ;;  %v7552_v47 = vld [vmem:[%s10261_s1 + $0x420] sm:$0xff] }
 0x10f   : > { %v3247_v54 = vpop.f32.mrf.mxu3  ;;  %3563 = vmatpush.bf16.msra.mxu2 %v7533_v49 }
 0x110   : > { %v3248_v56 = vadd.f32 %v3247_v54, %v3219_v50  ;;  %v5854_v50 = vld [vmem:[%s8331_s27 + $0x330] sm:$0xf] }
 0x111   : > { %v8785_v55 = vpop.f32.mrf.mxu2  ;;  %v3191_v60 = vpop.f32.mrf.mxu1  ;;  %v5855_v54 = vor.u32 %v7410_v51, %v5854_v50 }
 0x112   : > { %v3192_v61 = vadd.f32 %v3191_v60, %v3162_v13  ;;  %v8796_v62 = vadd.f32 %v3276_v48, %v3248_v56  ;;  %v7345_v13 = vld [vmem:[%s8331_s27 + $0x1a4] sm:$0xf0]  ;;  %v5712_v56 = vld [vmem:[%s8331_s27 + $0x2a0] sm:$0xf0] }
 0x113   : > { %v7525_v48 = vld [vmem:[%s10261_s1 + $0x348] sm:$0xff]  ;;  %v5715_v3 = vor.u32 %v7360_v53, %v5712_v56  ;;  %3564 = vmatpush.bf16.msra.mxu2 %v7532_v6 }
 0x114   : > { %v3221_v5 = vadd.f32 %v3220_v25, %v3192_v61  ;;  %v5591_v25 = vor.u32 %v7345_v13, %v5590_v12  ;;  %v7377_v60 = vld [vmem:[%s8331_s27 + $0x2a4] sm:$0xf0]  ;;  %3534 = vmatpush.bf16.msra.mxu1 %v7525_v48  ;;  %v7551_v61 = vld [vmem:[%s10261_s1 + $0x418] sm:$0xff]  ;;  %v7550_v13 = vld [vmem:[%s10261_s1 + $0x410] sm:$0xff] }
 0x115   : > { %v5719_v9 = vor.u32 %v7377_v60, %v5718_v59  ;;  %v7348_v59 = vld [vmem:[%s8331_s27 + $0x1bc] sm:$0xf0]  ;;  %v5472_v60 = vld [vmem:[%s8331_s27 + $0xb0] sm:$0xf0] }
 0x116   : > { %v5475_v6 = vor.u32 %v7298_v57, %v5472_v60 }
 0x117   : > { %v3249_v15 = vpop.f32.mrf.mxu3 }
 0x118   : > { %v8822_v17 = vadd.f32 %v3249_v15, %v3221_v5  ;;  %v7524_v5 = vld [vmem:[%s10261_s1 + $0x340] sm:$0xff] }
 0x119   : > { %v8820_v16 = vpop.f32.mrf.mxu2  ;;  %v3194_v23 = vpop.f32.mrf.mxu1  ;;  %3535 = vmatpush.bf16.msra.mxu1 %v7524_v5 }
 0x11a   : > { %v3195_v26 = vadd.f32 %v3194_v23, %v8756_v28  ;;  %v3281_v28 = vpop.f32.mrf.mxu0 }
 0x11c   : > { %3425 = vmatmul.bf16.gmra.mxu1 %v5587_v18  ;;  %3483 = vmatmul.bf16.gmra.mxu3 %v5595_v19  ;;  %v3224_v29 = vadd.f32 %v8760_v31, %v3195_v26  ;;  %v7553_v31 = vld [vmem:[%s10261_s1 + $0x428] sm:$0xff]  ;;  %v7392_v26 = vld [vmem:[%s8331_s27 + $0x324] sm:$0xf] }
 0x11d   : > { %3617 = vmatpush.bf16.msrb.mxu0 %v7553_v31  ;;  %v5846_v31 = vld [vmem:[%s8331_s27 + $0x328] sm:$0xf]  ;;  %v5843_v40 = vor.u32 %v7392_v26, %v5840_v33 }
 0x11e   : > { %3454 = vmatmul.bf16.gmra.mxu2 %v5591_v25  ;;  %3522 = vmatmul.bf16.gmra.mxu0 %v5855_v54 }
 0x11f   : > { %v3252_v36 = vpop.f32.mrf.mxu3 }
 0x120   : > { %v3253_v38 = vadd.f32 %v3252_v36, %v3224_v29  ;;  %v7316_v29 = vld [vmem:[%s8331_s27 + $0xbc] sm:$0xf0]  ;;  %v7409_v36 = vld [vmem:[%s8331_s27 + $0x3a4] sm:$0xf0] }
 0x121   : > { %v8850_v37 = vpop.f32.mrf.mxu2  ;;  %v3196_v44 = vpop.f32.mrf.mxu1  ;;  %3618 = vmatpush.bf16.msrb.mxu0 %v7552_v47  ;;  %v5487_v35 = vor.u32 %v7316_v29, %v5486_v27  ;;  %v5600_v27 = vld [vmem:[%s8331_s27 + $0x1b0] sm:$0xf0]  ;;  %v7331_v29 = vld [vmem:[%s8331_s27 + $0x13c] sm:$0xf] }
 0x122   : > { %v3197_v45 = vadd.f32 %v3196_v44, %v8762_v32  ;;  %v8862_v46 = vadd.f32 %v3281_v28, %v3253_v38  ;;  %v7541_v32 = vld [vmem:[%s10261_s1 + $0x3c8] sm:$0xff]  ;;  %v3283_v0 = vpop.f32.mrf.mxu0 }
 0x123   : > { %3592 = vmatpush.bf16.msra.mxu3 %v7541_v32  ;;  %v5848_v28 = vld [vmem:[%s8331_s27 + $0x3a8] sm:$0xf0] }
 0x124   : > { %v3226_v52 = vadd.f32 %v8774_v43, %v3197_v45  ;;  %v5851_v41 = vor.u32 %v7393_v34, %v5848_v28  ;;  %v5847_v45 = vor.u32 %v7409_v36, %v5846_v31  ;;  %v7561_v34 = vld [vmem:[%s10261_s1 + $0x468] sm:$0xff]  ;;  %v5608_v36 = vld [vmem:[%s8331_s27 + $0x1b8] sm:$0xf0] }
 0x125   : > { %3619 = vmatpush.bf16.msrb.mxu0 %v7551_v61  ;;  %v5480_v61 = vld [vmem:[%s8331_s27 + $0xb8] sm:$0xf0]  ;;  %v7569_v28 = vld [vmem:[%s10261_s1 + $0x4a8] sm:$0xff] }
 0x127   : > { %v3254_v63 = vpop.f32.mrf.mxu3  ;;  %3593 = vmatpush.bf16.msra.mxu3 %v7540_v7 }
 0x128   : > { %v3255_v43 = vadd.f32 %v3254_v63, %v3226_v52  ;;  %v5615_v63 = vor.u32 %v7348_v59, %v5614_v58  ;;  %v7586_v58 = vld [vmem:[%s10261_s1 + $0x530] sm:$0xff] }
 0x129   : > { %v8888_v2 = vpop.f32.mrf.mxu2  ;;  %v3199_v8 = vpop.f32.mrf.mxu1  ;;  %3620 = vmatpush.bf16.msrb.mxu0 %v7550_v13  ;;  %v7563_v13 = vld [vmem:[%s10261_s1 + $0x478] sm:$0xff] }
 0x12a   : > { %v3200_v10 = vadd.f32 %v3199_v8, %v8741_v11  ;;  %v8900_v12 = vadd.f32 %v3283_v0, %v3255_v43  ;;  %v7549_v11 = vld [vmem:[%s10261_s1 + $0x408] sm:$0xff]  ;;  %v8915_v23 = vpop.f32.mrf.mxu0  ;;  %v5478_v0 = vld [vmem:[%s8331_s27 + $0x38] sm:$0xf]  ;;  %3644 = vmatpush.bf16.msrb.mxu1 %v7563_v13  ;;  %v7362_v13 = vld [vmem:[%s8331_s27 + $0x234] sm:$0xf] }
 0x12b   : > { %v7315_v43 = vld [vmem:[%s8331_s27 + $0xb4] sm:$0xf0] }
 0x12c   : > { %3430 = vmatmul.bf16.gmra.mxu1 %v5715_v3  ;;  %3488 = vmatmul.bf16.gmra.mxu3 %v5723_v4  ;;  %v3229_v14 = vadd.f32 %v8785_v55, %v3200_v10  ;;  %v5479_v8 = vor.u32 %v7315_v43, %v5478_v0  ;;  %v7585_v0 = vld [vmem:[%s10261_s1 + $0x528] sm:$0xff] }
 0x12d   : > { %3621 = vmatpush.bf16.msrb.mxu0 %v7549_v11  ;;  %v7579_v11 = vld [vmem:[%s10261_s1 + $0x4f8] sm:$0xff] }
 0x12e   : > { %3459 = vmatmul.bf16.gmra.mxu2 %v5719_v9  ;;  %3702 = vmatpush.bf16.msrb.mxu3 %v7579_v11  ;;  %v7363_v11 = vld [vmem:[%s8331_s27 + $0x23c] sm:$0xf] }
 0x12f   : > { %v3257_v15 = vpop.f32.mrf.mxu3 }
 0x130   : > { %v3258_v18 = vadd.f32 %v3257_v15, %v3229_v14  ;;  %v7571_v14 = vld [vmem:[%s10261_s1 + $0x4b8] sm:$0xff]  ;;  %v3279_v15 = vadd.f32 %v8804_v1, %v8822_v17  ;;  %v7330_v17 = vld [vmem:[%s8331_s27 + $0x134] sm:$0xf] }
 0x131   : > { %v3286_v19 = vpop.f32.mrf.mxu2  ;;  %v3201_v20 = vpop.f32.mrf.mxu1  ;;  %3622 = vmatpush.bf16.msrb.mxu0 %v7548_v22  ;;  %3673 = vmatpush.bf16.msrb.mxu2 %v7571_v14  ;;  %v5728_v14 = vld [vmem:[%s8331_s27 + $0x2b0] sm:$0xf0] }
 0x132   : > { %v8909_v21 = vadd.f32 %v3286_v19, %v3258_v18  ;;  %v3202_v55 = vadd.f32 %v3201_v20, %v8754_v24  ;;  %v8929_v48 = vpop.f32.mrf.mxu0  ;;  %v7562_v19 = vld [vmem:[%s10261_s1 + $0x470] sm:$0xff] }
 0x133   : > { %v7570_v20 = vld [vmem:[%s10261_s1 + $0x4b0] sm:$0xff]  ;;  %3645 = vmatpush.bf16.msrb.mxu1 %v7562_v19 }
 0x134   : > { %v3231_v25 = vadd.f32 %v8820_v16, %v3202_v55  ;;  %3623 = vmatmul.bf16.vlgmr.msrb.gmra.mxu0 %v5487_v35  ;;  %v7578_v55 = vld [vmem:[%s10261_s1 + $0x4f0] sm:$0xff]  ;;  %v7577_v35 = vld [vmem:[%s10261_s1 + $0x4e8] sm:$0xff] }
 0x135   : > { %3674 = vmatpush.bf16.msrb.mxu2 %v7570_v20  ;;  %3703 = vmatpush.bf16.msrb.mxu3 %v7578_v55  ;;  %v5736_v20 = vld [vmem:[%s8331_s27 + $0x2b8] sm:$0xf0]  ;;  %v5870_v55 = vld [vmem:[%s8331_s27 + $0x340] sm:$0xf] }
 0x137   : > { %v3259_v38 = vpop.f32.mrf.mxu3  ;;  %3646 = vmatpush.bf16.msrb.mxu1 %v7561_v34  ;;  %v5731_v34 = vor.u32 %v7362_v13, %v5728_v14 }
 0x138   : > { %v3260_v24 = vadd.f32 %v3259_v38, %v3231_v25  ;;  %v5742_v38 = vld [vmem:[%s8331_s27 + $0x240] sm:$0xf] }
 0x139   : > { %v3288_v39 = vpop.f32.mrf.mxu2  ;;  %v3204_v44 = vpop.f32.mrf.mxu1  ;;  %3675 = vmatpush.bf16.msrb.mxu2 %v7569_v28  ;;  %3704 = vmatpush.bf16.msrb.mxu3 %v7577_v35  ;;  %v5739_v28 = vor.u32 %v7363_v11, %v5736_v20  ;;  %v7564_v35 = vld [vmem:[%s10261_s1 + $0x480] sm:$0xff] }
 0x13a   : > { %v8926_v16 = vadd.f32 %v3288_v39, %v3260_v24  ;;  %v3205_v47 = vadd.f32 %v3204_v44, %v8758_v30  ;;  %v8935_v54 = vpop.f32.mrf.mxu0  ;;  %v7380_v24 = vld [vmem:[%s8331_s27 + $0x2bc] sm:$0xf0]  ;;  %v5606_v39 = vld [vmem:[%s8331_s27 + $0x138] sm:$0xf]  ;;  %v7300_v20 = vld [vmem:[%s8331_s27 + $0x44] sm:$0xf] }
 0x13b   : > { %v7587_v44 = vld [vmem:[%s10261_s1 + $0x538] sm:$0xff] }
 0x13c   : > { %3435 = vmatmul.bf16.gmra.mxu1 %v5843_v40  ;;  %3493 = vmatmul.bf16.gmra.mxu3 %v5851_v41  ;;  %v3234_v49 = vadd.f32 %v8850_v37, %v3205_v47  ;;  %v7299_v37 = vld [vmem:[%s8331_s27 + $0x3c] sm:$0xf]  ;;  %v7347_v40 = vld [vmem:[%s8331_s27 + $0x1b4] sm:$0xf0]  ;;  %v5743_v41 = vor.u32 %v7380_v24, %v5742_v38 }
 0x13d   : > { %v5483_v7 = vor.u32 %v7299_v37, %v5480_v61  ;;  %3731 = vmatpush.bf16.msra.mxu0 %v7587_v44  ;;  %v7559_v37 = vld [vmem:[%s10261_s1 + $0x458] sm:$0xff] }
 0x13e   : > { %3464 = vmatmul.bf16.gmra.mxu2 %v5847_v45 }
 0x13f   : > { %v3262_v32 = vpop.f32.mrf.mxu3 }
 0x140   : > { %v3263_v50 = vadd.f32 %v3262_v32, %v3234_v49  ;;  %v5603_v49 = vor.u32 %v7330_v17, %v5600_v27  ;;  %v5611_v32 = vor.u32 %v7331_v29, %v5608_v36  ;;  %v7583_v17 = vld [vmem:[%s10261_s1 + $0x518] sm:$0xff]  ;;  %v7572_v36 = vld [vmem:[%s10261_s1 + $0x4c0] sm:$0xff] }
 0x141   : > { %v3291_v51 = vpop.f32.mrf.mxu2  ;;  %v3206_v52 = vpop.f32.mrf.mxu1  ;;  %3732 = vmatpush.bf16.msra.mxu0 %v7586_v58 }
 0x142   : > { %v8932_v53 = vadd.f32 %v3291_v51, %v3263_v50  ;;  %v3207_v30 = vadd.f32 %v3206_v52, %v8772_v42  ;;  %v8949_v10 = vpop.f32.mrf.mxu0  ;;  %v7568_v50 = vld [vmem:[%s10261_s1 + $0x4a0] sm:$0xff] }
 0x143   : > { %v7576_v51 = vld [vmem:[%s10261_s1 + $0x4e0] sm:$0xff]  ;;  %3676 = vmatpush.bf16.msrb.mxu2 %v7568_v50 }
 0x144   : > { %v3236_v56 = vadd.f32 %v8888_v2, %v3207_v30  ;;  %3628 = vmatmul.bf16.gmra.mxu0 %v5615_v63  ;;  %3705 = vmatpush.bf16.msrb.mxu3 %v7576_v51  ;;  %v7575_v63 = vld [vmem:[%s10261_s1 + $0x4d8] sm:$0xff] }
 0x145   : > { %3733 = vmatpush.bf16.msra.mxu0 %v7585_v0 }
 0x147   : > { %v3264_v3 = vpop.f32.mrf.mxu3 }
 0x148   : > { %v3265_v4 = vadd.f32 %v3264_v3, %v3236_v56  ;;  %v5607_v56 = vor.u32 %v7347_v40, %v5606_v39  ;;  %3706 = vmatpush.bf16.msrb.mxu3 %v7575_v63 }
 0x149   : > { %v3293_v5 = vpop.f32.mrf.mxu2  ;;  %v3305_v42 = vpop.f32.mrf.mxu1 }
 0x14a   : > { %v8946_v9 = vadd.f32 %v3293_v5, %v3265_v4  ;;  %v3306_v2 = vadd.f32 %v3305_v42, %v8796_v62  ;;  %v8974_v33 = vpop.f32.mrf.mxu0  ;;  %v7566_v4 = vld [vmem:[%s10261_s1 + $0x490] sm:$0xff] }
 0x14b   : > { %v7574_v5 = vld [vmem:[%s10261_s1 + $0x4d0] sm:$0xff] }
 0x14c   : > { %3536 = vmatmul.bf16.vlgmr.msra.gmra.mxu1 %v5475_v6  ;;  %3594 = vmatmul.bf16.vlgmr.msra.gmra.mxu3 %v5483_v7 }
 0x14d   : > { %3707 = vmatpush.bf16.msrb.mxu3 %v7574_v5 }
 0x14e   : > { %3565 = vmatmul.bf16.vlgmr.msra.gmra.mxu2 %v5479_v8  ;;  %v7584_v8 = vld [vmem:[%s10261_s1 + $0x520] sm:$0xff] }
 0x14f   : > { %v3363_v62 = vpop.f32.mrf.mxu3  ;;  %3734 = vmatpush.bf16.msra.mxu0 %v7584_v8 }
 0x151   : > { %v3334_v18 = vpop.f32.mrf.mxu2  ;;  %v3307_v25 = vpop.f32.mrf.mxu1 }
 0x152   : > { %v3335_v22 = vadd.f32 %v3334_v18, %v3306_v2  ;;  %v3308_v26 = vadd.f32 %v3307_v25, %v3279_v15  ;;  %v9009_v60 = vpop.f32.mrf.mxu0  ;;  %v7565_v15 = vld [vmem:[%s10261_s1 + $0x488] sm:$0xff]  ;;  %v5734_v25 = vld [vmem:[%s8331_s27 + $0x238] sm:$0xf] }
 0x153   : > { %v7573_v18 = vld [vmem:[%s10261_s1 + $0x4c8] sm:$0xff]  ;;  %3735 = vmatpush.bf16.msra.mxu0 %v7583_v17 }
 0x154   : > { %v3364_v1 = vadd.f32 %v3363_v62, %v3335_v22  ;;  %3633 = vmatmul.bf16.gmra.mxu0 %v5743_v41  ;;  %v7412_v22 = vld [vmem:[%s8331_s27 + $0x3bc] sm:$0xf0]  ;;  %3708 = vmatpush.bf16.msrb.mxu3 %v7573_v18  ;;  %v7582_v41 = vld [vmem:[%s10261_s1 + $0x510] sm:$0xff] }
 0x156   : > { %v8986_v31 = vadd.f32 %v8915_v23, %v3364_v1  ;;  %v7560_v23 = vld [vmem:[%s10261_s1 + $0x460] sm:$0xff]  ;;  %v5871_v1 = vor.u32 %v7412_v22, %v5870_v55  ;;  %v5630_v55 = vld [vmem:[%s8331_s27 + $0x150] sm:$0xf] }
 0x157   : > { %v3365_v45 = vpop.f32.mrf.mxu3  ;;  %3647 = vmatpush.bf16.msrb.mxu1 %v7560_v23  ;;  %3736 = vmatpush.bf16.msra.mxu0 %v7582_v41  ;;  %v7350_v22 = vld [vmem:[%s8331_s27 + $0x1cc] sm:$0xf0]  ;;  %v7603_v41 = vld [vmem:[%s10261_s1 + $0x5b8] sm:$0xff] }
 0x158   : > { %3709 = vmatpush.bf16.msrb.mxu3 %v7572_v36 }
 0x159   : > { %v3336_v47 = vpop.f32.mrf.mxu2  ;;  %v3310_v30 = vpop.f32.mrf.mxu1 }
 0x15a   : > { %v3337_v52 = vadd.f32 %v3336_v47, %v3308_v26  ;;  %v3311_v57 = vadd.f32 %v3310_v30, %v8862_v46  ;;  %v7567_v46 = vld [vmem:[%s10261_s1 + $0x498] sm:$0xff]  ;;  %v9042_v62 = vpop.f32.mrf.mxu0  ;;  %v7394_v30 = vld [vmem:[%s8331_s27 + $0x334] sm:$0xf] }
 0x15b   : > { %3648 = vmatpush.bf16.msrb.mxu1 %v7559_v37  ;;  %3677 = vmatpush.bf16.msrb.mxu2 %v7567_v46  ;;  %v7379_v26 = vld [vmem:[%s8331_s27 + $0x2b4] sm:$0xf0]  ;;  %v7395_v37 = vld [vmem:[%s8331_s27 + $0x33c] sm:$0xf] }
 0x15c   : > { %v3366_v59 = vadd.f32 %v3365_v45, %v3337_v52  ;;  %3541 = vmatmul.bf16.gmra.mxu1 %v5603_v49  ;;  %3599 = vmatmul.bf16.gmra.mxu3 %v5611_v32  ;;  %v5735_v39 = vor.u32 %v7379_v26, %v5734_v25  ;;  %v5864_v46 = vld [vmem:[%s8331_s27 + $0x3b8] sm:$0xf0]  ;;  %v7301_v26 = vld [vmem:[%s8331_s27 + $0x4c] sm:$0xf] }
 0x15d   : > { %v5867_v5 = vor.u32 %v7395_v37, %v5864_v46  ;;  %v7593_v37 = vld [vmem:[%s10261_s1 + $0x568] sm:$0xff] }
 0x15e   : > { %v9018_v61 = vadd.f32 %v8929_v48, %v3366_v59  ;;  %3570 = vmatmul.bf16.gmra.mxu2 %v5607_v56  ;;  %v7558_v48 = vld [vmem:[%s10261_s1 + $0x450] sm:$0xff]  ;;  %v7601_v46 = vld [vmem:[%s10261_s1 + $0x5a8] sm:$0xff] }
 0x15f   : > { %v3368_v43 = vpop.f32.mrf.mxu3  ;;  %3649 = vmatpush.bf16.msrb.mxu1 %v7558_v48  ;;  %3678 = vmatpush.bf16.msrb.mxu2 %v7566_v4  ;;  %v5502_v56 = vld [vmem:[%s8331_s27 + $0x50] sm:$0xf]  ;;  %v5856_v59 = vld [vmem:[%s8331_s27 + $0x3b0] sm:$0xf0] }
 0x160   : > { %v5859_v4 = vor.u32 %v7394_v30, %v5856_v59  ;;  %v7333_v59 = vld [vmem:[%s8331_s27 + $0x14c] sm:$0xf] }
 0x161   : > { %v3339_v3 = vpop.f32.mrf.mxu2  ;;  %v3312_v7 = vpop.f32.mrf.mxu1 }
 0x162   : > { %v3340_v6 = vadd.f32 %v3339_v3, %v3311_v57  ;;  %v3313_v42 = vadd.f32 %v3312_v7, %v8900_v12  ;;  %v7557_v12 = vld [vmem:[%s10261_s1 + $0x448] sm:$0xff]  ;;  %v9077_v45 = vpop.f32.mrf.mxu0  ;;  %v7318_v57 = vld [vmem:[%s8331_s27 + $0xcc] sm:$0xf0] }
 0x163   : > { %3650 = vmatpush.bf16.msrb.mxu1 %v7557_v12  ;;  %3679 = vmatpush.bf16.msrb.mxu2 %v7565_v15  ;;  %v5503_v0 = vor.u32 %v7318_v57, %v5502_v56  ;;  %v7332_v56 = vld [vmem:[%s8331_s27 + $0x144] sm:$0xf] }
 0x164   : > { %v3369_v2 = vadd.f32 %v3368_v43, %v3340_v6  ;;  %3638 = vmatmul.bf16.gmra.mxu0 %v5871_v1  ;;  %v5862_v43 = vld [vmem:[%s8331_s27 + $0x338] sm:$0xf]  ;;  %v5496_v1 = vld [vmem:[%s8331_s27 + $0xc8] sm:$0xf0]  ;;  %v5616_v57 = vld [vmem:[%s8331_s27 + $0x1c0] sm:$0xf0] }
 0x165   : > { %v5499_v36 = vor.u32 %v7301_v26, %v5496_v1  ;;  %v7599_v26 = vld [vmem:[%s10261_s1 + $0x598] sm:$0xff] }
 0x166   : > { %v9054_v19 = vadd.f32 %v8935_v54, %v3369_v2  ;;  %v7556_v54 = vld [vmem:[%s10261_s1 + $0x440] sm:$0xff] }
 0x167   : > { %v3370_v27 = vpop.f32.mrf.mxu3  ;;  %3651 = vmatpush.bf16.msrb.mxu1 %v7556_v54  ;;  %3680 = vmatpush.bf16.msrb.mxu2 %v7564_v35 }
 0x169   : > { %v3341_v29 = vpop.f32.mrf.mxu2  ;;  %v3315_v24 = vpop.f32.mrf.mxu1 }
 0x16a   : > { %v3342_v38 = vadd.f32 %v3341_v29, %v3313_v42  ;;  %v3316_v40 = vadd.f32 %v3315_v24, %v8909_v21  ;;  %v7581_v21 = vld [vmem:[%s10261_s1 + $0x508] sm:$0xff]  ;;  %v9098_v63 = vpop.f32.mrf.mxu0 }
 0x16b   : > { %3737 = vmatpush.bf16.msra.mxu0 %v7581_v21  ;;  %v5494_v29 = vld [vmem:[%s8331_s27 + $0x48] sm:$0xf]  ;;  %3789 = vmatpush.bf16.msra.mxu2 %v7603_v41  ;;  %v7365_v41 = vld [vmem:[%s8331_s27 + $0x24c] sm:$0xf] }
 0x16c   : > { %v3371_v44 = vadd.f32 %v3370_v27, %v3342_v38  ;;  %3546 = vmatmul.bf16.gmra.mxu1 %v5731_v34  ;;  %3604 = vmatmul.bf16.gmra.mxu3 %v5739_v28  ;;  %v5631_v27 = vor.u32 %v7350_v22, %v5630_v55  ;;  %v7317_v34 = vld [vmem:[%s8331_s27 + $0xc4] sm:$0xf0]  ;;  %v7618_v55 = vld [vmem:[%s10261_s1 + $0x630] sm:$0xff] }
 0x16d   : > { %v5495_v24 = vor.u32 %v7317_v34, %v5494_v29  ;;  %v7617_v29 = vld [vmem:[%s10261_s1 + $0x628] sm:$0xff] }
 0x16e   : > { %v9080_v47 = vadd.f32 %v8949_v10, %v3371_v44  ;;  %3575 = vmatmul.bf16.gmra.mxu2 %v5735_v39  ;;  %v7580_v10 = vld [vmem:[%s10261_s1 + $0x500] sm:$0xff]  ;;  %v7611_v44 = vld [vmem:[%s10261_s1 + $0x5f8] sm:$0xff] }
 0x16f   : > { %v3373_v49 = vpop.f32.mrf.mxu3  ;;  %3738 = vmatpush.bf16.msra.mxu0 %v7580_v10  ;;  %3818 = vmatpush.bf16.msra.mxu3 %v7611_v44  ;;  %v7589_v44 = vld [vmem:[%s10261_s1 + $0x548] sm:$0xff] }
 0x171   : > { %v3344_v32 = vpop.f32.mrf.mxu2  ;;  %v3317_v50 = vpop.f32.mrf.mxu1 }
 0x172   : > { %v3345_v23 = vadd.f32 %v3344_v32, %v3316_v40  ;;  %v3318_v51 = vadd.f32 %v3317_v50, %v8926_v16  ;;  %v7411_v16 = vld [vmem:[%s8331_s27 + $0x3b4] sm:$0xf0]  ;;  %v9106_v13 = vpop.f32.mrf.mxu0  ;;  %v7610_v50 = vld [vmem:[%s10261_s1 + $0x5f0] sm:$0xff] }
 0x173   : > { %v7595_v40 = vld [vmem:[%s10261_s1 + $0x578] sm:$0xff]  ;;  %3819 = vmatpush.bf16.msra.mxu3 %v7610_v50  ;;  %v5886_v50 = vld [vmem:[%s8331_s27 + $0x350] sm:$0xf] }
 0x174   : > { %v3374_v52 = vadd.f32 %v3373_v49, %v3345_v23  ;;  %3739 = vmatmul.bf16.vlgmr.msra.gmra.mxu0 %v5503_v0  ;;  %3760 = vmatpush.bf16.msra.mxu1 %v7595_v40  ;;  %v7594_v23 = vld [vmem:[%s10261_s1 + $0x570] sm:$0xff]  ;;  %v5744_v40 = vld [vmem:[%s8331_s27 + $0x2c0] sm:$0xf0] }
 0x176   : > { %v9093_v58 = vadd.f32 %v8974_v33, %v3374_v52  ;;  %v5863_v33 = vor.u32 %v7411_v16, %v5862_v43  ;;  %v5624_v43 = vld [vmem:[%s8331_s27 + $0x1c8] sm:$0xf0] }
 0x177   : > { %v3375_v3 = vpop.f32.mrf.mxu3 }
 0x178   : > { %3761 = vmatpush.bf16.msra.mxu1 %v7594_v23  ;;  %v5752_v23 = vld [vmem:[%s8331_s27 + $0x2c8] sm:$0xf0] }
 0x179   : > { %v3346_v48 = vpop.f32.mrf.mxu2  ;;  %v3320_v7 = vpop.f32.mrf.mxu1 }
 0x17a   : > { %v3347_v6 = vadd.f32 %v3346_v48, %v3318_v51  ;;  %v3321_v42 = vadd.f32 %v3320_v7, %v8932_v53  ;;  %v9118_v17 = vpop.f32.mrf.mxu0  ;;  %v7382_v48 = vld [vmem:[%s8331_s27 + $0x2cc] sm:$0xf0]  ;;  %v7619_v7 = vld [vmem:[%s10261_s1 + $0x638] sm:$0xff] }
 0x17b   : > { %3847 = vmatpush.bf16.msrb.mxu0 %v7619_v7 }
 0x17c   : > { %v3376_v8 = vadd.f32 %v3375_v3, %v3347_v6  ;;  %3551 = vmatmul.bf16.gmra.mxu1 %v5859_v4  ;;  %3609 = vmatmul.bf16.gmra.mxu3 %v5867_v5  ;;  %v5758_v3 = vld [vmem:[%s8331_s27 + $0x250] sm:$0xf]  ;;  %v5622_v4 = vld [vmem:[%s8331_s27 + $0x148] sm:$0xf] }
 0x17d   : > { %v7349_v5 = vld [vmem:[%s8331_s27 + $0x1c4] sm:$0xf0]  ;;  %3762 = vmatpush.bf16.msra.mxu1 %v7593_v37  ;;  %v5759_v6 = vor.u32 %v7382_v48, %v5758_v3  ;;  %v5755_v37 = vor.u32 %v7365_v41, %v5752_v23  ;;  %v7302_v23 = vld [vmem:[%s8331_s27 + $0x54] sm:$0xf] }
 0x17e   : > { %v9104_v2 = vadd.f32 %v9009_v60, %v3376_v8  ;;  %3580 = vmatmul.bf16.gmra.mxu2 %v5863_v33  ;;  %v5488_v60 = vld [vmem:[%s8331_s27 + $0xc0] sm:$0xf0]  ;;  %v5619_v8 = vor.u32 %v7332_v56, %v5616_v57  ;;  %v7615_v56 = vld [vmem:[%s10261_s1 + $0x618] sm:$0xff] }
 0x17f   : > { %v3378_v14 = vpop.f32.mrf.mxu3  ;;  %v5491_v35 = vor.u32 %v7300_v20, %v5488_v60  ;;  %v7591_v60 = vld [vmem:[%s10261_s1 + $0x558] sm:$0xff]  ;;  %3848 = vmatpush.bf16.msrb.mxu0 %v7618_v55 }
 0x181   : > { %v3349_v11 = vpop.f32.mrf.mxu2  ;;  %v3322_v15 = vpop.f32.mrf.mxu1 }
 0x182   : > { %v3350_v12 = vadd.f32 %v3349_v11, %v3321_v42  ;;  %v3323_v53 = vadd.f32 %v3322_v15, %v8946_v9  ;;  %v7600_v11 = vld [vmem:[%s10261_s1 + $0x5a0] sm:$0xff] }
 0x183   : > { %3849 = vmatpush.bf16.msrb.mxu0 %v7617_v29 }
 0x184   : > { %v3379_v18 = vadd.f32 %v3378_v14, %v3350_v12  ;;  %3744 = vmatmul.bf16.gmra.mxu0 %v5631_v27  ;;  %v7592_v14 = vld [vmem:[%s10261_s1 + $0x560] sm:$0xff]  ;;  %v7607_v27 = vld [vmem:[%s10261_s1 + $0x5d8] sm:$0xff] }
 0x185   : > { %v7608_v12 = vld [vmem:[%s10261_s1 + $0x5e0] sm:$0xff]  ;;  %3763 = vmatpush.bf16.msra.mxu1 %v7592_v14 }
 0x186   : > { %v9113_v25 = vadd.f32 %v9042_v62, %v3379_v18  ;;  %v5623_v18 = vor.u32 %v7349_v5, %v5622_v4 }
 0x187   : > { %v3380_v28 = vpop.f32.mrf.mxu3 }
 0x189   : > { %v3351_v54 = vpop.f32.mrf.mxu2  ;;  %v3421_v38 = vpop.f32.mrf.mxu1  ;;  %3764 = vmatpush.bf16.msra.mxu1 %v7591_v60  ;;  %v7397_v60 = vld [vmem:[%s8331_s27 + $0x34c] sm:$0xf] }
 0x18a   : > { %v3352_v9 = vadd.f32 %v3351_v54, %v3323_v53  ;;  %v3422_v39 = vadd.f32 %v3421_v38, %v8986_v31  ;;  %v9135_v31 = vpop.f32.mrf.mxu0  ;;  %v7598_v54 = vld [vmem:[%s10261_s1 + $0x590] sm:$0xff] }
 0x18c   : > { %v3381_v62 = vadd.f32 %v3380_v28, %v3352_v9  ;;  %3652 = vmatmul.bf16.vlgmr.msrb.gmra.mxu1 %v5491_v35  ;;  %3710 = vmatmul.bf16.vlgmr.msrb.gmra.mxu3 %v5499_v36  ;;  %v7590_v28 = vld [vmem:[%s10261_s1 + $0x550] sm:$0xff] }
 0x18d   : > { %v7606_v35 = vld [vmem:[%s10261_s1 + $0x5d0] sm:$0xff]  ;;  %3765 = vmatpush.bf16.msra.mxu1 %v7590_v28 }
 0x18e   : > { %v9133_v21 = vadd.f32 %v9077_v45, %v3381_v62  ;;  %3681 = vmatmul.bf16.vlgmr.msrb.gmra.mxu2 %v5495_v24  ;;  %v7602_v45 = vld [vmem:[%s10261_s1 + $0x5b0] sm:$0xff]  ;;  %v7616_v24 = vld [vmem:[%s10261_s1 + $0x620] sm:$0xff] }
 0x18f   : > { %v3479_v49 = vpop.f32.mrf.mxu3  ;;  %3790 = vmatpush.bf16.msra.mxu2 %v7602_v45  ;;  %v7364_v62 = vld [vmem:[%s8331_s27 + $0x244] sm:$0xf]  ;;  %3850 = vmatpush.bf16.msrb.mxu0 %v7616_v24 }
 0x191   : > { %v3450_v32 = vpop.f32.mrf.mxu2  ;;  %v3423_v10 = vpop.f32.mrf.mxu1  ;;  %3766 = vmatpush.bf16.msra.mxu1 %v7589_v44 }
 0x192   : > { %v3451_v51 = vadd.f32 %v3450_v32, %v3422_v39  ;;  %v3424_v52 = vadd.f32 %v3423_v10, %v9018_v61  ;;  %v7609_v61 = vld [vmem:[%s10261_s1 + $0x5e8] sm:$0xff]  ;;  %v9163_v16 = vpop.f32.mrf.mxu0 }
 0x193   : > { %3791 = vmatpush.bf16.msra.mxu2 %v7601_v46  ;;  %3820 = vmatpush.bf16.msra.mxu3 %v7609_v61  ;;  %v5750_v10 = vld [vmem:[%s8331_s27 + $0x248] sm:$0xf]  ;;  %v7588_v46 = vld [vmem:[%s10261_s1 + $0x540] sm:$0xff] }
 0x194   : > { %v3480_v30 = vadd.f32 %v3479_v49, %v3451_v51  ;;  %3749 = vmatmul.bf16.gmra.mxu0 %v5759_v6  ;;  %v7605_v49 = vld [vmem:[%s10261_s1 + $0x5c8] sm:$0xff]  ;;  %v7414_v51 = vld [vmem:[%s8331_s27 + $0x3cc] sm:$0xf0]  ;;  %v7596_v61 = vld [vmem:[%s10261_s1 + $0x580] sm:$0xff] }
 0x195   : > { %3851 = vmatpush.bf16.msrb.mxu0 %v7615_v56  ;;  %3767 = vmatpush.bf16.msra.mxu1 %v7588_v46  ;;  %v7614_v6 = vld [vmem:[%s10261_s1 + $0x610] sm:$0xff] }
 0x196   : > { %v9160_v0 = vadd.f32 %v9098_v63, %v3480_v30  ;;  %v5627_v63 = vor.u32 %v7333_v59, %v5624_v43  ;;  %v5887_v30 = vor.u32 %v7414_v51, %v5886_v50  ;;  %v7604_v43 = vld [vmem:[%s10261_s1 + $0x5c0] sm:$0xff] }
 0x197   : > { %v3481_v33 = vpop.f32.mrf.mxu3  ;;  %3792 = vmatpush.bf16.msra.mxu2 %v7600_v11  ;;  %3821 = vmatpush.bf16.msra.mxu3 %v7608_v12  ;;  %v7612_v12 = vld [vmem:[%s10261_s1 + $0x600] sm:$0xff] }
 0x198   : > { %v5646_v50 = vld [vmem:[%s8331_s27 + $0x160] sm:$0xf] }
 0x199   : > { %v3452_v42 = vpop.f32.mrf.mxu2  ;;  %v3426_v53 = vpop.f32.mrf.mxu1  ;;  %3852 = vmatpush.bf16.msrb.mxu0 %v7614_v6  ;;  %v7352_v51 = vld [vmem:[%s8331_s27 + $0x1dc] sm:$0xf0]  ;;  %v7635_v6 = vld [vmem:[%s10261_s1 + $0x6b8] sm:$0xff] }
 0x19a   : > { %v3453_v15 = vadd.f32 %v3452_v42, %v3424_v52  ;;  %v3427_v20 = vadd.f32 %v3426_v53, %v9054_v19  ;;  %v9194_v1 = vpop.f32.mrf.mxu0  ;;  %v7381_v52 = vld [vmem:[%s8331_s27 + $0x2c4] sm:$0xf0]  ;;  %v7396_v53 = vld [vmem:[%s8331_s27 + $0x344] sm:$0xf] }
 0x19b   : > { %3793 = vmatpush.bf16.msra.mxu2 %v7599_v26  ;;  %3822 = vmatpush.bf16.msra.mxu3 %v7607_v27  ;;  %v5751_v4 = vor.u32 %v7381_v52, %v5750_v10  ;;  %v5880_v26 = vld [vmem:[%s8331_s27 + $0x3c8] sm:$0xf0]  ;;  %v7303_v52 = vld [vmem:[%s8331_s27 + $0x5c] sm:$0xf] }
 0x19c   : > { %v3482_v22 = vadd.f32 %v3481_v33, %v3453_v15  ;;  %3657 = vmatmul.bf16.gmra.mxu1 %v5619_v8  ;;  %3715 = vmatmul.bf16.gmra.mxu3 %v5627_v63 }
 0x19e   : > { %v9192_v19 = vadd.f32 %v9106_v13, %v3482_v22  ;;  %3686 = vmatmul.bf16.gmra.mxu2 %v5623_v18  ;;  %v5518_v18 = vld [vmem:[%s8331_s27 + $0x60] sm:$0xf]  ;;  %v5872_v22 = vld [vmem:[%s8331_s27 + $0x3c0] sm:$0xf0] }
 0x19f   : > { %v3484_v34 = vpop.f32.mrf.mxu3  ;;  %3794 = vmatpush.bf16.msra.mxu2 %v7598_v54  ;;  %3823 = vmatpush.bf16.msra.mxu3 %v7606_v35  ;;  %v5875_v54 = vor.u32 %v7396_v53, %v5872_v22  ;;  %v5883_v35 = vor.u32 %v7397_v60, %v5880_v26  ;;  %v7335_v22 = vld [vmem:[%s8331_s27 + $0x15c] sm:$0xf]  ;;  %v7625_v60 = vld [vmem:[%s10261_s1 + $0x668] sm:$0xff] }
 0x1a0   : > { %v7633_v26 = vld [vmem:[%s10261_s1 + $0x6a8] sm:$0xff] }
 0x1a1   : > { %v3455_v13 = vpop.f32.mrf.mxu2  ;;  %v3428_v9 = vpop.f32.mrf.mxu1 }
 0x1a2   : > { %v3456_v36 = vadd.f32 %v3455_v13, %v3427_v20  ;;  %v3429_v38 = vadd.f32 %v3428_v9, %v9080_v47  ;;  %v7597_v47 = vld [vmem:[%s10261_s1 + $0x588] sm:$0xff]  ;;  %v9231_v45 = vpop.f32.mrf.mxu0  ;;  %v7320_v20 = vld [vmem:[%s8331_s27 + $0xdc] sm:$0xf0] }
 0x1a3   : > { %3795 = vmatpush.bf16.msra.mxu2 %v7597_v47  ;;  %3824 = vmatpush.bf16.msra.mxu3 %v7605_v49  ;;  %v5519_v29 = vor.u32 %v7320_v20, %v5518_v18  ;;  %v7334_v18 = vld [vmem:[%s8331_s27 + $0x154] sm:$0xf] }
 0x1a4   : > { %v3485_v39 = vadd.f32 %v3484_v34, %v3456_v36  ;;  %3754 = vmatmul.bf16.gmra.mxu0 %v5887_v30  ;;  %v5878_v34 = vld [vmem:[%s8331_s27 + $0x348] sm:$0xf]  ;;  %v5512_v30 = vld [vmem:[%s8331_s27 + $0xd8] sm:$0xf0]  ;;  %v5632_v20 = vld [vmem:[%s8331_s27 + $0x1d0] sm:$0xf0] }
 0x1a6   : > { %v9228_v32 = vadd.f32 %v9118_v17, %v3485_v39  ;;  %v5747_v17 = vor.u32 %v7364_v62, %v5744_v40 }
 0x1a7   : > { %v3486_v57 = vpop.f32.mrf.mxu3  ;;  %3796 = vmatpush.bf16.msra.mxu2 %v7596_v61  ;;  %3825 = vmatpush.bf16.msra.mxu3 %v7604_v43  ;;  %v5515_v43 = vor.u32 %v7303_v52, %v5512_v30  ;;  %v7631_v52 = vld [vmem:[%s10261_s1 + $0x698] sm:$0xff] }
 0x1a9   : > { %v3457_v59 = vpop.f32.mrf.mxu2  ;;  %v3431_v48 = vpop.f32.mrf.mxu1 }
 0x1aa   : > { %v3458_v3 = vadd.f32 %v3457_v59, %v3429_v38  ;;  %v3432_v5 = vadd.f32 %v3431_v48, %v9093_v58  ;;  %v9256_v42 = vpop.f32.mrf.mxu0  ;;  %v7613_v58 = vld [vmem:[%s10261_s1 + $0x608] sm:$0xff]  ;;  %v5510_v59 = vld [vmem:[%s8331_s27 + $0x58] sm:$0xf] }
 0x1ab   : > { %3853 = vmatpush.bf16.msrb.mxu0 %v7613_v58  ;;  %3905 = vmatpush.bf16.msrb.mxu2 %v7635_v6  ;;  %v7367_v6 = vld [vmem:[%s8331_s27 + $0x25c] sm:$0xf] }
 0x1ac   : > { %v3487_v7 = vadd.f32 %v3486_v57, %v3458_v3  ;;  %3662 = vmatmul.bf16.gmra.mxu1 %v5747_v17  ;;  %3720 = vmatmul.bf16.gmra.mxu3 %v5755_v37  ;;  %v5647_v57 = vor.u32 %v7352_v51, %v5646_v50  ;;  %v7319_v17 = vld [vmem:[%s8331_s27 + $0xd4] sm:$0xf0]  ;;  %v7650_v50 = vld [vmem:[%s10261_s1 + $0x730] sm:$0xff] }
 0x1ad   : > { %v5511_v48 = vor.u32 %v7319_v17, %v5510_v59  ;;  %v7649_v59 = vld [vmem:[%s10261_s1 + $0x728] sm:$0xff] }
 0x1ae   : > { %v9254_v33 = vadd.f32 %v9135_v31, %v3487_v7  ;;  %3691 = vmatmul.bf16.gmra.mxu2 %v5751_v4  ;;  %v7643_v7 = vld [vmem:[%s10261_s1 + $0x6f8] sm:$0xff] }
 0x1af   : > { %v3489_v8 = vpop.f32.mrf.mxu3  ;;  %3854 = vmatpush.bf16.msrb.mxu0 %v7612_v12  ;;  %3934 = vmatpush.bf16.msrb.mxu3 %v7643_v7  ;;  %v7621_v7 = vld [vmem:[%s10261_s1 + $0x648] sm:$0xff] }
 0x1b1   : > { %v3460_v63 = vpop.f32.mrf.mxu2  ;;  %v3433_v11 = vpop.f32.mrf.mxu1 }
 0x1b2   : > { %v3461_v14 = vadd.f32 %v3460_v63, %v3432_v5  ;;  %v3434_v31 = vadd.f32 %v3433_v11, %v9104_v2  ;;  %v9274_v27 = vpop.f32.mrf.mxu0  ;;  %v7413_v2 = vld [vmem:[%s8331_s27 + $0x3c4] sm:$0xf0]  ;;  %v7627_v5 = vld [vmem:[%s10261_s1 + $0x678] sm:$0xff]  ;;  %v7642_v11 = vld [vmem:[%s10261_s1 + $0x6f0] sm:$0xff] }
 0x1b3   : > { %3876 = vmatpush.bf16.msrb.mxu1 %v7627_v5  ;;  %3935 = vmatpush.bf16.msrb.mxu3 %v7642_v11  ;;  %v5760_v5 = vld [vmem:[%s8331_s27 + $0x2d0] sm:$0xf0]  ;;  %v5902_v11 = vld [vmem:[%s8331_s27 + $0x360] sm:$0xf] }
 0x1b4   : > { %v3490_v15 = vadd.f32 %v3489_v8, %v3461_v14  ;;  %3855 = vmatmul.bf16.vlgmr.msrb.gmra.mxu0 %v5519_v29  ;;  %v7626_v14 = vld [vmem:[%s10261_s1 + $0x670] sm:$0xff] }
 0x1b6   : > { %v9269_v55 = vadd.f32 %v9163_v16, %v3490_v15  ;;  %v5879_v16 = vor.u32 %v7413_v2, %v5878_v34  ;;  %v5640_v34 = vld [vmem:[%s8331_s27 + $0x1d8] sm:$0xf0] }
 0x1b7   : > { %v3491_v13 = vpop.f32.mrf.mxu3  ;;  %3877 = vmatpush.bf16.msrb.mxu1 %v7626_v14  ;;  %v5768_v14 = vld [vmem:[%s8331_s27 + $0x2d8] sm:$0xf0] }
 0x1b9   : > { %v3462_v28 = vpop.f32.mrf.mxu2  ;;  %v3436_v9 = vpop.f32.mrf.mxu1 }
 0x1ba   : > { %v3463_v36 = vadd.f32 %v3462_v28, %v3434_v31  ;;  %v3437_v38 = vadd.f32 %v3436_v9, %v9113_v25  ;;  %v9282_v62 = vpop.f32.mrf.mxu0  ;;  %v7384_v28 = vld [vmem:[%s8331_s27 + $0x2dc] sm:$0xf0]  ;;  %v7651_v9 = vld [vmem:[%s10261_s1 + $0x738] sm:$0xff] }
 0x1bb   : > { %3878 = vmatpush.bf16.msrb.mxu1 %v7625_v60  ;;  %3963 = vmatpush.bf16.msra.mxu0 %v7651_v9  ;;  %v5771_v60 = vor.u32 %v7367_v6, %v5768_v14  ;;  %v7304_v14 = vld [vmem:[%s8331_s27 + $0x64] sm:$0xf] }
 0x1bc   : > { %v3492_v24 = vadd.f32 %v3491_v13, %v3463_v36  ;;  %3667 = vmatmul.bf16.gmra.mxu1 %v5875_v54  ;;  %3725 = vmatmul.bf16.gmra.mxu3 %v5883_v35  ;;  %v5774_v13 = vld [vmem:[%s8331_s27 + $0x260] sm:$0xf]  ;;  %v5638_v54 = vld [vmem:[%s8331_s27 + $0x158] sm:$0xf] }
 0x1bd   : > { %v7351_v35 = vld [vmem:[%s8331_s27 + $0x1d4] sm:$0xf0]  ;;  %v5775_v36 = vor.u32 %v7384_v28, %v5774_v13 }
 0x1be   : > { %v9280_v39 = vadd.f32 %v9194_v1, %v3492_v24  ;;  %3696 = vmatmul.bf16.gmra.mxu2 %v5879_v16  ;;  %v5504_v1 = vld [vmem:[%s8331_s27 + $0xd0] sm:$0xf0]  ;;  %v5635_v24 = vor.u32 %v7334_v18, %v5632_v20  ;;  %v7647_v18 = vld [vmem:[%s10261_s1 + $0x718] sm:$0xff] }
 0x1bf   : > { %v3494_v40 = vpop.f32.mrf.mxu3  ;;  %v5507_v61 = vor.u32 %v7302_v23, %v5504_v1  ;;  %v7623_v1 = vld [vmem:[%s10261_s1 + $0x658] sm:$0xff]  ;;  %3964 = vmatpush.bf16.msra.mxu0 %v7650_v50 }
 0x1c1   : > { %v3465_v41 = vpop.f32.mrf.mxu2  ;;  %v3438_v47 = vpop.f32.mrf.mxu1 }
 0x1c2   : > { %v3466_v44 = vadd.f32 %v3465_v41, %v3437_v38  ;;  %v3439_v25 = vadd.f32 %v3438_v47, %v9133_v21  ;;  %v9294_v56 = vpop.f32.mrf.mxu0  ;;  %v7632_v41 = vld [vmem:[%s10261_s1 + $0x6a0] sm:$0xff] }
 0x1c3   : > { %3965 = vmatpush.bf16.msra.mxu0 %v7649_v59 }
 0x1c4   : > { %v3495_v49 = vadd.f32 %v3494_v40, %v3466_v44  ;;  %3860 = vmatmul.bf16.gmra.mxu0 %v5647_v57  ;;  %v7624_v40 = vld [vmem:[%s10261_s1 + $0x660] sm:$0xff]  ;;  %v7639_v57 = vld [vmem:[%s10261_s1 + $0x6d8] sm:$0xff] }
 0x1c5   : > { %v7640_v44 = vld [vmem:[%s10261_s1 + $0x6e0] sm:$0xff]  ;;  %3879 = vmatpush.bf16.msrb.mxu1 %v7624_v40 }
 0x1c6   : > { %v9289_v10 = vadd.f32 %v9231_v45, %v3495_v49  ;;  %v5639_v49 = vor.u32 %v7351_v35, %v5638_v54 }
 0x1c7   : > { %v3496_v37 = vpop.f32.mrf.mxu3 }
 0x1c9   : > { %v3467_v46 = vpop.f32.mrf.mxu2  ;;  %v3537_v3 = vpop.f32.mrf.mxu1  ;;  %3880 = vmatpush.bf16.msrb.mxu1 %v7623_v1  ;;  %v7399_v1 = vld [vmem:[%s8331_s27 + $0x35c] sm:$0xf] }
 0x1ca   : > { %v3468_v21 = vadd.f32 %v3467_v46, %v3439_v25  ;;  %v3538_v4 = vadd.f32 %v3537_v3, %v9160_v0  ;;  %v9311_v0 = vpop.f32.mrf.mxu0  ;;  %v7630_v46 = vld [vmem:[%s10261_s1 + $0x690] sm:$0xff] }
 0x1cc   : > { %v3497_v45 = vadd.f32 %v3496_v37, %v3468_v21  ;;  %3768 = vmatmul.bf16.vlgmr.msra.gmra.mxu1 %v5507_v61  ;;  %3826 = vmatmul.bf16.vlgmr.msra.gmra.mxu3 %v5515_v43  ;;  %v7622_v37 = vld [vmem:[%s10261_s1 + $0x650] sm:$0xff] }
 0x1cd   : > { %v7638_v61 = vld [vmem:[%s10261_s1 + $0x6d0] sm:$0xff]  ;;  %3881 = vmatpush.bf16.msrb.mxu1 %v7622_v37 }
 0x1ce   : > { %v9309_v58 = vadd.f32 %v9256_v42, %v3497_v45  ;;  %3797 = vmatmul.bf16.vlgmr.msra.gmra.mxu2 %v5511_v48  ;;  %v7634_v42 = vld [vmem:[%s10261_s1 + $0x6b0] sm:$0xff]  ;;  %v7648_v48 = vld [vmem:[%s10261_s1 + $0x720] sm:$0xff] }
 0x1cf   : > { %v3595_v8 = vpop.f32.mrf.mxu3  ;;  %3906 = vmatpush.bf16.msrb.mxu2 %v7634_v42  ;;  %v7366_v45 = vld [vmem:[%s8331_s27 + $0x254] sm:$0xf]  ;;  %3966 = vmatpush.bf16.msra.mxu0 %v7648_v48 }
 0x1d1   : > { %v3566_v63 = vpop.f32.mrf.mxu2  ;;  %v3539_v12 = vpop.f32.mrf.mxu1  ;;  %3882 = vmatpush.bf16.msrb.mxu1 %v7621_v7 }
 0x1d2   : > { %v3567_v31 = vadd.f32 %v3566_v63, %v3538_v4  ;;  %v3540_v15 = vadd.f32 %v3539_v12, %v9192_v19  ;;  %v7641_v19 = vld [vmem:[%s10261_s1 + $0x6e8] sm:$0xff]  ;;  %v9339_v2 = vpop.f32.mrf.mxu0  ;;  %v5766_v12 = vld [vmem:[%s8331_s27 + $0x258] sm:$0xf] }
 0x1d3   : > { %3907 = vmatpush.bf16.msrb.mxu2 %v7633_v26  ;;  %3936 = vmatpush.bf16.msrb.mxu3 %v7641_v19  ;;  %v7620_v26 = vld [vmem:[%s10261_s1 + $0x640] sm:$0xff] }
 0x1d4   : > { %v3596_v53 = vadd.f32 %v3595_v8, %v3567_v31  ;;  %3865 = vmatmul.bf16.gmra.mxu0 %v5775_v36  ;;  %v7637_v8 = vld [vmem:[%s10261_s1 + $0x6c8] sm:$0xff]  ;;  %v7416_v31 = vld [vmem:[%s8331_s27 + $0x3dc] sm:$0xf0]  ;;  %v7646_v36 = vld [vmem:[%s10261_s1 + $0x710] sm:$0xff] }
 0x1d5   : > { %v7628_v19 = vld [vmem:[%s10261_s1 + $0x680] sm:$0xff]  ;;  %3967 = vmatpush.bf16.msra.mxu0 %v7647_v18  ;;  %3883 = vmatpush.bf16.msrb.mxu1 %v7620_v26 }
 0x1d6   : > { %v9336_v29 = vadd.f32 %v9274_v27, %v3596_v53  ;;  %v5643_v27 = vor.u32 %v7335_v22, %v5640_v34  ;;  %v5903_v53 = vor.u32 %v7416_v31, %v5902_v11  ;;  %v7636_v34 = vld [vmem:[%s10261_s1 + $0x6c0] sm:$0xff]  ;;  %v5662_v11 = vld [vmem:[%s8331_s27 + $0x170] sm:$0xf] }
 0x1d7   : > { %v3597_v16 = vpop.f32.mrf.mxu3  ;;  %3908 = vmatpush.bf16.msrb.mxu2 %v7632_v41  ;;  %3937 = vmatpush.bf16.msrb.mxu3 %v7640_v44  ;;  %v7644_v44 = vld [vmem:[%s10261_s1 + $0x700] sm:$0xff]  ;;  %v7354_v31 = vld [vmem:[%s8331_s27 + $0x1ec] sm:$0xf0] }
 0x1d8   : > { %v5663_v18 = vor.u32 %v7354_v31, %v5662_v11  ;;  %v7655_v11 = vld [vmem:[%s10261_s1 + $0x758] sm:$0xff] }
 0x1d9   : > { %v3568_v38 = vpop.f32.mrf.mxu2  ;;  %v3542_v25 = vpop.f32.mrf.mxu1  ;;  %3968 = vmatpush.bf16.msra.mxu0 %v7646_v36  ;;  %v7667_v36 = vld [vmem:[%s10261_s1 + $0x7b8] sm:$0xff] }
 0x1da   : > { %v3569_v47 = vadd.f32 %v3568_v38, %v3540_v15  ;;  %v3543_v23 = vadd.f32 %v3542_v25, %v9228_v32  ;;  %v9370_v30 = vpop.f32.mrf.mxu0  ;;  %v7383_v15 = vld [vmem:[%s8331_s27 + $0x2d4] sm:$0xf0]  ;;  %v7398_v25 = vld [vmem:[%s8331_s27 + $0x354] sm:$0xf] }
 0x1db   : > { %3909 = vmatpush.bf16.msrb.mxu2 %v7631_v52  ;;  %3938 = vmatpush.bf16.msrb.mxu3 %v7639_v57  ;;  %v5767_v54 = vor.u32 %v7383_v15, %v5766_v12  ;;  %v5896_v52 = vld [vmem:[%s8331_s27 + $0x3d8] sm:$0xf0]  ;;  %v7305_v15 = vld [vmem:[%s8331_s27 + $0x6c] sm:$0xf] }
 0x1dc   : > { %v3598_v51 = vadd.f32 %v3597_v16, %v3569_v47  ;;  %3773 = vmatmul.bf16.gmra.mxu1 %v5635_v24  ;;  %3831 = vmatmul.bf16.gmra.mxu3 %v5643_v27  ;;  %v7663_v31 = vld [vmem:[%s10261_s1 + $0x798] sm:$0xff] }
 0x1de   : > { %v9368_v32 = vadd.f32 %v9282_v62, %v3598_v51  ;;  %3802 = vmatmul.bf16.gmra.mxu2 %v5639_v49  ;;  %v5534_v49 = vld [vmem:[%s8331_s27 + $0x70] sm:$0xf]  ;;  %v5888_v51 = vld [vmem:[%s8331_s27 + $0x3d0] sm:$0xf0] }
 0x1df   : > { %v3600_v17 = vpop.f32.mrf.mxu3  ;;  %3910 = vmatpush.bf16.msrb.mxu2 %v7630_v46  ;;  %3939 = vmatpush.bf16.msrb.mxu3 %v7638_v61  ;;  %v5891_v46 = vor.u32 %v7398_v25, %v5888_v51  ;;  %v5899_v61 = vor.u32 %v7399_v1, %v5896_v52  ;;  %v7337_v51 = vld [vmem:[%s8331_s27 + $0x16c] sm:$0xf] }
 0x1e0   : > { %v7657_v1 = vld [vmem:[%s10261_s1 + $0x768] sm:$0xff] }
 0x1e1   : > { %v3571_v62 = vpop.f32.mrf.mxu2  ;;  %v3544_v21 = vpop.f32.mrf.mxu1  ;;  %v7665_v52 = vld [vmem:[%s10261_s1 + $0x7a8] sm:$0xff] }
 0x1e2   : > { %v3572_v43 = vadd.f32 %v3571_v62, %v3543_v23  ;;  %v3545_v3 = vadd.f32 %v3544_v21, %v9254_v33  ;;  %v7629_v33 = vld [vmem:[%s10261_s1 + $0x688] sm:$0xff]  ;;  %v9407_v42 = vpop.f32.mrf.mxu0  ;;  %v7322_v23 = vld [vmem:[%s8331_s27 + $0xec] sm:$0xf0] }
 0x1e3   : > { %3911 = vmatpush.bf16.msrb.mxu2 %v7629_v33  ;;  %3940 = vmatpush.bf16.msrb.mxu3 %v7637_v8  ;;  %v5535_v59 = vor.u32 %v7322_v23, %v5534_v49  ;;  %v7336_v49 = vld [vmem:[%s8331_s27 + $0x164] sm:$0xf] }
 0x1e4   : > { %v3601_v4 = vadd.f32 %v3600_v17, %v3572_v43  ;;  %3870 = vmatmul.bf16.gmra.mxu0 %v5903_v53  ;;  %v5894_v17 = vld [vmem:[%s8331_s27 + $0x358] sm:$0xf]  ;;  %v5528_v53 = vld [vmem:[%s8331_s27 + $0xe8] sm:$0xf0]  ;;  %v5648_v23 = vld [vmem:[%s8331_s27 + $0x1e0] sm:$0xf0] }
 0x1e6   : > { %v9404_v63 = vadd.f32 %v9294_v56, %v3601_v4  ;;  %v5763_v56 = vor.u32 %v7366_v45, %v5760_v5 }
 0x1e7   : > { %v3602_v20 = vpop.f32.mrf.mxu3  ;;  %3912 = vmatpush.bf16.msrb.mxu2 %v7628_v19  ;;  %3941 = vmatpush.bf16.msrb.mxu3 %v7636_v34  ;;  %v5531_v34 = vor.u32 %v7305_v15, %v5528_v53  ;;  %v7654_v53 = vld [vmem:[%s10261_s1 + $0x750] sm:$0xff] }
 0x1e9   : > { %v3573_v22 = vpop.f32.mrf.mxu2  ;;  %v3547_v28 = vpop.f32.mrf.mxu1 }
 0x1ea   : > { %v3574_v13 = vadd.f32 %v3573_v22, %v3545_v3  ;;  %v3548_v35 = vadd.f32 %v3547_v28, %v9269_v55  ;;  %v9432_v38 = vpop.f32.mrf.mxu0  ;;  %v7645_v55 = vld [vmem:[%s10261_s1 + $0x708] sm:$0xff] }
 0x1eb   : > { %3969 = vmatpush.bf16.msra.mxu0 %v7645_v55  ;;  %v7321_v22 = vld [vmem:[%s8331_s27 + $0xe4] sm:$0xf0]  ;;  %4021 = vmatpush.bf16.msra.mxu2 %v7667_v36  ;;  %v5784_v36 = vld [vmem:[%s8331_s27 + $0x2e8] sm:$0xf0] }
 0x1ec   : > { %v3603_v9 = vadd.f32 %v3602_v20, %v3574_v13  ;;  %3778 = vmatmul.bf16.gmra.mxu1 %v5763_v56  ;;  %3836 = vmatmul.bf16.gmra.mxu3 %v5771_v60  ;;  %v5526_v20 = vld [vmem:[%s8331_s27 + $0x68] sm:$0xf] }
 0x1ed   : > { %v5527_v28 = vor.u32 %v7321_v22, %v5526_v20  ;;  %v7670_v20 = vld [vmem:[%s10261_s1 + $0x7d0] sm:$0xff] }
 0x1ee   : > { %v9430_v16 = vadd.f32 %v9311_v0, %v3603_v9  ;;  %3807 = vmatmul.bf16.gmra.mxu2 %v5767_v54  ;;  %v7675_v9 = vld [vmem:[%s10261_s1 + $0x7f8] sm:$0xff] }
 0x1ef   : > { %v3605_v24 = vpop.f32.mrf.mxu3  ;;  %3970 = vmatpush.bf16.msra.mxu0 %v7644_v44  ;;  %4050 = vmatpush.bf16.msra.mxu3 %v7675_v9  ;;  %v5918_v9 = vld [vmem:[%s8331_s27 + $0x370] sm:$0xf] }
 0x1f1   : > { %v3576_v27 = vpop.f32.mrf.mxu2  ;;  %v3549_v41 = vpop.f32.mrf.mxu1 }
 0x1f2   : > { %v3577_v40 = vadd.f32 %v3576_v27, %v3548_v35  ;;  %v3550_v0 = vadd.f32 %v3549_v41, %v9280_v39  ;;  %v9450_v57 = vpop.f32.mrf.mxu0  ;;  %v7415_v39 = vld [vmem:[%s8331_s27 + $0x3d4] sm:$0xf0]  ;;  %v7674_v41 = vld [vmem:[%s10261_s1 + $0x7f0] sm:$0xff] }
 0x1f3   : > { %v7659_v35 = vld [vmem:[%s10261_s1 + $0x778] sm:$0xff]  ;;  %4051 = vmatpush.bf16.msra.mxu3 %v7674_v41 }
 0x1f4   : > { %v3606_v47 = vadd.f32 %v3605_v24, %v3577_v40  ;;  %3971 = vmatmul.bf16.vlgmr.msra.gmra.mxu0 %v5535_v59  ;;  %3992 = vmatpush.bf16.msra.mxu1 %v7659_v35  ;;  %v7658_v40 = vld [vmem:[%s10261_s1 + $0x770] sm:$0xff] }
 0x1f6   : > { %v9445_v50 = vadd.f32 %v9339_v2, %v3606_v47  ;;  %v5895_v2 = vor.u32 %v7415_v39, %v5894_v17  ;;  %v5656_v17 = vld [vmem:[%s8331_s27 + $0x1e8] sm:$0xf0]  ;;  %v5790_v39 = vld [vmem:[%s8331_s27 + $0x270] sm:$0xf] }
 0x1f7   : > { %v3607_v62 = vpop.f32.mrf.mxu3 }
 0x1f8   : > { %3993 = vmatpush.bf16.msra.mxu1 %v7658_v40  ;;  %v7385_v40 = vld [vmem:[%s8331_s27 + $0x2e4] sm:$0xf0] }
 0x1f9   : > { %v3578_v37 = vpop.f32.mrf.mxu2  ;;  %v3552_v21 = vpop.f32.mrf.mxu1 }
 0x1fa   : > { %v3579_v43 = vadd.f32 %v3578_v37, %v3550_v0  ;;  %v3553_v3 = vadd.f32 %v3552_v21, %v9289_v10  ;;  %v9458_v45 = vpop.f32.mrf.mxu0  ;;  %v5654_v37 = vld [vmem:[%s8331_s27 + $0x168] sm:$0xf] }
 0x1fc   : > { %v3608_v48 = vadd.f32 %v3607_v62, %v3579_v43  ;;  %3783 = vmatmul.bf16.gmra.mxu1 %v5891_v46  ;;  %3841 = vmatmul.bf16.gmra.mxu3 %v5899_v61  ;;  %v7386_v62 = vld [vmem:[%s8331_s27 + $0x2ec] sm:$0xf0]  ;;  %v7353_v46 = vld [vmem:[%s8331_s27 + $0x1e4] sm:$0xf0] }
 0x1fd   : > { %3994 = vmatpush.bf16.msra.mxu1 %v7657_v1  ;;  %v5791_v61 = vor.u32 %v7386_v62, %v5790_v39 }
 0x1fe   : > { %v9456_v4 = vadd.f32 %v9370_v30, %v3608_v48  ;;  %3812 = vmatmul.bf16.gmra.mxu2 %v5895_v2  ;;  %v5520_v30 = vld [vmem:[%s8331_s27 + $0xe0] sm:$0xf0]  ;;  %v5651_v2 = vor.u32 %v7336_v49, %v5648_v23 }
 0x1ff   : > { %v3610_v5 = vpop.f32.mrf.mxu3  ;;  %v5523_v19 = vor.u32 %v7304_v14, %v5520_v30  ;;  %v7656_v48 = vld [vmem:[%s10261_s1 + $0x760] sm:$0xff] }
 0x200   : > { %v7668_v49 = vld [vmem:[%s10261_s1 + $0x7c0] sm:$0xff] }
 0x201   : > { %v3581_v6 = vpop.f32.mrf.mxu2  ;;  %v3554_v33 = vpop.f32.mrf.mxu1  ;;  %3995 = vmatpush.bf16.msra.mxu1 %v7656_v48  ;;  %v5912_v48 = vld [vmem:[%s8331_s27 + $0x3e8] sm:$0xf0] }
 0x202   : > { %v3582_v7 = vadd.f32 %v3581_v6, %v3553_v3  ;;  %v3555_v10 = vadd.f32 %v3554_v33, %v9309_v58  ;;  %v9472_v56 = vpop.f32.mrf.mxu0  ;;  %v5659_v3 = vor.u32 %v7337_v51, %v5656_v17  ;;  %v5655_v33 = vor.u32 %v7353_v46, %v5654_v37 }
 0x204   : > { %v3611_v8 = vadd.f32 %v3610_v5, %v3582_v7  ;;  %3976 = vmatmul.bf16.gmra.mxu0 %v5663_v18  ;;  %v7672_v5 = vld [vmem:[%s10261_s1 + $0x7e0] sm:$0xff]  ;;  %v7662_v18 = vld [vmem:[%s10261_s1 + $0x790] sm:$0xff] }
 0x205   : > { %3996 = vmatpush.bf16.msra.mxu1 %v7655_v11 }
 0x206   : > { %v9465_v12 = vadd.f32 %v9407_v42, %v3611_v8 }
 0x207   : > { %v3612_v60 = vpop.f32.mrf.mxu3 }
 0x209   : > { %v3583_v26 = vpop.f32.mrf.mxu2  ;;  %v3653_v13 = vpop.f32.mrf.mxu1  ;;  %3997 = vmatpush.bf16.msra.mxu1 %v7654_v53 }
 0x20a   : > { %v3584_v58 = vadd.f32 %v3583_v26, %v3555_v10  ;;  %v3654_v54 = vadd.f32 %v3653_v13, %v9336_v29  ;;  %v9487_v27 = vpop.f32.mrf.mxu0  ;;  %v7369_v13 = vld [vmem:[%s8331_s27 + $0x26c] sm:$0xf] }
 0x20c   : > { %v3613_v42 = vadd.f32 %v3612_v60, %v3584_v58  ;;  %3884 = vmatmul.bf16.vlgmr.msrb.gmra.mxu1 %v5523_v19  ;;  %3942 = vmatmul.bf16.vlgmr.msrb.gmra.mxu3 %v5531_v34  ;;  %v7368_v34 = vld [vmem:[%s8331_s27 + $0x264] sm:$0xf] }
 0x20d   : > { %v5776_v58 = vld [vmem:[%s8331_s27 + $0x2e0] sm:$0xf0] }
 0x20e   : > { %v9485_v55 = vadd.f32 %v9432_v38, %v3613_v42  ;;  %3913 = vmatmul.bf16.vlgmr.msrb.gmra.mxu2 %v5527_v28  ;;  %v7666_v38 = vld [vmem:[%s10261_s1 + $0x7b0] sm:$0xff]  ;;  %v7661_v42 = vld [vmem:[%s10261_s1 + $0x788] sm:$0xff] }
 0x20f   : > { %v3711_v29 = vpop.f32.mrf.mxu3  ;;  %4022 = vmatpush.bf16.msra.mxu2 %v7666_v38 }
 0x211   : > { %v3682_v24 = vpop.f32.mrf.mxu2  ;;  %v3655_v44 = vpop.f32.mrf.mxu1 }
 0x212   : > { %v3683_v0 = vadd.f32 %v3682_v24, %v3654_v54  ;;  %v3656_v47 = vadd.f32 %v3655_v44, %v9368_v32  ;;  %v7673_v32 = vld [vmem:[%s10261_s1 + $0x7e8] sm:$0xff]  ;;  %v9529_v8 = vpop.f32.mrf.mxu0  ;;  %v5779_v44 = vor.u32 %v7368_v34, %v5776_v58  ;;  %v7307_v58 = vld [vmem:[%s8331_s27 + $0x7c] sm:$0xf] }
 0x213   : > { %4023 = vmatpush.bf16.msra.mxu2 %v7665_v52  ;;  %4052 = vmatpush.bf16.msra.mxu3 %v7673_v32  ;;  %v7653_v54 = vld [vmem:[%s10261_s1 + $0x748] sm:$0xff] }
 0x214   : > { %v3712_v25 = vadd.f32 %v3711_v29, %v3683_v0  ;;  %3981 = vmatmul.bf16.gmra.mxu0 %v5791_v61  ;;  %v7418_v29 = vld [vmem:[%s8331_s27 + $0x3ec] sm:$0xf0]  ;;  %v5782_v24 = vld [vmem:[%s8331_s27 + $0x268] sm:$0xf]  ;;  %3998 = vmatpush.bf16.msra.mxu1 %v7653_v54  ;;  %v5542_v54 = vld [vmem:[%s8331_s27 + $0x78] sm:$0xf] }
 0x215   : > { %v5919_v38 = vor.u32 %v7418_v29, %v5918_v9  ;;  %v5783_v1 = vor.u32 %v7385_v40, %v5782_v24 }
 0x216   : > { %v9512_v59 = vadd.f32 %v9450_v57, %v3712_v25  ;;  %v7664_v57 = vld [vmem:[%s10261_s1 + $0x7a0] sm:$0xff] }
 0x217   : > { %v3713_v43 = vpop.f32.mrf.mxu3  ;;  %4024 = vmatpush.bf16.msra.mxu2 %v7664_v57  ;;  %4053 = vmatpush.bf16.msra.mxu3 %v7672_v5  ;;  %v7652_v25 = vld [vmem:[%s10261_s1 + $0x740] sm:$0xff]  ;;  %v5910_v57 = vld [vmem:[%s8331_s27 + $0x368] sm:$0xf] }
 0x218   : > { %3999 = vmatpush.bf16.msra.mxu1 %v7652_v25  ;;  %v7417_v5 = vld [vmem:[%s8331_s27 + $0x3e4] sm:$0xf0] }
 0x219   : > { %v3684_v21 = vpop.f32.mrf.mxu2  ;;  %v3658_v7 = vpop.f32.mrf.mxu1 }
 0x21a   : > { %v3685_v6 = vadd.f32 %v3684_v21, %v3656_v47  ;;  %v3659_v10 = vadd.f32 %v3658_v7, %v9404_v63  ;;  %v7671_v63 = vld [vmem:[%s10261_s1 + $0x7d8] sm:$0xff]  ;;  %v9555_v28 = vpop.f32.mrf.mxu0  ;;  %v5787_v47 = vor.u32 %v7369_v13, %v5784_v36 }
 0x21b   : > { %4025 = vmatpush.bf16.msra.mxu2 %v7663_v31  ;;  %4054 = vmatpush.bf16.msra.mxu3 %v7671_v63  ;;  %v5544_v13 = vld [vmem:[%s8331_s27 + $0xf8] sm:$0xf0] }
 0x21c   : > { %v9531_v14 = vadd.f32 %v3713_v43, %v3685_v6  ;;  %3889 = vmatmul.bf16.gmra.mxu1 %v5651_v2  ;;  %3947 = vmatmul.bf16.gmra.mxu3 %v5659_v3  ;;  %v7400_v43 = vld [vmem:[%s8331_s27 + $0x364] sm:$0xf]  ;;  %v7401_v3 = vld [vmem:[%s8331_s27 + $0x36c] sm:$0xf]  ;;  %v5547_v29 = vor.u32 %v7307_v58, %v5544_v13 }
 0x21d   : > { %v5904_v2 = vld [vmem:[%s8331_s27 + $0x3e0] sm:$0xf0] }
 0x21e   : > { %3918 = vmatmul.bf16.gmra.mxu2 %v5655_v33  ;;  %v5907_v33 = vor.u32 %v7400_v43, %v5904_v2 }
 0x21f   : > { %v3716_v30 = vpop.f32.mrf.mxu3  ;;  %4026 = vmatpush.bf16.msra.mxu2 %v7662_v18  ;;  %4055 = vmatpush.bf16.msra.mxu3 %v7670_v20 }
 0x221   : > { %v3687_v15 = vpop.f32.mrf.mxu2  ;;  %v3660_v60 = vpop.f32.mrf.mxu1 }
 0x222   : > { %v3688_v22 = vadd.f32 %v3687_v15, %v3659_v10  ;;  %v3661_v26 = vadd.f32 %v3660_v60, %v9430_v16  ;;  %v7669_v16 = vld [vmem:[%s10261_s1 + $0x7c8] sm:$0xff]  ;;  %v3755_v17 = vpop.f32.mrf.mxu0  ;;  %v5915_v10 = vor.u32 %v7401_v3, %v5912_v48 }
 0x223   : > { %4027 = vmatpush.bf16.msra.mxu2 %v7661_v42  ;;  %4056 = vmatpush.bf16.msra.mxu3 %v7669_v16  ;;  %v7323_v42 = vld [vmem:[%s8331_s27 + $0xf4] sm:$0xf0] }
 0x224   : > { %v3717_v19 = vadd.f32 %v3716_v30, %v3688_v22  ;;  %3986 = vmatmul.bf16.gmra.mxu0 %v5919_v38  ;;  %v5543_v38 = vor.u32 %v7323_v42, %v5542_v54 }
 0x226   : > { %v9567_v35 = vadd.f32 %v9472_v56, %v3717_v19  ;;  %v7660_v56 = vld [vmem:[%s10261_s1 + $0x780] sm:$0xff]  ;;  %v7306_v19 = vld [vmem:[%s8331_s27 + $0x74] sm:$0xf] }
 0x227   : > { %v3718_v41 = vpop.f32.mrf.mxu3  ;;  %4028 = vmatpush.bf16.msra.mxu2 %v7660_v56  ;;  %4057 = vmatpush.bf16.msra.mxu3 %v7668_v49 }
 0x229   : > { %v3689_v0 = vpop.f32.mrf.mxu2  ;;  %v3663_v51 = vpop.f32.mrf.mxu1 }
 0x22a   : > { %v3690_v23 = vadd.f32 %v3689_v0, %v3661_v26  ;;  %v3664_v52 = vadd.f32 %v3663_v51, %v9445_v50  ;;  %v9596_v11 = vpop.f32.mrf.mxu0  ;;  %v7338_v51 = vld [vmem:[%s8331_s27 + $0x174] sm:$0xf] }
 0x22c   : > { %v9584_v32 = vadd.f32 %v3718_v41, %v3690_v23  ;;  %3894 = vmatmul.bf16.gmra.mxu1 %v5779_v44  ;;  %3952 = vmatmul.bf16.gmra.mxu3 %v5787_v47  ;;  %v3743_v47 = vadd.f32 %v9458_v45, %v9531_v14 }
 0x22e   : > { %3923 = vmatmul.bf16.gmra.mxu2 %v5783_v1 }
 0x22f   : > { %v3721_v39 = vpop.f32.mrf.mxu3 }
 0x231   : > { %v3692_v62 = vpop.f32.mrf.mxu2  ;;  %v3665_v46 = vpop.f32.mrf.mxu1 }
 0x232   : > { %v3693_v37 = vadd.f32 %v3692_v62, %v3664_v52  ;;  %v3666_v50 = vadd.f32 %v3665_v46, %v9456_v4  ;;  %v5911_v4 = vor.u32 %v7417_v5, %v5910_v57  ;;  %v3856_v60 = vpop.f32.mrf.mxu0  ;;  %v5664_v52 = vld [vmem:[%s8331_s27 + $0x1f0] sm:$0xf0]  ;;  %v5670_v62 = vld [vmem:[%s8331_s27 + $0x178] sm:$0xf] }
 0x233   : > { %v5667_v43 = vor.u32 %v7338_v51, %v5664_v52 }
 0x234   : > { %v3722_v61 = vadd.f32 %v3721_v39, %v3693_v37  ;;  %v5672_v39 = vld [vmem:[%s8331_s27 + $0x1f8] sm:$0xf0]  ;;  %v7355_v37 = vld [vmem:[%s8331_s27 + $0x1f4] sm:$0xf0] }
 0x235   : > { %v5671_v14 = vor.u32 %v7355_v37, %v5670_v62 }
 0x236   : > { %v9589_v21 = vadd.f32 %v9529_v8, %v3722_v61 }
 0x237   : > { %v3723_v6 = vpop.f32.mrf.mxu3 }
 0x239   : > { %v3694_v7 = vpop.f32.mrf.mxu2  ;;  %v3668_v63 = vpop.f32.mrf.mxu1 }
 0x23a   : > { %v3695_v31 = vadd.f32 %v3694_v7, %v3666_v50  ;;  %v3669_v8 = vadd.f32 %v3668_v63, %v9465_v12  ;;  %v5536_v12 = vld [vmem:[%s8331_s27 + $0xf0] sm:$0xf0]  ;;  %v9613_v0 = vpop.f32.mrf.mxu0 }
 0x23b   : > { %v5539_v9 = vor.u32 %v7306_v19, %v5536_v12 }
 0x23c   : > { %v9599_v30 = vadd.f32 %v3723_v6, %v3695_v31  ;;  %3899 = vmatmul.bf16.gmra.mxu1 %v5907_v33  ;;  %3957 = vmatmul.bf16.gmra.mxu3 %v5915_v10  ;;  %v3748_v6 = vadd.f32 %v9487_v27, %v9584_v32 }
 0x23e   : > { %3928 = vmatmul.bf16.gmra.mxu2 %v5911_v4  ;;  %v7370_v4 = vld [vmem:[%s8331_s27 + $0x274] sm:$0xf] }
 0x23f   : > { %v3726_v15 = vpop.f32.mrf.mxu3 }
 0x241   : > { %v3697_v53 = vpop.f32.mrf.mxu2  ;;  %v3670_v20 = vpop.f32.mrf.mxu1 }
 0x242   : > { %v3698_v18 = vadd.f32 %v3697_v53, %v3669_v8  ;;  %v3671_v22 = vadd.f32 %v3670_v20, %v9485_v55  ;;  %v3861_v46 = vpop.f32.mrf.mxu0  ;;  %v7371_v53 = vld [vmem:[%s8331_s27 + $0x27c] sm:$0xf]  ;;  %v5798_v20 = vld [vmem:[%s8331_s27 + $0x278] sm:$0xf] }
 0x244   : > { %v3727_v26 = vadd.f32 %v3726_v15, %v3698_v18  ;;  %v5792_v15 = vld [vmem:[%s8331_s27 + $0x2f0] sm:$0xf0]  ;;  %v5800_v18 = vld [vmem:[%s8331_s27 + $0x2f8] sm:$0xf0] }
 0x245   : > { %v5795_v19 = vor.u32 %v7370_v4, %v5792_v15  ;;  %v5803_v12 = vor.u32 %v7371_v53, %v5800_v18 }
 0x246   : > { %v9603_v34 = vadd.f32 %v3755_v17, %v3727_v26  ;;  %v7339_v17 = vld [vmem:[%s8331_s27 + $0x17c] sm:$0xf] }
 0x247   : > { %v3728_v16 = vpop.f32.mrf.mxu3  ;;  %v5675_v2 = vor.u32 %v7339_v17, %v5672_v39 }
 0x249   : > { %v3699_v36 = vpop.f32.mrf.mxu2  ;;  %v3769_v40 = vpop.f32.mrf.mxu1 }
 0x24a   : > { %v3700_v24 = vadd.f32 %v3699_v36, %v3671_v22  ;;  %v3770_v55 = vadd.f32 %v3769_v40, %v9512_v59  ;;  %v9630_v33 = vpop.f32.mrf.mxu0  ;;  %v7387_v22 = vld [vmem:[%s8331_s27 + $0x2f4] sm:$0xf0]  ;;  %v3753_v36 = vadd.f32 %v9555_v28, %v9599_v30 }
 0x24b   : > { %v5799_v58 = vor.u32 %v7387_v22, %v5798_v20 }
 0x24c   : > { %v9611_v41 = vadd.f32 %v3728_v16, %v3700_v24  ;;  %4000 = vmatmul.bf16.vlgmr.msra.gmra.mxu1 %v5539_v9  ;;  %4058 = vmatmul.bf16.vlgmr.msra.gmra.mxu3 %v5547_v29 }
 0x24e   : > { %4029 = vmatmul.bf16.vlgmr.msra.gmra.mxu2 %v5543_v38 }
 0x24f   : > { %v3827_v44 = vpop.f32.mrf.mxu3 }
 0x251   : > { %v3798_v25 = vpop.f32.mrf.mxu2  ;;  %v3771_v49 = vpop.f32.mrf.mxu1 }
 0x252   : > { %v3799_v56 = vadd.f32 %v3798_v25, %v3770_v55  ;;  %v3772_v23 = vadd.f32 %v3771_v49, %v3743_v47  ;;  %v3866_v54 = vpop.f32.mrf.mxu0  ;;  %v7402_v55 = vld [vmem:[%s8331_s27 + $0x374] sm:$0xf]  ;;  %v7403_v25 = vld [vmem:[%s8331_s27 + $0x37c] sm:$0xf]  ;;  %v5926_v49 = vld [vmem:[%s8331_s27 + $0x378] sm:$0xf] }
 0x253   : > { %v5920_v47 = vld [vmem:[%s8331_s27 + $0x3f0] sm:$0xf0] }
 0x254   : > { %v3828_v59 = vadd.f32 %v3827_v44, %v3799_v56  ;;  %v5928_v56 = vld [vmem:[%s8331_s27 + $0x3f8] sm:$0xf0]  ;;  %v5923_v52 = vor.u32 %v7402_v55, %v5920_v47 }
 0x255   : > { %v5931_v17 = vor.u32 %v7403_v25, %v5928_v56 }
 0x256   : > { %v9618_v1 = vadd.f32 %v3856_v60, %v3828_v59 }
 0x257   : > { %v3829_v50 = vpop.f32.mrf.mxu3 }
 0x259   : > { %v3800_v61 = vpop.f32.mrf.mxu2  ;;  %v3774_v45 = vpop.f32.mrf.mxu1 }
 0x25a   : > { %v3801_v3 = vadd.f32 %v3800_v61, %v3772_v23  ;;  %v3775_v48 = vadd.f32 %v3774_v45, %v9567_v35  ;;  %v9645_v38 = vpop.f32.mrf.mxu0  ;;  %v7419_v23 = vld [vmem:[%s8331_s27 + $0x3f4] sm:$0xf0]  ;;  %v3758_v61 = vadd.f32 %v9596_v11, %v9611_v41 }
 0x25b   : > { %v5927_v30 = vor.u32 %v7419_v23, %v5926_v49 }
 0x25c   : > { %v9626_v57 = vadd.f32 %v3829_v50, %v3801_v3  ;;  %4005 = vmatmul.bf16.gmra.mxu1 %v5667_v43  ;;  %4063 = vmatmul.bf16.gmra.mxu3 %v5675_v2 }
 0x25e   : > { %4034 = vmatmul.bf16.gmra.mxu2 %v5671_v14  ;;  %v3859_v11 = vadd.f32 %v9613_v0, %v9626_v57 }
 0x25f   : > { %v3832_v5 = vpop.f32.mrf.mxu3 }
 0x261   : > { %v3803_v7 = vpop.f32.mrf.mxu2  ;;  %v3776_v31 = vpop.f32.mrf.mxu1 }
 0x262   : > { %v3804_v10 = vadd.f32 %v3803_v7, %v3775_v48  ;;  %v3777_v63 = vadd.f32 %v3776_v31, %v3748_v6 }
 0x264   : > { %v3833_v35 = vadd.f32 %v3832_v5, %v3804_v10 }
 0x266   : > { %v9633_v8 = vadd.f32 %v3861_v46, %v3833_v35  ;;  %v3871_v46 = vpop.f32.mrf.mxu0 }
 0x267   : > { %v3834_v60 = vpop.f32.mrf.mxu3 }
 0x269   : > { %v3805_v26 = vpop.f32.mrf.mxu2  ;;  %v3779_v32 = vpop.f32.mrf.mxu1 }
 0x26a   : > { %v3806_v27 = vadd.f32 %v3805_v26, %v3777_v63  ;;  %v3780_v13 = vadd.f32 %v3779_v32, %v9589_v21 }
 0x26c   : > { %v9641_v42 = vadd.f32 %v3834_v60, %v3806_v27  ;;  %4010 = vmatmul.bf16.gmra.mxu1 %v5795_v19  ;;  %4068 = vmatmul.bf16.gmra.mxu3 %v5803_v12 }
 0x26e   : > { %4039 = vmatmul.bf16.gmra.mxu2 %v5799_v58  ;;  %v9656_v7 = vpop.f32.mrf.mxu0  ;;  %v3864_v58 = vadd.f32 %v9630_v33, %v9641_v42 }
 0x26f   : > { %v3837_v16 = vpop.f32.mrf.mxu3 }
 0x271   : > { %v3808_v9 = vpop.f32.mrf.mxu2  ;;  %v3781_v24 = vpop.f32.mrf.mxu1 }
 0x272   : > { %v3809_v29 = vadd.f32 %v3808_v9, %v3780_v13  ;;  %v3782_v40 = vadd.f32 %v3781_v24, %v3753_v36 }
 0x274   : > { %v3838_v21 = vadd.f32 %v3837_v16, %v3809_v29 }
 0x276   : > { %v3867_v44 = vadd.f32 %v3866_v54, %v3838_v21  ;;  %v3972_v18 = vpop.f32.mrf.mxu0 }
 0x277   : > { %v3839_v59 = vpop.f32.mrf.mxu3 }
 0x279   : > { %v3810_v51 = vpop.f32.mrf.mxu2  ;;  %v3784_v28 = vpop.f32.mrf.mxu1 }
 0x27a   : > { %v3811_v39 = vadd.f32 %v3810_v51, %v3782_v40  ;;  %v3785_v62 = vadd.f32 %v3784_v28, %v9603_v34 }
 0x27c   : > { %v3840_v37 = vadd.f32 %v3839_v59, %v3811_v39  ;;  %4015 = vmatmul.bf16.gmra.mxu1 %v5923_v52  ;;  %4073 = vmatmul.bf16.gmra.mxu3 %v5931_v17 }
 0x27e   : > { %4044 = vmatmul.bf16.gmra.mxu2 %v5927_v30  ;;  %v3869_v47 = vadd.f32 %v9645_v38, %v3840_v37 }
 0x27f   : > { %v3842_v50 = vpop.f32.mrf.mxu3 }
 0x281   : > { %v3813_v43 = vpop.f32.mrf.mxu2  ;;  %v3786_v3 = vpop.f32.mrf.mxu1 }
 0x282   : > { %v3814_v2 = vadd.f32 %v3813_v43, %v3785_v62  ;;  %v3787_v45 = vadd.f32 %v3786_v3, %v3758_v61 }
 0x284   : > { %v3843_v14 = vadd.f32 %v3842_v50, %v3814_v2 }
 0x286   : > { %v3872_v48 = vadd.f32 %v3871_v46, %v3843_v14  ;;  %v3974_v46 = vpop.f32.mrf.mxu0 }
 0x287   : > { %v3844_v5 = vpop.f32.mrf.mxu3 }
 0x289   : > { %v3815_v6 = vpop.f32.mrf.mxu2  ;;  %v3885_v10 = vpop.f32.mrf.mxu1 }
 0x28a   : > { %v3816_v34 = vadd.f32 %v3815_v6, %v3787_v45  ;;  %v3886_v31 = vadd.f32 %v3885_v10, %v9618_v1 }
 0x28c   : > { %v9659_v63 = vadd.f32 %v3844_v5, %v3816_v34 }
 0x28e   : > { %v3977_v2 = vpop.f32.mrf.mxu0 }
 0x28f   : > { %v3943_v35 = vpop.f32.mrf.mxu3 }
 0x291   : > { %v3914_v41 = vpop.f32.mrf.mxu2  ;;  %v3887_v15 = vpop.f32.mrf.mxu1 }
 0x292   : > { %v3915_v4 = vadd.f32 %v3914_v41, %v3886_v31  ;;  %v3888_v53 = vadd.f32 %v3887_v15, %v3859_v11 }
 0x294   : > { %v3944_v20 = vadd.f32 %v3943_v35, %v3915_v4 }
 0x296   : > { %v3973_v22 = vadd.f32 %v3972_v18, %v3944_v20  ;;  %v3979_v11 = vpop.f32.mrf.mxu0 }
 0x297   : > { %v3945_v60 = vpop.f32.mrf.mxu3 }
 0x299   : > { %v3916_v26 = vpop.f32.mrf.mxu2  ;;  %v3890_v12 = vpop.f32.mrf.mxu1 }
 0x29a   : > { %v3917_v19 = vadd.f32 %v3916_v26, %v3888_v53  ;;  %v3891_v27 = vadd.f32 %v3890_v12, %v9633_v8 }
 0x29c   : > { %v3946_v1 = vadd.f32 %v3945_v60, %v3917_v19 }
 0x29e   : > { %v3975_v6 = vadd.f32 %v3974_v46, %v3946_v1 }
 0x29f   : > { %v3948_v32 = vpop.f32.mrf.mxu3 }
 0x2a1   : > { %v3919_v13 = vpop.f32.mrf.mxu2  ;;  %v3892_v57 = vpop.f32.mrf.mxu1 }
 0x2a2   : > { %v3920_v0 = vadd.f32 %v3919_v13, %v3891_v27  ;;  %v3893_v54 = vadd.f32 %v3892_v57, %v3864_v58 }
 0x2a4   : > { %v3949_v16 = vadd.f32 %v3948_v32, %v3920_v0 }
 0x2a6   : > { %v3978_v20 = vadd.f32 %v3977_v2, %v3949_v16 }
 0x2a7   : > { %v3950_v36 = vpop.f32.mrf.mxu3 }
 0x2a9   : > { %v3921_v9 = vpop.f32.mrf.mxu2  ;;  %v3895_v24 = vpop.f32.mrf.mxu1 }
 0x2aa   : > { %v3922_v29 = vadd.f32 %v3921_v9, %v3893_v54  ;;  %v3896_v40 = vadd.f32 %v3895_v24, %v3867_v44 }
 0x2ac   : > { %v3951_v21 = vadd.f32 %v3950_v36, %v3922_v29 }
 0x2ae   : > { %v3980_v60 = vadd.f32 %v3979_v11, %v3951_v21  ;;  %v4103_v11 = vld [vmem:[%s10263_s3 + $0x20] sm:$0xff] }
 0x2af   : > { %v3953_v55 = vpop.f32.mrf.mxu3 }
 0x2b1   : > { %v3924_v8 = vpop.f32.mrf.mxu2  ;;  %v3897_v56 = vpop.f32.mrf.mxu1 }
 0x2b2   : > { %v3925_v25 = vadd.f32 %v3924_v8, %v3896_v40  ;;  %v3898_v49 = vadd.f32 %v3897_v56, %v3869_v47  ;;  %v3874_v56 = vadd.f32 %v9656_v7, %v9659_v63  ;;  %v4099_v7 = vld [vmem:[%s10263_s3] sm:$0xff] }
 0x2b4   : > { %v3954_v23 = vadd.f32 %v3953_v55, %v3925_v25 }
 0x2b7   : > { %v3955_v33 = vpop.f32.mrf.mxu3 }
 0x2b9   : > { %v3926_v42 = vpop.f32.mrf.mxu2  ;;  %v3900_v51 = vpop.f32.mrf.mxu1 }
 0x2ba   : > { %v3927_v59 = vadd.f32 %v3926_v42, %v3898_v49  ;;  %v3901_v52 = vadd.f32 %v3900_v51, %v3872_v48 }
 0x2bc   : > { %v3956_v17 = vadd.f32 %v3955_v33, %v3927_v59 }
 0x2bf   : > { %v3958_v39 = vpop.f32.mrf.mxu3 }
 0x2c1   : > { %v3929_v28 = vpop.f32.mrf.mxu2  ;;  %v3902_v62 = vpop.f32.mrf.mxu1 }
 0x2c2   : > { %v3930_v30 = vadd.f32 %v3929_v28, %v3901_v52  ;;  %v3903_v42 = vadd.f32 %v3902_v62, %v3874_v56 }
 0x2c4   : > { %v3959_v44 = vadd.f32 %v3958_v39, %v3930_v30 }
 0x2c7   : > { %v3960_v50 = vpop.f32.mrf.mxu3 }
 0x2c9   : > { %v3931_v61 = vpop.f32.mrf.mxu2  ;;  %v4001_v38 = vpop.f32.mrf.mxu1 }
 0x2ca   : > { %v4002_v37 = vadd.f32 %v4001_v38, %v3973_v22  ;;  %v3982_v22 = vpop.f32.mrf.mxu0  ;;  %v3932_v52 = vadd.f32 %v3931_v61, %v3903_v42 }
 0x2cb   : > { %v3983_v24 = vadd.f32 %v3982_v22, %v3954_v23  ;;  %v4114_v22 = vld [vmem:[%s10263_s3 + $0x78] sm:$0xff] }
 0x2cc   : > { %v3961_v23 = vadd.f32 %v3960_v50, %v3932_v52 }
 0x2cf   : > { %v4059_v43 = vpop.f32.mrf.mxu3 }
 0x2d1   : > { %v4030_v3 = vpop.f32.mrf.mxu2  ;;  %v4003_v14 = vpop.f32.mrf.mxu1 }
 0x2d2   : > { %v4031_v45 = vadd.f32 %v4030_v3, %v4002_v37  ;;  %v4004_v48 = vadd.f32 %v4003_v14, %v3975_v6  ;;  %v3984_v54 = vpop.f32.mrf.mxu0  ;;  %v8116_v14 = vmov 0   ;;  %v4100_v6 = vld [vmem:[%s10263_s3 + $0x8] sm:$0xff] }
 0x2d3   : > { %v3985_v40 = vadd.f32 %v3984_v54, %v3956_v17  ;;  %7897 = vset.pattern.permute.xlu0 %v8116_v14  ;;  %7898 = vset.pattern.permute.xlu1 %v8116_v14  ;;  %v4325_v54 = vld [vmem:[%s10302_s17] sm:$0xff] }
 0x2d4   : > { %v9667_v5 = vadd.f32 %v4059_v43, %v4031_v45  ;;  %4117 = vperm.xlu0 %7897, %v4099_v7   ;;  %7899 = vset.pattern.permute.xlu2 %v8116_v14 }
 0x2d5   : > { %4137 = vperm.xlu2 %7899, %v4103_v11  }
 0x2d7   : > { %v4061_v34 = vpop.f32.mrf.mxu3 }
 0x2d9   : > { %v4032_v10 = vpop.f32.mrf.mxu2  ;;  %v4006_v35 = vpop.f32.mrf.mxu1 }
 0x2da   : > { %v4033_v31 = vadd.f32 %v4032_v10, %v4004_v48  ;;  %v4007_v26 = vadd.f32 %v4006_v35, %v3978_v20  ;;  %v3987_v8 = vpop.f32.mrf.mxu0  ;;  %v4101_v48 = vld [vmem:[%s10263_s3 + $0x10] sm:$0xff]  ;;  %v4102_v10 = vld [vmem:[%s10263_s3 + $0x18] sm:$0xff] }
 0x2db   : > { %v3988_v46 = vadd.f32 %v3987_v8, %v3959_v44  ;;  %4127 = vperm.xlu1 %7898, %v4101_v48   ;;  %v4105_v35 = vld [vmem:[%s10263_s3 + $0x30] sm:$0xff] }
 0x2dc   : > { %v9669_v41 = vadd.f32 %v4061_v34, %v4033_v31  ;;  %4122 = vperm.xlu0 %7897, %v4100_v6   ;;  %v7676_v34 = vld [vmem:[%s10301_s20] sm:$0xff]  ;;  %v7677_v31 = vld [vmem:[%s10301_s20 + $0x8] sm:$0xff]  ;;  %v4109_v20 = vld [vmem:[%s10263_s3 + $0x50] sm:$0xff] }
 0x2de   : > { %v4095_v4 = vpack.c.bf16 %v9669_v41, %v9667_v5  ;;  %v7678_v5 = vld [vmem:[%s10301_s20 + $0x10] sm:$0xff]  ;;  %v4106_v41 = vld [vmem:[%s10263_s3 + $0x38] sm:$0xff] }
 0x2df   : > { %v4064_v15 = vpop.f32.mrf.mxu3 }
 0x2e1   : > { %v4035_v53 = vpop.f32.mrf.mxu2  ;;  %v4008_v18 = vpop.f32.mrf.mxu1 }
 0x2e2   : > { %v4036_v19 = vadd.f32 %v4035_v53, %v4007_v26  ;;  %v4009_v12 = vadd.f32 %v4008_v18, %v3980_v60  ;;  %v3989_v17 = vpop.f32.mrf.mxu0  ;;  %v7679_v53 = vld [vmem:[%s10301_s20 + $0x18] sm:$0xff]  ;;  %v4111_v18 = vld [vmem:[%s10263_s3 + $0x60] sm:$0xff] }
 0x2e3   : > { %v3990_v37 = vadd.f32 %v3989_v17, %v3961_v23  ;;  %4132 = vperm.xlu1 %7898, %v4102_v10   ;;  %v7680_v60 = vld [vmem:[%s10301_s20 + $0x20] sm:$0xff] }
 0x2e4   : > { %v4065_v13 = vadd.f32 %v4064_v15, %v4036_v19  ;;  %4147 = vperm.xlu0 %7897, %v4105_v35   ;;  %v4108_v15 = vld [vmem:[%s10263_s3 + $0x48] sm:$0xff]  ;;  %v4107_v26 = vld [vmem:[%s10263_s3 + $0x40] sm:$0xff] }
 0x2e5   : > { %v4112_v19 = vld [vmem:[%s10263_s3 + $0x68] sm:$0xff] }
 0x2e7   : > { %v4066_v27 = vpop.f32.mrf.mxu3 }
 0x2e9   : > { %v4037_v1 = vpop.f32.mrf.mxu2  ;;  %v4011_v58 = vpop.f32.mrf.mxu1 }
 0x2ea   : > { %v4038_v32 = vadd.f32 %v4037_v1, %v4009_v12  ;;  %v4012_v55 = vadd.f32 %v4011_v58, %v3983_v24  ;;  %v7681_v12 = vld [vmem:[%s10301_s20 + $0x28] sm:$0xff]  ;;  %v4113_v1 = vld [vmem:[%s10263_s3 + $0x70] sm:$0xff]  ;;  %v7683_v58 = vld [vmem:[%s10301_s20 + $0x38] sm:$0xff] }
 0x2eb   : > { %4152 = vperm.xlu1 %7898, %v4106_v41  }
 0x2ec   : > { %v4067_v0 = vadd.f32 %v4066_v27, %v4038_v32  ;;  %4162 = vperm.xlu0 %7897, %v4108_v15   ;;  %v4110_v27 = vld [vmem:[%s10263_s3 + $0x58] sm:$0xff]  ;;  %v7682_v32 = vld [vmem:[%s10301_s20 + $0x30] sm:$0xff] }
 0x2ee   : > { %v4096_v57 = vpack.c.bf16 %v4067_v0, %v4065_v13 }
 0x2ef   : > { %v4069_v36 = vpop.f32.mrf.mxu3 }
 0x2f1   : > { %v4040_v9 = vpop.f32.mrf.mxu2  ;;  %v4013_v29 = vpop.f32.mrf.mxu1 }
 0x2f2   : > { %v4041_v16 = vadd.f32 %v4040_v9, %v4012_v55  ;;  %v4014_v47 = vadd.f32 %v4013_v29, %v3985_v40 }
 0x2f3   : > { %4167 = vperm.xlu1 %7898, %v4109_v20  }
 0x2f4   : > { %v4070_v59 = vadd.f32 %v4069_v36, %v4041_v16  ;;  %4177 = vperm.xlu0 %7897, %v4111_v18   ;;  %v4326_v16 = vld [vmem:[%s10302_s17 + $0x8] sm:$0xff] }
 0x2f7   : > { %v4071_v21 = vpop.f32.mrf.mxu3 }
 0x2f9   : > { %v4042_v25 = vpop.f32.mrf.mxu2  ;;  %v4016_v33 = vpop.f32.mrf.mxu1 }
 0x2fa   : > { %v4043_v49 = vadd.f32 %v4042_v25, %v4014_v47  ;;  %v4017_v43 = vadd.f32 %v4016_v33, %v3988_v46  ;;  %v4327_v33 = vld [vmem:[%s10302_s17 + $0x10] sm:$0xff] }
 0x2fb   : > { %4182 = vperm.xlu1 %7898, %v4112_v19  }
 0x2fc   : > { %v4072_v51 = vadd.f32 %v4071_v21, %v4043_v49  ;;  %4192 = vperm.xlu0 %7897, %v4114_v22  }
 0x2fe   : > { %v4097_v39 = vpack.c.bf16 %v4072_v51, %v4070_v59 }
 0x2ff   : > { %v4074_v30 = vpop.f32.mrf.mxu3 }
 0x301   : > { %v4045_v28 = vpop.f32.mrf.mxu2  ;;  %v4018_v38 = vpop.f32.mrf.mxu1 }
 0x302   : > { %v4046_v2 = vadd.f32 %v4045_v28, %v4017_v43  ;;  %v4019_v3 = vadd.f32 %v4018_v38, %v3990_v37 }
 0x304   : > { %v4075_v50 = vadd.f32 %v4074_v30, %v4046_v2  ;;  %v4328_v30 = vld [vmem:[%s10302_s17 + $0x18] sm:$0xff]  ;;  %v4329_v2 = vld [vmem:[%s10302_s17 + $0x20] sm:$0xff] }
 0x307   : > { %v4076_v62 = vpop.f32.mrf.mxu3 }
 0x309   : > { %v4047_v45 = vpop.f32.mrf.mxu2 }
 0x30a   : > { %v4048_v63 = vadd.f32 %v4047_v45, %v4019_v3 }
 0x30c   : > { %v4077_v61 = vadd.f32 %v4076_v62, %v4048_v63 }
 0x30e   : > { %v4098_v44 = vpack.c.bf16 %v4077_v61, %v4075_v50  ;;  %v4330_v50 = vld [vmem:[%s10302_s17 + $0x28] sm:$0xff] }
 0x310   : > { %4264 = vmatpush.bf16.msrb.mxu0 %v4098_v44 }
 0x314   : > { %4265 = vmatpush.bf16.msrb.mxu0 %v4097_v39 }
 0x318   : > { %4266 = vmatpush.bf16.msrb.mxu0 %v4096_v57 }
 0x31c   : > { %4267 = vmatpush.bf16.msrb.mxu0 %v4095_v4  ;;  %v4104_v4 = vld [vmem:[%s10263_s3 + $0x28] sm:$0xff] }
 0x31d   : > { %4142 = vperm.xlu2 %7899, %v4104_v4  }
 0x31f   : > { %6988 = vmatmul.msk.bf16.vlgmr.msrb.gmra.mxu0 %vm4235_vm0, %v7676_v34 }
 0x325   : > { %4157 = vperm.xlu2 %7899, %v4107_v26  }
 0x32d   : > { %4172 = vperm.xlu2 %7899, %v4110_v27  }
 0x32f   : > { %6989 = vmatmul.msk.bf16.gmra.mxu0 %vm4235_vm0, %v7677_v31  ;;  %v4138_v17 = vpop.permute.xlu2 %4137  ;;  %v4331_v31 = vld [vmem:[%s10302_s17 + $0x30] sm:$0xff] }
 0x335   : > { %4187 = vperm.xlu2 %7899, %v4113_v1  }
 0x33f   : > { %6990 = vmatmul.msk.bf16.gmra.mxu0 %vm4235_vm0, %v7678_v5 }
 0x346   : > { %v4118_v13 = vpop.permute.xlu0 %4117 }
 0x34d   : > { %v4128_v21 = vpop.permute.xlu1 %4127 }
 0x34e   : > { %v4123_v29 = vpop.permute.xlu0 %4122 }
 0x34f   : > { %6991 = vmatmul.msk.bf16.gmra.mxu0 %vm4235_vm0, %v7679_v53  ;;  %v4332_v53 = vld [vmem:[%s10302_s17 + $0x38] sm:$0xff] }
 0x355   : > { %v4133_v51 = vpop.permute.xlu1 %4132 }
 0x356   : > { %v4148_v6 = vpop.permute.xlu0 %4147 }
 0x35d   : > { %v4153_v11 = vpop.permute.xlu1 %4152 }
 0x35f   : > { %6992 = vmatmul.msk.bf16.gmra.mxu0 %vm4235_vm0, %v7680_v60 }
 0x36f   : > { %6993 = vmatmul.msk.bf16.gmra.mxu0 %vm4235_vm0, %v7681_v12  ;;  %v4333_v12 = vld [vmem:[%s10302_s17 + $0x40] sm:$0xff] }
 0x377   : > { %v4143_v14 = vpop.permute.xlu2 %4142 }
 0x37f   : > { %6994 = vmatmul.msk.bf16.gmra.mxu0 %vm4235_vm0, %v7682_v32  ;;  %v4158_v22 = vpop.permute.xlu2 %4157 }
 0x38f   : > { %6995 = vmatmul.msk.bf16.gmra.mxu0 %vm4235_vm0, %v7683_v58 }
 0x39c   : > { %v4269_v0 = vpop.f32.mrf.mxu0 }
 0x39d   : > { %v4270_v57 = vadd.f32 %v4269_v0, %v4118_v13  ;;  %v4163_v13 = vpop.permute.xlu0 %4162 }
 0x39f   : > { %v4309_v36 = vmax.f32 %v4270_v57, 0.0  ;;  %v4334_v57 = vld [vmem:[%s10302_s17 + $0x48] sm:$0xff] }
 0x3a1   : > { %v4341_v9 = vmul.f32 %v4325_v54, %v4309_v36 }
 0x3a3   : > { %v4357_v24 = vpack.c.bf16 %v4341_v9, %v4341_v9  ;;  %v4168_v9 = vpop.permute.xlu1 %4167 }
 0x3a4   : > { %v4271_v40 = vpop.f32.mrf.mxu0 }
 0x3a5   : > { %4374 = vst.msk [vmem:[#allocation2] sm:$0xf] %vm4373_vm1, %v4357_v24  ;;  %v4272_v55 = vadd.f32 %v4271_v40, %v4123_v29 }
 0x3a7   : > { %v4310_v47 = vmax.f32 %v4272_v55, 0.0  ;;  %v4335_v55 = vld [vmem:[%s10302_s17 + $0x50] sm:$0xff] }
 0x3a9   : > { %v4342_v8 = vmul.f32 %v4326_v16, %v4310_v47 }
 0x3ab   : > { %v4358_v25 = vpack.c.bf16 %v4342_v8, %v4342_v8 }
 0x3ac   : > { %v4274_v56 = vpop.f32.mrf.mxu0 }
 0x3ad   : > { %4375 = vst.msk [vmem:[#allocation2 + $0x4] sm:$0xf] %vm4373_vm1, %v4358_v25  ;;  %v4275_v49 = vadd.f32 %v4274_v56, %v4128_v21  ;;  %v4173_v25 = vpop.permute.xlu2 %4172 }
 0x3af   : > { %v4311_v42 = vmax.f32 %v4275_v49, 0.0  ;;  %v4336_v49 = vld [vmem:[%s10302_s17 + $0x58] sm:$0xff] }
 0x3b1   : > { %v4343_v59 = vmul.f32 %v4327_v33, %v4311_v42 }
 0x3b3   : > { %v4359_v52 = vpack.c.bf16 %v4343_v59, %v4343_v59 }
 0x3b4   : > { %v4276_v39 = vpop.f32.mrf.mxu0 }
 0x3b5   : > { %4376 = vst.msk [vmem:[#allocation2 + $0x8] sm:$0xf] %vm4373_vm1, %v4359_v52  ;;  %v4277_v28 = vadd.f32 %v4276_v39, %v4133_v51  ;;  %v4178_v52 = vpop.permute.xlu0 %4177 }
 0x3b7   : > { %v4312_v23 = vmax.f32 %v4277_v28, 0.0  ;;  %v4337_v28 = vld [vmem:[%s10302_s17 + $0x60] sm:$0xff] }
 0x3b9   : > { %v4344_v46 = vmul.f32 %v4328_v30, %v4312_v23 }
 0x3bb   : > { %v4360_v38 = vpack.c.bf16 %v4344_v46, %v4344_v46 }
 0x3bc   : > { %v4279_v37 = vpop.f32.mrf.mxu0 }
 0x3bd   : > { %4377 = vst.msk [vmem:[#allocation2 + $0xc] sm:$0xf] %vm4373_vm1, %v4360_v38  ;;  %v4280_v43 = vadd.f32 %v4279_v37, %v4138_v17  ;;  %v4183_v38 = vpop.permute.xlu1 %4182 }
 0x3bf   : > { %v4313_v3 = vmax.f32 %v4280_v43, 0.0  ;;  %v4338_v43 = vld [vmem:[%s10302_s17 + $0x68] sm:$0xff] }
 0x3c1   : > { %v4345_v45 = vmul.f32 %v4329_v2, %v4313_v3 }
 0x3c3   : > { %v4361_v7 = vpack.c.bf16 %v4345_v45, %v4345_v45 }
 0x3c4   : > { %v4281_v63 = vpop.f32.mrf.mxu0 }
 0x3c5   : > { %4378 = vst.msk [vmem:[#allocation2 + $0x10] sm:$0xf] %vm4373_vm1, %v4361_v7  ;;  %v4282_v62 = vadd.f32 %v4281_v63, %v4143_v14  ;;  %v4188_v7 = vpop.permute.xlu2 %4187 }
 0x3c7   : > { %v4314_v61 = vmax.f32 %v4282_v62, 0.0  ;;  %v4339_v62 = vld [vmem:[%s10302_s17 + $0x70] sm:$0xff] }
 0x3c9   : > { %v4346_v44 = vmul.f32 %v4330_v50, %v4314_v61 }
 0x3cb   : > { %v4362_v48 = vpack.c.bf16 %v4346_v44, %v4346_v44 }
 0x3cc   : > { %v4284_v34 = vpop.f32.mrf.mxu0 }
 0x3cd   : > { %4379 = vst.msk [vmem:[#allocation2 + $0x14] sm:$0xf] %vm4373_vm1, %v4362_v48  ;;  %v4285_v10 = vadd.f32 %v4284_v34, %v4148_v6  ;;  %v4193_v6 = vpop.permute.xlu0 %4192 }
 0x3cf   : > { %v4315_v35 = vmax.f32 %v4285_v10, 0.0  ;;  %v4340_v10 = vld [vmem:[%s10302_s17 + $0x78] sm:$0xff] }
 0x3d1   : > { %v4347_v5 = vmul.f32 %v4331_v31, %v4315_v35 }
 0x3d3   : > { %v4363_v41 = vpack.c.bf16 %v4347_v5, %v4347_v5 }
 0x3d4   : > { %v4286_v4 = vpop.f32.mrf.mxu0 }
 0x3d5   : > { %v4287_v15 = vadd.f32 %v4286_v4, %v4153_v11  ;;  %4380 = vst.msk [vmem:[#allocation2 + $0x18] sm:$0xf] %vm4373_vm1, %v4363_v41 }
 0x3d7   : > { %v4316_v18 = vmax.f32 %v4287_v15, 0.0 }
 0x3d9   : > { %v4348_v20 = vmul.f32 %v4332_v53, %v4316_v18 }
 0x3db   : > { %v4364_v60 = vpack.c.bf16 %v4348_v20, %v4348_v20 }
 0x3dc   : > { %v4289_v26 = vpop.f32.mrf.mxu0 }
 0x3dd   : > { %4381 = vst.msk [vmem:[#allocation2 + $0x1c] sm:$0xf] %vm4373_vm1, %v4364_v60  ;;  %v4290_v19 = vadd.f32 %v4289_v26, %v4158_v22 }
 0x3df   : > { %v4317_v27 = vmax.f32 %v4290_v19, 0.0 }
 0x3e1   : > { %v4349_v1 = vmul.f32 %v4333_v12, %v4317_v27 }
 0x3e3   : > { %v4365_v32 = vpack.c.bf16 %v4349_v1, %v4349_v1 }
 0x3e4   : > { %v4291_v58 = vpop.f32.mrf.mxu0 }
 0x3e5   : > { %4382 = vst.msk [vmem:[#allocation2 + $0x20] sm:$0xf] %vm4373_vm1, %v4365_v32  ;;  %v4292_v0 = vadd.f32 %v4291_v58, %v4163_v13 }
 0x3e7   : > { %v4318_v54 = vmax.f32 %v4292_v0, 0.0 }
 0x3e9   : > { %v4350_v36 = vmul.f32 %v4334_v57, %v4318_v54 }
 0x3eb   : > { %v4366_v29 = vpack.c.bf16 %v4350_v36, %v4350_v36 }
 0x3ec   : > { %v4294_v24 = vpop.f32.mrf.mxu0 }
 0x3ed   : > { %4383 = vst.msk [vmem:[#allocation2 + $0x24] sm:$0xf] %vm4373_vm1, %v4366_v29  ;;  %v4295_v40 = vadd.f32 %v4294_v24, %v4168_v9 }
 0x3ef   : > { %v4319_v16 = vmax.f32 %v4295_v40, 0.0 }
 0x3f1   : > { %v4351_v47 = vmul.f32 %v4335_v55, %v4319_v16 }
 0x3f3   : > { %v4367_v21 = vpack.c.bf16 %v4351_v47, %v4351_v47 }
 0x3f4   : > { %v4296_v8 = vpop.f32.mrf.mxu0 }
 0x3f5   : > { %v4297_v56 = vadd.f32 %v4296_v8, %v4173_v25  ;;  %4384 = vst.msk [vmem:[#allocation2 + $0x28] sm:$0xf] %vm4373_vm1, %v4367_v21 }
 0x3f7   : > { %v4320_v33 = vmax.f32 %v4297_v56, 0.0 }
 0x3f9   : > { %v4352_v42 = vmul.f32 %v4336_v49, %v4320_v33 }
 0x3fb   : > { %v4368_v59 = vpack.c.bf16 %v4352_v42, %v4352_v42 }
 0x3fc   : > { %v4299_v51 = vpop.f32.mrf.mxu0 }
 0x3fd   : > { %v4300_v39 = vadd.f32 %v4299_v51, %v4178_v52  ;;  %4385 = vst.msk [vmem:[#allocation2 + $0x2c] sm:$0xf] %vm4373_vm1, %v4368_v59 }
 0x3ff   : > { %v4321_v30 = vmax.f32 %v4300_v39, 0.0 }
 0x401   : > { %v4353_v23 = vmul.f32 %v4337_v28, %v4321_v30 }
 0x403   : > { %v4369_v17 = vpack.c.bf16 %v4353_v23, %v4353_v23 }
 0x404   : > { %v4301_v46 = vpop.f32.mrf.mxu0 }
 0x405   : > { %4386 = vst.msk [vmem:[#allocation2 + $0x30] sm:$0xf] %vm4373_vm1, %v4369_v17  ;;  %v4302_v37 = vadd.f32 %v4301_v46, %v4183_v38 }
 0x407   : > { %v4322_v2 = vmax.f32 %v4302_v37, 0.0 }
 0x409   : > { %v4354_v3 = vmul.f32 %v4338_v43, %v4322_v2 }
 0x40b   : > { %v4370_v45 = vpack.c.bf16 %v4354_v3, %v4354_v3 }
 0x40c   : > { %v4304_v14 = vpop.f32.mrf.mxu0 }
 0x40d   : > { %v4305_v63 = vadd.f32 %v4304_v14, %v4188_v7  ;;  %4387 = vst.msk [vmem:[#allocation2 + $0x34] sm:$0xf] %vm4373_vm1, %v4370_v45 }
 0x40f   : > { %v4323_v50 = vmax.f32 %v4305_v63, 0.0 }
 0x411   : > { %v4355_v61 = vmul.f32 %v4339_v62, %v4323_v50 }
 0x413   : > { %v4371_v44 = vpack.c.bf16 %v4355_v61, %v4355_v61 }
 0x414   : > { %v4306_v48 = vpop.f32.mrf.mxu0 }
 0x415   : > { %v4307_v34 = vadd.f32 %v4306_v48, %v4193_v6  ;;  %4388 = vst.msk [vmem:[#allocation2 + $0x38] sm:$0xf] %vm4373_vm1, %v4371_v44 }
 0x417   : > { %v4324_v31 = vmax.f32 %v4307_v34, 0.0 }
 0x419   : > { %v4356_v35 = vmul.f32 %v4340_v10, %v4324_v31 }
 0x41b   : > { %v4372_v5 = vpack.c.bf16 %v4356_v35, %v4356_v35 }
 0x41d   : > { %4389 = vst.msk [vmem:[#allocation2 + $0x3c] sm:$0xf] %vm4373_vm1, %v4372_v5 }
 0x41e PF: > { %v7190_v11 = vld [vmem:[%s8338_s21 + $0x140] sm:$0xf]  ;;  %v7732_v4 = vld [vmem:[%s8338_s21 + $0x144] sm:$0xf]  ;;  %v7198_v18 = vld [vmem:[%s8338_s21 + $0x148] sm:$0xf] }
 0x41f   : > { %v7736_v41 = vld [vmem:[%s8338_s21 + $0x15c] sm:$0xf0]  ;;  %v7192_v53 = vld [vmem:[%s8338_s21 + $0x160] sm:$0xf0]  ;;  %v7737_v20 = vld [vmem:[%s8338_s21 + $0x164] sm:$0xf0] }
 0x420   : > { %v7191_v15 = vor.u32 %v7736_v41, %v7190_v11  ;;  %v7195_v22 = vor.u32 %v7732_v4, %v7192_v53  ;;  %v7199_v60 = vor.u32 %v7737_v20, %v7198_v18  ;;  %v7733_v26 = vld [vmem:[%s8338_s21 + $0x14c] sm:$0xf]  ;;  %v7158_v12 = vld [vmem:[%s8338_s21 + $0x100] sm:$0xf]  ;;  %v7724_v32 = vld [vmem:[%s8338_s21 + $0x104] sm:$0xf] }
 0x421   : > { %v7200_v19 = vld [vmem:[%s8338_s21 + $0x168] sm:$0xf0]  ;;  %v7728_v1 = vld [vmem:[%s8338_s21 + $0x11c] sm:$0xf0]  ;;  %v7160_v58 = vld [vmem:[%s8338_s21 + $0x120] sm:$0xf0] }
 0x422   : > { %4761 = vmatpush.bf16.msra.mxu0 %v7191_v15  ;;  %v7203_v27 = vor.u32 %v7733_v26, %v7200_v19  ;;  %4810 = vmatpush.bf16.msra.mxu1 %v7195_v22  ;;  %v7159_v13 = vor.u32 %v7728_v1, %v7158_v12  ;;  %v7163_v0 = vor.u32 %v7724_v32, %v7160_v58  ;;  %v7166_v57 = vld [vmem:[%s8338_s21 + $0x108] sm:$0xf]  ;;  %v7725_v36 = vld [vmem:[%s8338_s21 + $0x10c] sm:$0xf]  ;;  %v7126_v24 = vld [vmem:[%s8338_s21 + $0xc0] sm:$0xf] }
 0x423   : > { %4859 = vmatpush.bf16.msra.mxu2 %v7199_v60  ;;  %v7729_v54 = vld [vmem:[%s8338_s21 + $0x124] sm:$0xf0]  ;;  %v7168_v29 = vld [vmem:[%s8338_s21 + $0x128] sm:$0xf0]  ;;  %v7720_v40 = vld [vmem:[%s8338_s21 + $0xdc] sm:$0xf0] }
 0x424   : > { %4908 = vmatpush.bf16.msra.mxu3 %v7203_v27  ;;  %v7167_v9 = vor.u32 %v7729_v54, %v7166_v57  ;;  %v7171_v55 = vor.u32 %v7725_v36, %v7168_v29  ;;  %v7716_v16 = vld [vmem:[%s8338_s21 + $0xc4] sm:$0xf]  ;;  %v7134_v21 = vld [vmem:[%s8338_s21 + $0xc8] sm:$0xf]  ;;  %v7127_v8 = vor.u32 %v7720_v40, %v7126_v24  ;;  %v7717_v56 = vld [vmem:[%s8338_s21 + $0xcc] sm:$0xf] }
 0x425   : > { %v7128_v47 = vld [vmem:[%s8338_s21 + $0xe0] sm:$0xf0]  ;;  %v7721_v25 = vld [vmem:[%s8338_s21 + $0xe4] sm:$0xf0]  ;;  %v7136_v49 = vld [vmem:[%s8338_s21 + $0xe8] sm:$0xf0] }
 0x426   : > { %4762 = vmatpush.bf16.msra.mxu0 %v7159_v13  ;;  %4811 = vmatpush.bf16.msra.mxu1 %v7163_v0  ;;  %v7131_v33 = vor.u32 %v7716_v16, %v7128_v47  ;;  %v7135_v42 = vor.u32 %v7721_v25, %v7134_v21  ;;  %v7094_v59 = vld [vmem:[%s8338_s21 + $0x80] sm:$0xf]  ;;  %v7708_v52 = vld [vmem:[%s8338_s21 + $0x84] sm:$0xf]  ;;  %v7139_v39 = vor.u32 %v7717_v56, %v7136_v49  ;;  %v7102_v30 = vld [vmem:[%s8338_s21 + $0x88] sm:$0xf] }
 0x427   : > { %4860 = vmatpush.bf16.msra.mxu2 %v7167_v9  ;;  %v7712_v51 = vld [vmem:[%s8338_s21 + $0x9c] sm:$0xf0]  ;;  %v7096_v28 = vld [vmem:[%s8338_s21 + $0xa0] sm:$0xf0]  ;;  %v7713_v23 = vld [vmem:[%s8338_s21 + $0xa4] sm:$0xf0] }
 0x428   : > { %4909 = vmatpush.bf16.msra.mxu3 %v7171_v55  ;;  %v7709_v17 = vld [vmem:[%s8338_s21 + $0x8c] sm:$0xf]  ;;  %v7095_v38 = vor.u32 %v7712_v51, %v7094_v59  ;;  %v7099_v37 = vor.u32 %v7708_v52, %v7096_v28  ;;  %v7103_v43 = vor.u32 %v7713_v23, %v7102_v30  ;;  %v7062_v2 = vld [vmem:[%s8338_s21 + $0x40] sm:$0xf]  ;;  %v7700_v45 = vld [vmem:[%s8338_s21 + $0x44] sm:$0xf] }
 0x429   : > { %v7104_v46 = vld [vmem:[%s8338_s21 + $0xa8] sm:$0xf0]  ;;  %v7704_v3 = vld [vmem:[%s8338_s21 + $0x5c] sm:$0xf0]  ;;  %v7064_v7 = vld [vmem:[%s8338_s21 + $0x60] sm:$0xf0] }
 0x42a   : > { %4763 = vmatpush.bf16.msra.mxu0 %v7127_v8  ;;  %4812 = vmatpush.bf16.msra.mxu1 %v7131_v33  ;;  %v7107_v14 = vor.u32 %v7709_v17, %v7104_v46  ;;  %v7070_v63 = vld [vmem:[%s8338_s21 + $0x48] sm:$0xf]  ;;  %v7701_v50 = vld [vmem:[%s8338_s21 + $0x4c] sm:$0xf]  ;;  %v7063_v44 = vor.u32 %v7704_v3, %v7062_v2  ;;  %v7030_v6 = vld [vmem:[%s8338_s21] sm:$0xf]  ;;  %v7067_v48 = vor.u32 %v7700_v45, %v7064_v7 }
 0x42b   : > { %4861 = vmatpush.bf16.msra.mxu2 %v7135_v42  ;;  %v7705_v62 = vld [vmem:[%s8338_s21 + $0x64] sm:$0xf0]  ;;  %v7072_v61 = vld [vmem:[%s8338_s21 + $0x68] sm:$0xf0]  ;;  %v7696_v10 = vld [vmem:[%s8338_s21 + $0x1c] sm:$0xf0] }
 0x42c   : > { %4910 = vmatpush.bf16.msra.mxu3 %v7139_v39  ;;  %v7071_v34 = vor.u32 %v7705_v62, %v7070_v63  ;;  %v7692_v31 = vld [vmem:[%s8338_s21 + $0x4] sm:$0xf]  ;;  %v7075_v5 = vor.u32 %v7701_v50, %v7072_v61  ;;  %v7038_v11 = vld [vmem:[%s8338_s21 + $0x8] sm:$0xf]  ;;  %v7693_v4 = vld [vmem:[%s8338_s21 + $0xc] sm:$0xf]  ;;  %v7031_v20 = vor.u32 %v7696_v10, %v7030_v6 }
 0x42d   : > { %v7032_v35 = vld [vmem:[%s8338_s21 + $0x20] sm:$0xf0]  ;;  %v7697_v41 = vld [vmem:[%s8338_s21 + $0x24] sm:$0xf0]  ;;  %v7040_v15 = vld [vmem:[%s8338_s21 + $0x28] sm:$0xf0] }
 0x42e   : > { %4764 = vmatpush.bf16.msra.mxu0 %v7095_v38  ;;  %4813 = vmatpush.bf16.msra.mxu1 %v7099_v37  ;;  %v7214_v53 = vld [vmem:[%s8338_s21 + $0x158] sm:$0xf]  ;;  %v7735_v22 = vld [vmem:[%s8338_s21 + $0x15c] sm:$0xf]  ;;  %v7035_v26 = vor.u32 %v7692_v31, %v7032_v35  ;;  %v7039_v19 = vor.u32 %v7697_v41, %v7038_v11  ;;  %v9874_v12 = vld [vmem:[#allocation2] sm:$0xff]  ;;  %v7043_v27 = vor.u32 %v7693_v4, %v7040_v15  ;;  %vm4734_vm2 = vcmask 785408  }
 0x42f   : > { %4862 = vmatpush.bf16.msra.mxu2 %v7103_v43  ;;  %v7739_v18 = vld [vmem:[%s8338_s21 + $0x174] sm:$0xf0]  ;;  %v7216_v60 = vld [vmem:[%s8338_s21 + $0x178] sm:$0xf0]  ;;  %v7206_v32 = vld [vmem:[%s8338_s21 + $0x150] sm:$0xf] }
 0x430   : > { %4911 = vmatpush.bf16.msra.mxu3 %v7107_v14  ;;  %v7215_v1 = vor.u32 %v7739_v18, %v7214_v53  ;;  %v7738_v58 = vld [vmem:[%s8338_s21 + $0x16c] sm:$0xf0]  ;;  %v7734_v13 = vld [vmem:[%s8338_s21 + $0x154] sm:$0xf]  ;;  %v7219_v0 = vor.u32 %v7735_v22, %v7216_v60  ;;  %v7182_v54 = vld [vmem:[%s8338_s21 + $0x118] sm:$0xf] }
 0x431   : > { %v7208_v57 = vld [vmem:[%s8338_s21 + $0x170] sm:$0xf0]  ;;  %v7731_v36 = vld [vmem:[%s8338_s21 + $0x134] sm:$0xf0]  ;;  %v7727_v9 = vld [vmem:[%s8338_s21 + $0x11c] sm:$0xf]  ;;  %v7207_v24 = vor.u32 %v7738_v58, %v7206_v32 }
 0x432   : > { %4765 = vmatpush.bf16.msra.mxu0 %v7063_v44  ;;  %4814 = vmatpush.bf16.msra.mxu1 %v7067_v48  ;;  %v7184_v29 = vld [vmem:[%s8338_s21 + $0x138] sm:$0xf0]  ;;  %v7211_v40 = vor.u32 %v7734_v13, %v7208_v57  ;;  %v7183_v55 = vor.u32 %v7731_v36, %v7182_v54  ;;  %v7174_v16 = vld [vmem:[%s8338_s21 + $0x110] sm:$0xf]  ;;  %v7726_v8 = vld [vmem:[%s8338_s21 + $0x114] sm:$0xf] }
 0x433   : > { %4863 = vmatpush.bf16.msra.mxu2 %v7071_v34  ;;  %v7730_v47 = vld [vmem:[%s8338_s21 + $0x12c] sm:$0xf0]  ;;  %v7187_v21 = vor.u32 %v7727_v9, %v7184_v29  ;;  %v7176_v25 = vld [vmem:[%s8338_s21 + $0x130] sm:$0xf0]  ;;  %v7150_v49 = vld [vmem:[%s8338_s21 + $0xd8] sm:$0xf] }
 0x434   : > { %4912 = vmatpush.bf16.msra.mxu3 %v7075_v5  ;;  %v7175_v56 = vor.u32 %v7730_v47, %v7174_v16  ;;  %v7723_v33 = vld [vmem:[%s8338_s21 + $0xf4] sm:$0xf0]  ;;  %v7719_v42 = vld [vmem:[%s8338_s21 + $0xdc] sm:$0xf]  ;;  %v7179_v59 = vor.u32 %v7726_v8, %v7176_v25  ;;  %v9900_v28 = vld [vmem:[#allocation2 + $0x8] sm:$0xff]  ;;  %s7285_s18 = sshll.u32 %s8094_s30, 3 }
 0x435   : > { %v7151_v51 = vor.u32 %v7723_v33, %v7150_v49  ;;  %v7152_v52 = vld [vmem:[%s8338_s21 + $0xf8] sm:$0xf0]  ;;  %v7142_v30 = vld [vmem:[%s8338_s21 + $0xd0] sm:$0xf]  ;;  %v7718_v17 = vld [vmem:[%s8338_s21 + $0xd4] sm:$0xf] }
 0x436   : > { %4766 = vmatpush.bf16.msra.mxu0 %v7031_v20  ;;  %4815 = vmatpush.bf16.msra.mxu1 %v7035_v26  ;;  %v7155_v39 = vor.u32 %v7719_v42, %v7152_v52  ;;  %v7722_v23 = vld [vmem:[%s8338_s21 + $0xec] sm:$0xf0]  ;;  %v7144_v38 = vld [vmem:[%s8338_s21 + $0xf0] sm:$0xf0]  ;;  %v7118_v2 = vld [vmem:[%s8338_s21 + $0x98] sm:$0xf] }
 0x437   : > { %4864 = vmatpush.bf16.msra.mxu2 %v7039_v19  ;;  %v7143_v46 = vor.u32 %v7722_v23, %v7142_v30  ;;  %v7147_v37 = vor.u32 %v7718_v17, %v7144_v38  ;;  %v9914_v43 = vld [vmem:[#allocation2 + $0x10] sm:$0xff]  ;;  %v7715_v3 = vld [vmem:[%s8338_s21 + $0xb4] sm:$0xf0]  ;;  %v7711_v45 = vld [vmem:[%s8338_s21 + $0x9c] sm:$0xf]  ;;  %s10304_s19 = sld [smem:[#allocation23_spill]] }
 0x438   : > { %4913 = vmatpush.bf16.msra.mxu3 %v7043_v27  ;;  %v7119_v14 = vor.u32 %v7715_v3, %v7118_v2  ;;  %v7120_v7 = vld [vmem:[%s8338_s21 + $0xb8] sm:$0xf0]  ;;  %v7110_v63 = vld [vmem:[%s8338_s21 + $0x90] sm:$0xf]  ;;  %v7710_v44 = vld [vmem:[%s8338_s21 + $0x94] sm:$0xf] }
 0x439   : > { %7220 = vmatmul.msk.bf16.vlgmr.msra.gmra.mxu0 %vm4734_vm2, %v9874_v12  ;;  %7228 = vmatmul.msk.bf16.vlgmr.msra.gmra.mxu1 %vm4734_vm2, %v9874_v12  ;;  %v7714_v62 = vld [vmem:[%s8338_s21 + $0xac] sm:$0xf0]  ;;  %v7123_v50 = vor.u32 %v7711_v45, %v7120_v7  ;;  %v7112_v6 = vld [vmem:[%s8338_s21 + $0xb0] sm:$0xf0]  ;;  %v9932_v34 = vld [vmem:[#allocation2 + $0x18] sm:$0xff]  ;;  %s5294_s14 = sshll.u32 %s8347_s13, 4  ;;  %s5295_s14 = int_to_ptr.vmem [resolvable:$true] %s5294_s14 }
 0x43a   : > { %7236 = vmatmul.msk.bf16.vlgmr.msra.gmra.mxu2 %vm4734_vm2, %v9874_v12  ;;  %4957 = vmatpush.bf16.msrb.mxu0 %v7207_v24  ;;  %v7111_v61 = vor.u32 %v7714_v62, %v7110_v63  ;;  %v7115_v48 = vor.u32 %v7710_v44, %v7112_v6  ;;  %v7086_v10 = vld [vmem:[%s8338_s21 + $0x58] sm:$0xf]  ;;  %v7703_v35 = vld [vmem:[%s8338_s21 + $0x5c] sm:$0xf]  ;;  %v7078_v41 = vld [vmem:[%s8338_s21 + $0x50] sm:$0xf] }
 0x43b   : > { %5055 = vmatpush.bf16.msrb.mxu2 %v7215_v1  ;;  %7244 = vmatmul.msk.bf16.vlgmr.msra.gmra.mxu3 %vm4734_vm2, %v9874_v12  ;;  %v7707_v31 = vld [vmem:[%s8338_s21 + $0x74] sm:$0xf0]  ;;  %v7088_v11 = vld [vmem:[%s8338_s21 + $0x78] sm:$0xf0]  ;;  %v7706_v4 = vld [vmem:[%s8338_s21 + $0x6c] sm:$0xf0] }
 0x43c   : > { %5104 = vmatpush.bf16.msrb.mxu3 %v7219_v0  ;;  %5006 = vmatpush.bf16.msrb.mxu1 %v7211_v40  ;;  %v7087_v5 = vor.u32 %v7707_v31, %v7086_v10  ;;  %v7091_v15 = vor.u32 %v7703_v35, %v7088_v11  ;;  %v7079_v53 = vor.u32 %v7706_v4, %v7078_v41  ;;  %v7702_v18 = vld [vmem:[%s8338_s21 + $0x54] sm:$0xf]  ;;  %v9950_v60 = vld [vmem:[#allocation2 + $0x20] sm:$0xff]  ;;  %v7054_v26 = vld [vmem:[%s8338_s21 + $0x18] sm:$0xf]  ;;  %s5280_s11 = scalar_lea.sflag [#allocation5], %s325_s12 }
 0x43d   : > { %v7080_v20 = vld [vmem:[%s8338_s21 + $0x70] sm:$0xf0]  ;;  %v7699_v19 = vld [vmem:[%s8338_s21 + $0x34] sm:$0xf0]  ;;  %v7695_v27 = vld [vmem:[%s8338_s21 + $0x1c] sm:$0xf] }
 0x43e   : > { %4958 = vmatpush.bf16.msrb.mxu0 %v7175_v56  ;;  %v7083_v22 = vor.u32 %v7702_v18, %v7080_v20  ;;  %v7055_v1 = vor.u32 %v7699_v19, %v7054_v26  ;;  %v7056_v32 = vld [vmem:[%s8338_s21 + $0x38] sm:$0xf0]  ;;  %v9964_v13 = vld [vmem:[#allocation2 + $0x28] sm:$0xff]  ;;  %v7046_v0 = vld [vmem:[%s8338_s21 + $0x10] sm:$0xf] }
 0x43f   : > { %5056 = vmatpush.bf16.msrb.mxu2 %v7183_v55  ;;  %v7059_v58 = vor.u32 %v7695_v27, %v7056_v32  ;;  %v7698_v57 = vld [vmem:[%s8338_s21 + $0x2c] sm:$0xf0]  ;;  %v7694_v54 = vld [vmem:[%s8338_s21 + $0x14] sm:$0xf]  ;;  %v9988_v40 = vld [vmem:[#allocation2 + $0x38] sm:$0xff] }
 0x440   : > { %5105 = vmatpush.bf16.msrb.mxu3 %v7187_v21  ;;  %5007 = vmatpush.bf16.msrb.mxu1 %v7179_v59  ;;  %v7047_v36 = vor.u32 %v7698_v57, %v7046_v0  ;;  %v7048_v9 = vld [vmem:[%s8338_s21 + $0x30] sm:$0xf0]  ;;  %s10303_s21 = sld [smem:[#allocation13_spill]] }
 0x441   : > { %v7051_v29 = vor.u32 %v7694_v54, %v7048_v9  ;;  %v9978_v24 = vld [vmem:[#allocation2 + $0x30] sm:$0xff] }
 0x442   : > { %4959 = vmatpush.bf16.msrb.mxu0 %v7143_v46 }
 0x443   : > { %5057 = vmatpush.bf16.msrb.mxu2 %v7151_v51 }
 0x444   : > { %5106 = vmatpush.bf16.msrb.mxu3 %v7155_v39  ;;  %5008 = vmatpush.bf16.msrb.mxu1 %v7147_v37 }
 0x446   : > { %4960 = vmatpush.bf16.msrb.mxu0 %v7111_v61  ;;  %s7286_s0 = sshll.u32 %s10303_s21, 9 }
 0x447   : > { %5058 = vmatpush.bf16.msrb.mxu2 %v7119_v14  ;;  %s5291_s4 = sadd.s32 %s7286_s0, %s7285_s18 }
 0x448   : > { %5107 = vmatpush.bf16.msrb.mxu3 %v7123_v50  ;;  %5009 = vmatpush.bf16.msrb.mxu1 %v7115_v48  ;;  %s7287_s16 = sshll.u32 %s5291_s4, 3  ;;  %s7980_s4 = scalar_lea.hbm %s10304_s19, 8192 }
 0x449   : > { %7221 = vmatmul.msk.bf16.gmra.mxu0 %vm4734_vm2, %v9900_v28  ;;  %7229 = vmatmul.msk.bf16.gmra.mxu1 %vm4734_vm2, %v9900_v28  ;;  %s5293_s24 = scalar_lea.hbm %s10304_s19, %s7287_s16 }
 0x44a   : > { %7237 = vmatmul.msk.bf16.gmra.mxu2 %vm4734_vm2, %v9900_v28  ;;  %4961 = vmatpush.bf16.msrb.mxu0 %v7079_v53  ;;  %s5296_s9 = sshll.u32 %s5293_s24, 4  ;;  %s5297_s9 = int_to_ptr.hbm [resolvable:$true] %s5296_s9 }
 0x44b   : > { %7245 = vmatmul.msk.bf16.gmra.mxu3 %vm4734_vm2, %v9900_v28  ;;  %5059 = vmatpush.bf16.msrb.mxu2 %v7087_v5  ;;  %s7974_s6 = sshra.s32 %s5297_s9, 4  ;;  %s7975_s6 = int_to_ptr.hbm [resolvable:$true] %s7974_s6 }
 0x44c   : > { %5108 = vmatpush.bf16.msrb.mxu3 %v7091_v15  ;;  %5010 = vmatpush.bf16.msrb.mxu1 %v7083_v22  ;;  %s7976_s21 = scalar_lea.hbm %s7975_s6, 1024  ;;  %p7981_p8 = scmp.lt.s32.totalorder %s7975_s6, %s10304_s19 }
 0x44d   : > { %p7977_p7 = scmp.ne.s32.totalorder %s7975_s6, %s7976_s21  ;;  %p7982_p9 = scmp.lt.s32.totalorder %s7980_s4, %s7976_s21 }
 0x44e   : > { %4962 = vmatpush.bf16.msrb.mxu0 %v7047_v36 }
 0x44f   : > { %5060 = vmatpush.bf16.msrb.mxu2 %v7055_v1  ;;  %p7978_p11 = pnand %p7977_p7, %p8300_p1  ;;  %p7983_p10 = por %p7982_p9, %p7981_p8 }
 0x450   : > { %5109 = vmatpush.bf16.msrb.mxu3 %v7059_v58  ;;  %5011 = vmatpush.bf16.msrb.mxu1 %v7051_v29 }
 0x451   : > { %p7979_p2 = pneg %p7978_p11 }
 0x453   : > { %p7984_p12 = pnand %p7983_p10, %p7979_p2 }
 0x459   : > { %7222 = vmatmul.msk.bf16.gmra.mxu0 %vm4734_vm2, %v9914_v43  ;;  %7230 = vmatmul.msk.bf16.gmra.mxu1 %vm4734_vm2, %v9914_v43 }
 0x45a   : > { %7238 = vmatmul.msk.bf16.gmra.mxu2 %vm4734_vm2, %v9914_v43 }
 0x45b   : > { %7246 = vmatmul.msk.bf16.gmra.mxu3 %vm4734_vm2, %v9914_v43 }
 0x469   : > { %7223 = vmatmul.msk.bf16.gmra.mxu0 %vm4734_vm2, %v9932_v34  ;;  %7231 = vmatmul.msk.bf16.gmra.mxu1 %vm4734_vm2, %v9932_v34 }
 0x46a   : > { %7239 = vmatmul.msk.bf16.gmra.mxu2 %vm4734_vm2, %v9932_v34 }
 0x46b   : > { %7247 = vmatmul.msk.bf16.gmra.mxu3 %vm4734_vm2, %v9932_v34 }
 0x479   : > { %7224 = vmatmul.msk.bf16.gmra.mxu0 %vm4734_vm2, %v9950_v60  ;;  %7232 = vmatmul.msk.bf16.gmra.mxu1 %vm4734_vm2, %v9950_v60 }
 0x47a   : > { %7240 = vmatmul.msk.bf16.gmra.mxu2 %vm4734_vm2, %v9950_v60 }
 0x47b   : > { %7248 = vmatmul.msk.bf16.gmra.mxu3 %vm4734_vm2, %v9950_v60 }
 0x489   : > { %7225 = vmatmul.msk.bf16.gmra.mxu0 %vm4734_vm2, %v9964_v13  ;;  %7233 = vmatmul.msk.bf16.gmra.mxu1 %vm4734_vm2, %v9964_v13 }
 0x48a   : > { %7241 = vmatmul.msk.bf16.gmra.mxu2 %vm4734_vm2, %v9964_v13 }
 0x48b   : > { %7249 = vmatmul.msk.bf16.gmra.mxu3 %vm4734_vm2, %v9964_v13 }
 0x499   : > { %7226 = vmatmul.msk.bf16.gmra.mxu0 %vm4734_vm2, %v9978_v24  ;;  %7234 = vmatmul.msk.bf16.gmra.mxu1 %vm4734_vm2, %v9978_v24 }
 0x49a   : > { %7242 = vmatmul.msk.bf16.gmra.mxu2 %vm4734_vm2, %v9978_v24 }
 0x49b   : > { %7250 = vmatmul.msk.bf16.gmra.mxu3 %vm4734_vm2, %v9978_v24 }
 0x4a9   : > { %7227 = vmatmul.msk.bf16.gmra.mxu0 %vm4734_vm2, %v9988_v40  ;;  %7235 = vmatmul.msk.bf16.gmra.mxu1 %vm4734_vm2, %v9988_v40 }
 0x4aa   : > { %7243 = vmatmul.msk.bf16.gmra.mxu2 %vm4734_vm2, %v9988_v40 }
 0x4ab   : > { %7251 = vmatmul.msk.bf16.gmra.mxu3 %vm4734_vm2, %v9988_v40 }
 0x4b6   : > { %v4768_v55 = vpop.f32.mrf.mxu0  ;;  %v4817_v16 = vpop.f32.mrf.mxu1 }
 0x4b7   : > { %5151 = vst [vmem:[%s8347_s13] sm:$0xff] %v4768_v55 }
 0x4b8   : > { %5152 = vst [vmem:[%s8347_s13 + $0x8] sm:$0xff] %v4817_v16 }
 0x4b9   : > { %7252 = vmatmul.msk.bf16.vlgmr.msrb.gmra.mxu0 %vm4734_vm2, %v9874_v12  ;;  %7260 = vmatmul.msk.bf16.vlgmr.msrb.gmra.mxu1 %vm4734_vm2, %v9874_v12 }
 0x4ba   : > { %7268 = vmatmul.msk.bf16.vlgmr.msrb.gmra.mxu2 %vm4734_vm2, %v9874_v12 }
 0x4bb   : > { %7276 = vmatmul.msk.bf16.vlgmr.msrb.gmra.mxu3 %vm4734_vm2, %v9874_v12 }
 0x4bd   : > { %v4866_v47 = vpop.f32.mrf.mxu2 }
 0x4be   : > { %5153 = vst [vmem:[%s8347_s13 + $0x10] sm:$0xff] %v4866_v47  ;;  %v4915_v21 = vpop.f32.mrf.mxu3  ;;  %v4770_v8 = vpop.f32.mrf.mxu0 }
 0x4bf   : > { %5154 = vst [vmem:[%s8347_s13 + $0x18] sm:$0xff] %v4915_v21  ;;  %v4819_v25 = vpop.f32.mrf.mxu1 }
 0x4c0   : > { %5159 = vst [vmem:[%s8347_s13 + $0x40] sm:$0xff] %v4770_v8 }
 0x4c1   : > { %5160 = vst [vmem:[%s8347_s13 + $0x48] sm:$0xff] %v4819_v25 }
 0x4c5   : > { %v4868_v56 = vpop.f32.mrf.mxu2 }
 0x4c6   : > { %5161 = vst [vmem:[%s8347_s13 + $0x50] sm:$0xff] %v4868_v56  ;;  %v4917_v49 = vpop.f32.mrf.mxu3  ;;  %v4773_v33 = vpop.f32.mrf.mxu0 }
 0x4c7   : > { %5162 = vst [vmem:[%s8347_s13 + $0x58] sm:$0xff] %v4917_v49  ;;  %v4822_v42 = vpop.f32.mrf.mxu1 }
 0x4c8   : > { %5167 = vst [vmem:[%s8347_s13 + $0x80] sm:$0xff] %v4773_v33 }
 0x4c9   : > { %5168 = vst [vmem:[%s8347_s13 + $0x88] sm:$0xff] %v4822_v42  ;;  %7253 = vmatmul.msk.bf16.gmra.mxu0 %vm4734_vm2, %v9900_v28  ;;  %7261 = vmatmul.msk.bf16.gmra.mxu1 %vm4734_vm2, %v9900_v28 }
 0x4ca   : > { %7269 = vmatmul.msk.bf16.gmra.mxu2 %vm4734_vm2, %v9900_v28 }
 0x4cb   : > { %7277 = vmatmul.msk.bf16.gmra.mxu3 %vm4734_vm2, %v9900_v28 }
 0x4cd   : > { %v4871_v12 = vpop.f32.mrf.mxu2 }
 0x4ce   : > { %5169 = vst [vmem:[%s8347_s13 + $0x90] sm:$0xff] %v4871_v12  ;;  %v4920_v59 = vpop.f32.mrf.mxu3  ;;  %v4775_v51 = vpop.f32.mrf.mxu0 }
 0x4cf   : > { %5170 = vst [vmem:[%s8347_s13 + $0x98] sm:$0xff] %v4920_v59  ;;  %v4824_v52 = vpop.f32.mrf.mxu1 }
 0x4d0   : > { %5175 = vst [vmem:[%s8347_s13 + $0xc0] sm:$0xff] %v4775_v51 }
 0x4d1   : > { %5176 = vst [vmem:[%s8347_s13 + $0xc8] sm:$0xff] %v4824_v52 }
 0x4d5   : > { %v4873_v39 = vpop.f32.mrf.mxu2 }
 0x4d6   : > { %5177 = vst [vmem:[%s8347_s13 + $0xd0] sm:$0xff] %v4873_v39  ;;  %v4922_v30 = vpop.f32.mrf.mxu3  ;;  %v4778_v23 = vpop.f32.mrf.mxu0 }
 0x4d7   : > { %5178 = vst [vmem:[%s8347_s13 + $0xd8] sm:$0xff] %v4922_v30  ;;  %v4827_v17 = vpop.f32.mrf.mxu1 }
 0x4d8   : > { %5183 = vst [vmem:[%s8347_s13 + $0x100] sm:$0xff] %v4778_v23 }
 0x4d9   : > { %5184 = vst [vmem:[%s8347_s13 + $0x108] sm:$0xff] %v4827_v17  ;;  %7254 = vmatmul.msk.bf16.gmra.mxu0 %vm4734_vm2, %v9914_v43  ;;  %7262 = vmatmul.msk.bf16.gmra.mxu1 %vm4734_vm2, %v9914_v43 }
 0x4da   : > { %7270 = vmatmul.msk.bf16.gmra.mxu2 %vm4734_vm2, %v9914_v43 }
 0x4db   : > { %7278 = vmatmul.msk.bf16.gmra.mxu3 %vm4734_vm2, %v9914_v43 }
 0x4dd   : > { %v4876_v28 = vpop.f32.mrf.mxu2 }
 0x4de   : > { %5185 = vst [vmem:[%s8347_s13 + $0x110] sm:$0xff] %v4876_v28  ;;  %v4925_v46 = vpop.f32.mrf.mxu3  ;;  %v4780_v38 = vpop.f32.mrf.mxu0 }
 0x4df   : > { %5186 = vst [vmem:[%s8347_s13 + $0x118] sm:$0xff] %v4925_v46  ;;  %v4829_v37 = vpop.f32.mrf.mxu1 }
 0x4e0   : > { %5191 = vst [vmem:[%s8347_s13 + $0x140] sm:$0xff] %v4780_v38 }
 0x4e1   : > { %5192 = vst [vmem:[%s8347_s13 + $0x148] sm:$0xff] %v4829_v37 }
 0x4e5   : > { %v4878_v2 = vpop.f32.mrf.mxu2 }
 0x4e6   : > { %5193 = vst [vmem:[%s8347_s13 + $0x150] sm:$0xff] %v4878_v2  ;;  %v4927_v3 = vpop.f32.mrf.mxu3  ;;  %v4783_v45 = vpop.f32.mrf.mxu0 }
 0x4e7   : > { %5194 = vst [vmem:[%s8347_s13 + $0x158] sm:$0xff] %v4927_v3  ;;  %v4832_v14 = vpop.f32.mrf.mxu1 }
 0x4e8   : > { %5199 = vst [vmem:[%s8347_s13 + $0x180] sm:$0xff] %v4783_v45 }
 0x4e9   : > { %5200 = vst [vmem:[%s8347_s13 + $0x188] sm:$0xff] %v4832_v14  ;;  %7255 = vmatmul.msk.bf16.gmra.mxu0 %vm4734_vm2, %v9932_v34  ;;  %7263 = vmatmul.msk.bf16.gmra.mxu1 %vm4734_vm2, %v9932_v34 }
 0x4ea   : > { %7271 = vmatmul.msk.bf16.gmra.mxu2 %vm4734_vm2, %v9932_v34 }
 0x4eb   : > { %7279 = vmatmul.msk.bf16.gmra.mxu3 %vm4734_vm2, %v9932_v34 }
 0x4ed   : > { %v4881_v43 = vpop.f32.mrf.mxu2 }
 0x4ee   : > { %5201 = vst [vmem:[%s8347_s13 + $0x190] sm:$0xff] %v4881_v43  ;;  %v4930_v7 = vpop.f32.mrf.mxu3  ;;  %v4785_v63 = vpop.f32.mrf.mxu0 }
 0x4ef   : > { %5202 = vst [vmem:[%s8347_s13 + $0x198] sm:$0xff] %v4930_v7  ;;  %v4834_v62 = vpop.f32.mrf.mxu1 }
 0x4f0   : > { %5207 = vst [vmem:[%s8347_s13 + $0x1c0] sm:$0xff] %v4785_v63 }
 0x4f1   : > { %5208 = vst [vmem:[%s8347_s13 + $0x1c8] sm:$0xff] %v4834_v62 }
 0x4f5   : > { %v4883_v50 = vpop.f32.mrf.mxu2 }
 0x4f6   : > { %5209 = vst [vmem:[%s8347_s13 + $0x1d0] sm:$0xff] %v4883_v50  ;;  %v4932_v61 = vpop.f32.mrf.mxu3  ;;  %v4788_v44 = vpop.f32.mrf.mxu0 }
 0x4f7   : > { %5210 = vst [vmem:[%s8347_s13 + $0x1d8] sm:$0xff] %v4932_v61  ;;  %v4837_v6 = vpop.f32.mrf.mxu1 }
 0x4f8   : > { %5215 = vst [vmem:[%s8347_s13 + $0x200] sm:$0xff] %v4788_v44 }
 0x4f9   : > { %5216 = vst [vmem:[%s8347_s13 + $0x208] sm:$0xff] %v4837_v6  ;;  %7256 = vmatmul.msk.bf16.gmra.mxu0 %vm4734_vm2, %v9950_v60  ;;  %7264 = vmatmul.msk.bf16.gmra.mxu1 %vm4734_vm2, %v9950_v60 }
 0x4fa   : > { %7272 = vmatmul.msk.bf16.gmra.mxu2 %vm4734_vm2, %v9950_v60 }
 0x4fb   : > { %7280 = vmatmul.msk.bf16.gmra.mxu3 %vm4734_vm2, %v9950_v60 }
 0x4fd   : > { %v4886_v48 = vpop.f32.mrf.mxu2 }
 0x4fe   : > { %5217 = vst [vmem:[%s8347_s13 + $0x210] sm:$0xff] %v4886_v48  ;;  %v4935_v34 = vpop.f32.mrf.mxu3  ;;  %v4790_v10 = vpop.f32.mrf.mxu0 }
 0x4ff   : > { %5218 = vst [vmem:[%s8347_s13 + $0x218] sm:$0xff] %v4935_v34  ;;  %v4839_v31 = vpop.f32.mrf.mxu1 }
 0x500   : > { %5223 = vst [vmem:[%s8347_s13 + $0x240] sm:$0xff] %v4790_v10 }
 0x501   : > { %5224 = vst [vmem:[%s8347_s13 + $0x248] sm:$0xff] %v4839_v31 }
 0x505   : > { %v4888_v35 = vpop.f32.mrf.mxu2 }
 0x506   : > { %5225 = vst [vmem:[%s8347_s13 + $0x250] sm:$0xff] %v4888_v35  ;;  %v4937_v5 = vpop.f32.mrf.mxu3  ;;  %v4793_v11 = vpop.f32.mrf.mxu0 }
 0x507   : > { %5226 = vst [vmem:[%s8347_s13 + $0x258] sm:$0xff] %v4937_v5  ;;  %v4842_v41 = vpop.f32.mrf.mxu1 }
 0x508   : > { %5231 = vst [vmem:[%s8347_s13 + $0x280] sm:$0xff] %v4793_v11 }
 0x509   : > { %5232 = vst [vmem:[%s8347_s13 + $0x288] sm:$0xff] %v4842_v41  ;;  %7257 = vmatmul.msk.bf16.gmra.mxu0 %vm4734_vm2, %v9964_v13  ;;  %7265 = vmatmul.msk.bf16.gmra.mxu1 %vm4734_vm2, %v9964_v13 }
 0x50a   : > { %7273 = vmatmul.msk.bf16.gmra.mxu2 %vm4734_vm2, %v9964_v13 }
 0x50b   : > { %7281 = vmatmul.msk.bf16.gmra.mxu3 %vm4734_vm2, %v9964_v13 }
 0x50d   : > { %v4891_v4 = vpop.f32.mrf.mxu2 }
 0x50e   : > { %5233 = vst [vmem:[%s8347_s13 + $0x290] sm:$0xff] %v4891_v4  ;;  %v4940_v15 = vpop.f32.mrf.mxu3  ;;  %v4795_v53 = vpop.f32.mrf.mxu0 }
 0x50f   : > { %5234 = vst [vmem:[%s8347_s13 + $0x298] sm:$0xff] %v4940_v15  ;;  %v4844_v18 = vpop.f32.mrf.mxu1 }
 0x510   : > { %5239 = vst [vmem:[%s8347_s13 + $0x2c0] sm:$0xff] %v4795_v53 }
 0x511   : > { %5240 = vst [vmem:[%s8347_s13 + $0x2c8] sm:$0xff] %v4844_v18 }
 0x515   : > { %v4893_v20 = vpop.f32.mrf.mxu2 }
 0x516   : > { %5241 = vst [vmem:[%s8347_s13 + $0x2d0] sm:$0xff] %v4893_v20  ;;  %v4942_v22 = vpop.f32.mrf.mxu3  ;;  %v4798_v60 = vpop.f32.mrf.mxu0 }
 0x517   : > { %5242 = vst [vmem:[%s8347_s13 + $0x2d8] sm:$0xff] %v4942_v22  ;;  %v4847_v26 = vpop.f32.mrf.mxu1 }
 0x518   : > { %5247 = vst [vmem:[%s8347_s13 + $0x300] sm:$0xff] %v4798_v60 }
 0x519   : > { %5248 = vst [vmem:[%s8347_s13 + $0x308] sm:$0xff] %v4847_v26  ;;  %7258 = vmatmul.msk.bf16.gmra.mxu0 %vm4734_vm2, %v9978_v24  ;;  %7266 = vmatmul.msk.bf16.gmra.mxu1 %vm4734_vm2, %v9978_v24 }
 0x51a   : > { %7274 = vmatmul.msk.bf16.gmra.mxu2 %vm4734_vm2, %v9978_v24 }
 0x51b   : > { %7282 = vmatmul.msk.bf16.gmra.mxu3 %vm4734_vm2, %v9978_v24 }
 0x51d   : > { %v4896_v19 = vpop.f32.mrf.mxu2 }
 0x51e   : > { %5249 = vst [vmem:[%s8347_s13 + $0x310] sm:$0xff] %v4896_v19  ;;  %v4945_v27 = vpop.f32.mrf.mxu3  ;;  %v4800_v1 = vpop.f32.mrf.mxu0 }
 0x51f   : > { %5250 = vst [vmem:[%s8347_s13 + $0x318] sm:$0xff] %v4945_v27  ;;  %v4849_v32 = vpop.f32.mrf.mxu1 }
 0x520   : > { %5255 = vst [vmem:[%s8347_s13 + $0x340] sm:$0xff] %v4800_v1 }
 0x521   : > { %5256 = vst [vmem:[%s8347_s13 + $0x348] sm:$0xff] %v4849_v32 }
 0x525   : > { %v4898_v58 = vpop.f32.mrf.mxu2 }
 0x526   : > { %5257 = vst [vmem:[%s8347_s13 + $0x350] sm:$0xff] %v4898_v58  ;;  %v4947_v13 = vpop.f32.mrf.mxu3  ;;  %v4803_v0 = vpop.f32.mrf.mxu0 }
 0x527   : > { %5258 = vst [vmem:[%s8347_s13 + $0x358] sm:$0xff] %v4947_v13  ;;  %v4852_v57 = vpop.f32.mrf.mxu1 }
 0x528   : > { %5263 = vst [vmem:[%s8347_s13 + $0x380] sm:$0xff] %v4803_v0 }
 0x529   : > { %5264 = vst [vmem:[%s8347_s13 + $0x388] sm:$0xff] %v4852_v57  ;;  %7259 = vmatmul.msk.bf16.gmra.mxu0 %vm4734_vm2, %v9988_v40  ;;  %7267 = vmatmul.msk.bf16.gmra.mxu1 %vm4734_vm2, %v9988_v40 }
 0x52a   : > { %7275 = vmatmul.msk.bf16.gmra.mxu2 %vm4734_vm2, %v9988_v40 }
 0x52b   : > { %7283 = vmatmul.msk.bf16.gmra.mxu3 %vm4734_vm2, %v9988_v40 }
 0x52d   : > { %v4901_v54 = vpop.f32.mrf.mxu2 }
 0x52e   : > { %5265 = vst [vmem:[%s8347_s13 + $0x390] sm:$0xff] %v4901_v54  ;;  %v4950_v36 = vpop.f32.mrf.mxu3  ;;  %v4805_v9 = vpop.f32.mrf.mxu0 }
 0x52f   : > { %5266 = vst [vmem:[%s8347_s13 + $0x398] sm:$0xff] %v4950_v36  ;;  %v4854_v29 = vpop.f32.mrf.mxu1 }
 0x530   : > { %5271 = vst [vmem:[%s8347_s13 + $0x3c0] sm:$0xff] %v4805_v9 }
 0x531   : > { %5272 = vst [vmem:[%s8347_s13 + $0x3c8] sm:$0xff] %v4854_v29 }
 0x535   : > { %v4903_v24 = vpop.f32.mrf.mxu2 }
 0x536   : > { %5273 = vst [vmem:[%s8347_s13 + $0x3d0] sm:$0xff] %v4903_v24  ;;  %v4952_v55 = vpop.f32.mrf.mxu3  ;;  %v4964_v16 = vpop.f32.mrf.mxu0 }
 0x537   : > { %5274 = vst [vmem:[%s8347_s13 + $0x3d8] sm:$0xff] %v4952_v55  ;;  %v5013_v40 = vpop.f32.mrf.mxu1 }
 0x538   : > { %5155 = vst [vmem:[%s8347_s13 + $0x20] sm:$0xff] %v4964_v16 }
 0x539   : > { %5156 = vst [vmem:[%s8347_s13 + $0x28] sm:$0xff] %v5013_v40 }
 0x53d   : > { %v5062_v47 = vpop.f32.mrf.mxu2 }
 0x53e   : > { %5157 = vst [vmem:[%s8347_s13 + $0x30] sm:$0xff] %v5062_v47  ;;  %v5111_v21 = vpop.f32.mrf.mxu3  ;;  %v4966_v8 = vpop.f32.mrf.mxu0 }
 0x53f   : > { %5158 = vst [vmem:[%s8347_s13 + $0x38] sm:$0xff] %v5111_v21  ;;  %v5015_v25 = vpop.f32.mrf.mxu1 }
 0x540   : > { %5163 = vst [vmem:[%s8347_s13 + $0x60] sm:$0xff] %v4966_v8 }
 0x541   : > { %5164 = vst [vmem:[%s8347_s13 + $0x68] sm:$0xff] %v5015_v25 }
 0x545   : > { %v5064_v56 = vpop.f32.mrf.mxu2 }
 0x546   : > { %5165 = vst [vmem:[%s8347_s13 + $0x70] sm:$0xff] %v5064_v56  ;;  %v5113_v49 = vpop.f32.mrf.mxu3  ;;  %v4969_v33 = vpop.f32.mrf.mxu0 }
 0x547   : > { %5166 = vst [vmem:[%s8347_s13 + $0x78] sm:$0xff] %v5113_v49  ;;  %v5018_v42 = vpop.f32.mrf.mxu1 }
 0x548   : > { %5171 = vst [vmem:[%s8347_s13 + $0xa0] sm:$0xff] %v4969_v33 }
 0x549   : > { %5172 = vst [vmem:[%s8347_s13 + $0xa8] sm:$0xff] %v5018_v42 }
 0x54d   : > { %v5067_v12 = vpop.f32.mrf.mxu2 }
 0x54e   : > { %5173 = vst [vmem:[%s8347_s13 + $0xb0] sm:$0xff] %v5067_v12  ;;  %v5116_v59 = vpop.f32.mrf.mxu3  ;;  %v4971_v51 = vpop.f32.mrf.mxu0 }
 0x54f   : > { %5174 = vst [vmem:[%s8347_s13 + $0xb8] sm:$0xff] %v5116_v59  ;;  %v5020_v52 = vpop.f32.mrf.mxu1 }
 0x550   : > { %5179 = vst [vmem:[%s8347_s13 + $0xe0] sm:$0xff] %v4971_v51 }
 0x551   : > { %5180 = vst [vmem:[%s8347_s13 + $0xe8] sm:$0xff] %v5020_v52 }
 0x555   : > { %v5069_v39 = vpop.f32.mrf.mxu2 }
 0x556   : > { %5181 = vst [vmem:[%s8347_s13 + $0xf0] sm:$0xff] %v5069_v39  ;;  %v5118_v30 = vpop.f32.mrf.mxu3  ;;  %v4974_v23 = vpop.f32.mrf.mxu0 }
 0x557   : > { %5182 = vst [vmem:[%s8347_s13 + $0xf8] sm:$0xff] %v5118_v30  ;;  %v5023_v17 = vpop.f32.mrf.mxu1 }
 0x558   : > { %5187 = vst [vmem:[%s8347_s13 + $0x120] sm:$0xff] %v4974_v23 }
 0x559   : > { %5188 = vst [vmem:[%s8347_s13 + $0x128] sm:$0xff] %v5023_v17 }
 0x55d   : > { %v5072_v28 = vpop.f32.mrf.mxu2 }
 0x55e   : > { %5189 = vst [vmem:[%s8347_s13 + $0x130] sm:$0xff] %v5072_v28  ;;  %v5121_v46 = vpop.f32.mrf.mxu3  ;;  %v4976_v38 = vpop.f32.mrf.mxu0 }
 0x55f   : > { %5190 = vst [vmem:[%s8347_s13 + $0x138] sm:$0xff] %v5121_v46  ;;  %v5025_v37 = vpop.f32.mrf.mxu1 }
 0x560   : > { %5195 = vst [vmem:[%s8347_s13 + $0x160] sm:$0xff] %v4976_v38 }
 0x561   : > { %5196 = vst [vmem:[%s8347_s13 + $0x168] sm:$0xff] %v5025_v37 }
 0x565   : > { %v5074_v2 = vpop.f32.mrf.mxu2 }
 0x566   : > { %5197 = vst [vmem:[%s8347_s13 + $0x170] sm:$0xff] %v5074_v2  ;;  %v5123_v3 = vpop.f32.mrf.mxu3  ;;  %v4979_v45 = vpop.f32.mrf.mxu0 }
 0x567   : > { %5198 = vst [vmem:[%s8347_s13 + $0x178] sm:$0xff] %v5123_v3  ;;  %v5028_v14 = vpop.f32.mrf.mxu1 }
 0x568   : > { %5203 = vst [vmem:[%s8347_s13 + $0x1a0] sm:$0xff] %v4979_v45 }
 0x569   : > { %5204 = vst [vmem:[%s8347_s13 + $0x1a8] sm:$0xff] %v5028_v14 }
 0x56d   : > { %v5077_v43 = vpop.f32.mrf.mxu2 }
 0x56e   : > { %5205 = vst [vmem:[%s8347_s13 + $0x1b0] sm:$0xff] %v5077_v43  ;;  %v5126_v7 = vpop.f32.mrf.mxu3  ;;  %v4981_v63 = vpop.f32.mrf.mxu0 }
 0x56f   : > { %5206 = vst [vmem:[%s8347_s13 + $0x1b8] sm:$0xff] %v5126_v7  ;;  %v5030_v62 = vpop.f32.mrf.mxu1 }
 0x570   : > { %5211 = vst [vmem:[%s8347_s13 + $0x1e0] sm:$0xff] %v4981_v63 }
 0x571   : > { %5212 = vst [vmem:[%s8347_s13 + $0x1e8] sm:$0xff] %v5030_v62 }
 0x575   : > { %v5079_v50 = vpop.f32.mrf.mxu2 }
 0x576   : > { %5213 = vst [vmem:[%s8347_s13 + $0x1f0] sm:$0xff] %v5079_v50  ;;  %v5128_v61 = vpop.f32.mrf.mxu3  ;;  %v4984_v44 = vpop.f32.mrf.mxu0 }
 0x577   : > { %5214 = vst [vmem:[%s8347_s13 + $0x1f8] sm:$0xff] %v5128_v61  ;;  %v5033_v6 = vpop.f32.mrf.mxu1 }
 0x578   : > { %5219 = vst [vmem:[%s8347_s13 + $0x220] sm:$0xff] %v4984_v44 }
 0x579   : > { %5220 = vst [vmem:[%s8347_s13 + $0x228] sm:$0xff] %v5033_v6 }
 0x57d   : > { %v5082_v48 = vpop.f32.mrf.mxu2 }
 0x57e   : > { %5221 = vst [vmem:[%s8347_s13 + $0x230] sm:$0xff] %v5082_v48  ;;  %v5131_v34 = vpop.f32.mrf.mxu3  ;;  %v4986_v10 = vpop.f32.mrf.mxu0 }
 0x57f   : > { %5222 = vst [vmem:[%s8347_s13 + $0x238] sm:$0xff] %v5131_v34  ;;  %v5035_v31 = vpop.f32.mrf.mxu1 }
 0x580   : > { %5227 = vst [vmem:[%s8347_s13 + $0x260] sm:$0xff] %v4986_v10 }
 0x581   : > { %5228 = vst [vmem:[%s8347_s13 + $0x268] sm:$0xff] %v5035_v31 }
 0x585   : > { %v5084_v35 = vpop.f32.mrf.mxu2 }
 0x586   : > { %5229 = vst [vmem:[%s8347_s13 + $0x270] sm:$0xff] %v5084_v35  ;;  %v5133_v5 = vpop.f32.mrf.mxu3  ;;  %v4989_v11 = vpop.f32.mrf.mxu0 }
 0x587   : > { %5230 = vst [vmem:[%s8347_s13 + $0x278] sm:$0xff] %v5133_v5  ;;  %v5038_v41 = vpop.f32.mrf.mxu1 }
 0x588   : > { %5235 = vst [vmem:[%s8347_s13 + $0x2a0] sm:$0xff] %v4989_v11 }
 0x589   : > { %5236 = vst [vmem:[%s8347_s13 + $0x2a8] sm:$0xff] %v5038_v41 }
 0x58d   : > { %v5087_v4 = vpop.f32.mrf.mxu2 }
 0x58e   : > { %5237 = vst [vmem:[%s8347_s13 + $0x2b0] sm:$0xff] %v5087_v4  ;;  %v5136_v15 = vpop.f32.mrf.mxu3  ;;  %v4991_v53 = vpop.f32.mrf.mxu0 }
 0x58f   : > { %5238 = vst [vmem:[%s8347_s13 + $0x2b8] sm:$0xff] %v5136_v15  ;;  %v5040_v18 = vpop.f32.mrf.mxu1 }
 0x590   : > { %5243 = vst [vmem:[%s8347_s13 + $0x2e0] sm:$0xff] %v4991_v53 }
 0x591   : > { %5244 = vst [vmem:[%s8347_s13 + $0x2e8] sm:$0xff] %v5040_v18 }
 0x595   : > { %v5089_v20 = vpop.f32.mrf.mxu2 }
 0x596   : > { %5245 = vst [vmem:[%s8347_s13 + $0x2f0] sm:$0xff] %v5089_v20  ;;  %v5138_v22 = vpop.f32.mrf.mxu3  ;;  %v4994_v60 = vpop.f32.mrf.mxu0 }
 0x597   : > { %5246 = vst [vmem:[%s8347_s13 + $0x2f8] sm:$0xff] %v5138_v22  ;;  %v5043_v26 = vpop.f32.mrf.mxu1 }
 0x598   : > { %5251 = vst [vmem:[%s8347_s13 + $0x320] sm:$0xff] %v4994_v60 }
 0x599   : > { %5252 = vst [vmem:[%s8347_s13 + $0x328] sm:$0xff] %v5043_v26 }
 0x59d   : > { %v5092_v19 = vpop.f32.mrf.mxu2 }
 0x59e   : > { %5253 = vst [vmem:[%s8347_s13 + $0x330] sm:$0xff] %v5092_v19  ;;  %v5141_v27 = vpop.f32.mrf.mxu3  ;;  %v4996_v1 = vpop.f32.mrf.mxu0 }
 0x59f   : > { %5254 = vst [vmem:[%s8347_s13 + $0x338] sm:$0xff] %v5141_v27  ;;  %v5045_v32 = vpop.f32.mrf.mxu1 }
 0x5a0   : > { %5259 = vst [vmem:[%s8347_s13 + $0x360] sm:$0xff] %v4996_v1 }
 0x5a1   : > { %5260 = vst [vmem:[%s8347_s13 + $0x368] sm:$0xff] %v5045_v32 }
 0x5a5   : > { %v5094_v58 = vpop.f32.mrf.mxu2 }
 0x5a6   : > { %5261 = vst [vmem:[%s8347_s13 + $0x370] sm:$0xff] %v5094_v58  ;;  %v5143_v13 = vpop.f32.mrf.mxu3  ;;  %v4999_v0 = vpop.f32.mrf.mxu0 }
 0x5a7   : > { %5262 = vst [vmem:[%s8347_s13 + $0x378] sm:$0xff] %v5143_v13  ;;  %v5048_v57 = vpop.f32.mrf.mxu1 }
 0x5a8   : > { %5267 = vst [vmem:[%s8347_s13 + $0x3a0] sm:$0xff] %v4999_v0 }
 0x5a9   : > { %5268 = vst [vmem:[%s8347_s13 + $0x3a8] sm:$0xff] %v5048_v57 }
 0x5ad   : > { %v5097_v54 = vpop.f32.mrf.mxu2 }
 0x5ae   : > { %5269 = vst [vmem:[%s8347_s13 + $0x3b0] sm:$0xff] %v5097_v54  ;;  %v5146_v36 = vpop.f32.mrf.mxu3  ;;  %v5001_v9 = vpop.f32.mrf.mxu0 }
 0x5af   : > { %5270 = vst [vmem:[%s8347_s13 + $0x3b8] sm:$0xff] %v5146_v36  ;;  %v5050_v29 = vpop.f32.mrf.mxu1 }
 0x5b0   : > { %5275 = vst [vmem:[%s8347_s13 + $0x3e0] sm:$0xff] %v5001_v9 }
 0x5b1   : > { %5276 = vst [vmem:[%s8347_s13 + $0x3e8] sm:$0xff] %v5050_v29 }
 0x5b5   : > { %v5099_v24 = vpop.f32.mrf.mxu2 }
 0x5b6   : > { %5277 = vst [vmem:[%s8347_s13 + $0x3f0] sm:$0xff] %v5099_v24  ;;  %v5148_v55 = vpop.f32.mrf.mxu3 }
 0x5b7   : > { %5278 = vst [vmem:[%s8347_s13 + $0x3f8] sm:$0xff] %v5148_v55 }
 0x5b8   : > { %7987 = shalt.err (!%p7984_p12)
}
 0x5b9   : > { %s8117_s12 = smov 1024   ;;  %s8118_s13 = smov 4096  }
 0x5ba   : > { %s8119_s7 = smov 64  }
 0x5bb   : > { %7762 = dma.vmem_to_hbm [thread:$0]  (%p8300_p1), %s5295_s14, 16384, %s5297_s9, %s5280_s11, %s8117_s12, %s8118_s13, %s8119_s7  }
 0x5bc PF: > { %s10306_s24 = sld [smem:[#allocation12_spill]]  ;;  %p7776_p3 = scmp.ge.s32.totalorder %s8110_s10, 2 }
 0x5be   : > { %p7772_p13 = pnand %p7776_p3, %p8315_p5 }
 0x5c0   : > { %p7773_p0 = pneg %p7772_p13 }
 0x5c2   : > { %s5311_s18 = sand.u32 1, %s10306_s24  }
 0x5c3   : > { %s5312_s6 = scalar_lea.sflag [#allocation5], %s5311_s18 }
 0x5c4   : > { %8053 = dma.done.wait (%p7773_p0), %s5312_s6, 16384  }
 0x5c5   : > { %8055 = vsyncadd (%p7773_p0), %s5312_s6, 4294950912  ;;  %s25_s10 = sadd.s32 1, %s8110_s10   ;;  %s10308_s27 = sld [smem:[#allocation17_spill]] }
 0x5c6   : > { %p10213_p4 = scmp.ge.s32.totalorder %s25_s10, 10   ;;  %s10309_s15 = sld [smem:[#allocation19_spill]] }
 0x5c7   : > { %s10310_s7 = sld [smem:[#allocation14_spill]]  ;;  %s10314_s21 = smov %s8062_s22 }
 0x5c8   : > { %s10311_s14 = sld [smem:[#allocation15_spill]]  ;;  %s10315_s22 = smov %s8066_s23 }
 0x5c9   : > { %s10312_s9 = sld [smem:[#allocation16_spill]]  ;;  %s10316_s23 = smov %s8312_s2 }
 0x5ca   : > { %s10317_s24 = smov %s8074_s25  ;;  %s10318_s25 = smov %s8078_s26 }
 0x5cb   : > { %s10319_s26 = smov %s10308_s27  ;;  %s10320_s27 = smov %s8086_s28 }
 0x5cc   : > { %s10321_s28 = smov %s8090_s29  ;;  %s10322_s29 = smov %s10309_s15 }
 0x5cd   : > { %s10323_s30 = smov %s8102_s8  ;;  %24 = sbr.rel (!%p10213_p4) target bundleno = 17 (0x11), region = 106 }
 0x5ce   : > { %s10324_s8 = smov %s10311_s14 }
 0x5d2   :  { %5318 = vsyncpa [#allocation4], 1 }
 0x5d3   :  { %5320 = vsyncpa [#allocation4 + $0x1], 1 }
 0x5d4   :  { %5321 = vsyncpa [#allocation7], 1 }
 0x5d5   :  { %5323 = vsyncpa [#allocation7 + $0x1], 1 }
 0x5d6   :  { %5324 = vsyncpa [#allocation5], 1 }
 0x5d7   :  { %5326 = vsyncpa [#allocation5 + $0x1], 1 }

</bundles_post_ra>
